<compile_context>
chip_gen: v6e
topology: v6e:2x2x1
jax: 0.10.0
libtpu: 0.0.40
codegen_flags: <defaults>
</compile_context>

<pallas_src>
import functools

import jax
import jax.numpy as jnp
from jax.experimental import pallas as pl
from jax.experimental.pallas import tpu as pltpu


def _rec_loss_kernel(pred_ref, tgt_ref, out_ref, *, total_t):
    """One grid step = one batch element x one time tile.

    pred_ref : VMEM (1, Q, tT)           quantized prediction logits (f32/bf16)
    tgt_ref  : VMEM (1, 1, tT) int32     target sample indices
    out_ref  : VMEM (1, 1, 1, tT) f32    per-(batch, time-tile, lane) value of
                                         (logsumexp - picked_logit) = -log_softmax[tgt]
    """
    t = pl.program_id(1)
    q = pred_ref.shape[1]
    tile_t = pred_ref.shape[2]

    x = pred_ref[0]                                       # (Q, tT), input dtype
    tgt = tgt_ref[0]                                      # (1, tT) int32

    # Max over the quantization (sublane) axis -- exact in bf16 or f32.
    m = jnp.max(x, axis=0, keepdims=True)                 # (1, tT)

    # Single shared temporary: shifted logits in f32.  Both reductions below
    # consume it back-to-back (one fused sweep), and the max term cancels in
    # (lse - picked), so we never reconstruct the un-shifted values.
    xm = x.astype(jnp.float32) - m.astype(jnp.float32)    # (Q, tT) f32

    # Per-lane gather x[target[t], t] via one-hot compare/select (pure VPU/XLU).
    # NOTE: an out-of-range target silently picks the max logit instead of
    # raising like torch.gather.
    q_iota = jax.lax.broadcasted_iota(jnp.int32, (q, 1), 0)   # (Q, 1), broadcast in ==
    eq = q_iota == tgt                                        # (Q, tT) bool

    sum_exp = jnp.sum(jnp.exp(xm), axis=0, keepdims=True)             # (1, tT)
    picked = jnp.sum(jnp.where(eq, xm, 0.0), axis=0, keepdims=True)   # (1, tT)

    contrib = jnp.log(sum_exp) - picked          # = lse - x[tgt] = -log_softmax[tgt]

    if total_t % tile_t != 0:                    # mask ragged final tile (traced
        lane = jax.lax.broadcasted_iota(jnp.int32, (1, tile_t), 1)   # only if ragged)
        contrib = jnp.where(t * tile_t + lane < total_t, contrib, 0.0)

    out_ref[...] = contrib[None, None]           # (1, 1, 1, tT)


def rec_loss(quant_pred, target_wav, *, t_tile=2048):
    """quant_pred: (B, Q, T) float; target_wav: (B, T) int. Returns scalar loss."""
    B, Q, T = quant_pred.shape
    if T <= t_tile:
        tT = T                                   # single full-dim tile
    else:
        assert t_tile % 128 == 0, "t_tile must be a multiple of 128 when tiling T"
        tT = t_tile
    n_t = pl.cdiv(T, tT)

    tgt3 = target_wav.astype(jnp.int32).reshape(B, 1, T)

    kernel = functools.partial(_rec_loss_kernel, total_t=T)

    itemsize = jnp.dtype(quant_pred.dtype).itemsize
    cost = pl.CostEstimate(
        flops=7 * B * Q * T,                     # max/sub/cmp/select/add sweeps
        transcendentals=B * Q * T,               # one exp per logit
        bytes_accessed=B * Q * T * itemsize + B * T * 4 + B * n_t * tT * 4,
    )

    grid_spec = pltpu.PrefetchScalarGridSpec(
        num_scalar_prefetch=0,
        grid=(B, n_t),
        in_specs=[
            pl.BlockSpec((1, Q, tT), lambda b, t: (b, 0, t)),      # logits tile
            pl.BlockSpec((1, 1, tT), lambda b, t: (b, 0, t)),      # targets tile
        ],
        # Per-tile partials (lane-dense, last two dims = full array dims), so
        # both grid axes are independent -> both "parallel" (v7x 2-TC sharding).
        out_specs=pl.BlockSpec((1, 1, 1, tT), lambda b, t: (b, t, 0, 0)),
    )

    partial_sums = pl.pallas_call(
        kernel,
        out_shape=jax.ShapeDtypeStruct((B, n_t, 1, tT), jnp.float32),
        grid_spec=grid_spec,
        compiler_params=pltpu.CompilerParams(
            dimension_semantics=("parallel", "parallel"),
            vmem_limit_bytes=32 * 1024 * 1024),
        cost_estimate=cost,
    )(quant_pred, tgt3)

    # Tiny final reduction + mean in XLA.  partial_sums already holds
    # -log_softmax(x)[tgt] per element (masked lanes are 0), so no extra negate.
    return jnp.sum(partial_sums) / (B * T)
    # TODO(synk): the PyTorch module also stashes self.metrics = {'rec': loss};
    # that is just the same scalar, no kernel equivalent needed.


def _rec_loss_ref(quant_pred, target_wav):
    log_pred = jax.nn.log_softmax(quant_pred.astype(jnp.float32), axis=1)
    idx = target_wav.astype(jnp.int32)[:, None, :]
    picked = jnp.take_along_axis(log_pred, idx, axis=1)
    return -jnp.mean(picked)


if __name__ == "__main__":
    key = jax.random.PRNGKey(0)

    # Case 1: aligned time axis, multiple tiles (t_tile=512 so T=1024 -> 2 tiles), f32.
    k1, k2, key = (*jax.random.split(key, 2), key)
    B, Q, T = 2, 256, 1024
    qp = jax.random.normal(k1, (B, Q, T), jnp.float32) * 3.0
    tgt = jax.random.randint(k2, (B, T), 0, Q, dtype=jnp.int32)
    out = jax.block_until_ready(rec_loss(qp, tgt, t_tile=512))
    exp = _rec_loss_ref(qp, tgt)
    assert out.shape == (), out.shape
    assert jnp.allclose(out, exp, atol=1e-4, rtol=1e-5), (float(out), float(exp))

    # Case 2: ragged time axis (last tile masked), f32.
    k1, k2, key = (*jax.random.split(key, 2), key)
    B, Q, T = 2, 256, 1000
    qp = jax.random.normal(k1, (B, Q, T), jnp.float32) * 2.0
    tgt = jax.random.randint(k2, (B, T), 0, Q, dtype=jnp.int32)
    out = jax.block_until_ready(rec_loss(qp, tgt, t_tile=512))
    exp = _rec_loss_ref(qp, tgt)
    assert jnp.allclose(out, exp, atol=1e-4, rtol=1e-5), (float(out), float(exp))

    # Case 3: small T (single full-dim tile, default t_tile), bf16 logits.
    k1, k2, key = (*jax.random.split(key, 2), key)
    B, Q, T = 2, 64, 200
    qp = (jax.random.normal(k1, (B, Q, T), jnp.float32) * 2.0).astype(jnp.bfloat16)
    tgt = jax.random.randint(k2, (B, T), 0, Q, dtype=jnp.int32)
    out = jax.block_until_ready(rec_loss(qp, tgt))
    exp = _rec_loss_ref(qp.astype(jnp.float32), tgt)
    assert jnp.allclose(out, exp, atol=1e-3, rtol=1e-4), (float(out), float(exp))

    # Case 4: default 2048-lane tile on an aligned T (2 tiles), f32.
    k1, k2, key = (*jax.random.split(key, 2), key)
    B, Q, T = 1, 128, 4096
    qp = jax.random.normal(k1, (B, Q, T), jnp.float32) * 3.0
    tgt = jax.random.randint(k2, (B, T), 0, Q, dtype=jnp.int32)
    out = jax.block_until_ready(rec_loss(qp, tgt))
    exp = _rec_loss_ref(qp, tgt)
    assert jnp.allclose(out, exp, atol=1e-4, rtol=1e-5), (float(out), float(exp))

    print("KERNEL_OK")
</pallas_src>

<mosaic_0001>
module attributes {stable_mosaic.version = 11 : i64} {
  func.func @_rec_loss_kernel(%arg0: i32, %arg1: i32, %arg2: memref<1x256x512xf32, #tpu.memory_space<vmem>>, %arg3: memref<1x1x512xi32, #tpu.memory_space<vmem>>, %arg4: memref<1x1x1x512xf32, #tpu.memory_space<vmem>>) attributes {dimension_semantics = [#tpu.dimension_semantics<parallel>, #tpu.dimension_semantics<parallel>], iteration_bounds = array<i64: 2, 2>, scalar_prefetch = 0 : i64, scratch_operands = 0 : i64, tpu.core_type = #tpu.core_type<tc>, window_params = [{transform_indices = @transform_0, window_bounds = array<i64: 1, 256, 512>}, {transform_indices = @transform_1, window_bounds = array<i64: 1, 1, 512>}, {transform_indices = @transform_2, window_bounds = array<i64: 1, 1, 1, 512>}]} {
    %c0 = arith.constant 0 : index
    %c0_0 = arith.constant 0 : index
    %c0_1 = arith.constant 0 : index
    %0 = vector.load %arg2[%c0, %c0_0, %c0_1] : memref<1x256x512xf32, #tpu.memory_space<vmem>>, vector<1x256x512xf32>
    %1 = vector.shape_cast %0 : vector<1x256x512xf32> to vector<256x512xf32>
    %c0_2 = arith.constant 0 : index
    %c0_3 = arith.constant 0 : index
    %c0_4 = arith.constant 0 : index
    %2 = vector.load %arg3[%c0_2, %c0_3, %c0_4] : memref<1x1x512xi32, #tpu.memory_space<vmem>>, vector<1x1x512xi32>
    %3 = vector.shape_cast %2 : vector<1x1x512xi32> to vector<1x512xi32>
    %cst = arith.constant dense<0xFF800000> : vector<512xf32>
    %4 = vector.multi_reduction <maximumf>, %1, %cst [0] : vector<256x512xf32> to vector<512xf32>
    %5 = vector.shape_cast %4 : vector<512xf32> to vector<1x512xf32>
    %6 = vector.broadcast %5 : vector<1x512xf32> to vector<256x512xf32>
    %7 = arith.subf %1, %6 : vector<256x512xf32>
    %8 = tpu.iota {dimensions = array<i32: 0>} : vector<256x1xi32>
    %9 = vector.broadcast %8 : vector<256x1xi32> to vector<256x512xi32>
    %10 = vector.broadcast %3 : vector<1x512xi32> to vector<256x512xi32>
    %11 = arith.cmpi eq, %9, %10 : vector<256x512xi32>
    %12 = math.exp %7 : vector<256x512xf32>
    %cst_5 = arith.constant dense<0.000000e+00> : vector<512xf32>
    %13 = vector.multi_reduction <add>, %12, %cst_5 [0] : vector<256x512xf32> to vector<512xf32>
    %14 = vector.shape_cast %13 : vector<512xf32> to vector<1x512xf32>
    %cst_6 = arith.constant 0.000000e+00 : f32
    %15 = vector.broadcast %cst_6 : f32 to vector<256x512xf32>
    %16 = arith.select %11, %7, %15 : vector<256x512xi1>, vector<256x512xf32>
    %cst_7 = arith.constant dense<0.000000e+00> : vector<512xf32>
    %17 = vector.multi_reduction <add>, %16, %cst_7 [0] : vector<256x512xf32> to vector<512xf32>
    %18 = vector.shape_cast %17 : vector<512xf32> to vector<1x512xf32>
    %19 = math.log %14 : vector<1x512xf32>
    %20 = arith.subf %19, %18 : vector<1x512xf32>
    %21 = vector.shape_cast %20 : vector<1x512xf32> to vector<1x1x1x512xf32>
    %c0_8 = arith.constant 0 : index
    %c0_9 = arith.constant 0 : index
    %c0_10 = arith.constant 0 : index
    %c0_11 = arith.constant 0 : index
    %22 = vector.load %arg4[%c0_8, %c0_9, %c0_10, %c0_11] : memref<1x1x1x512xf32, #tpu.memory_space<vmem>>, vector<1x1x1x512xf32>
    tpu.vector_store %arg4[%c0_8, %c0_9, %c0_10, %c0_11], %21 {strides = array<i32>} : memref<1x1x1x512xf32, #tpu.memory_space<vmem>>, vector<1x1x1x512xf32>,
    return
  }
  func.func @transform_0(%arg0: i32, %arg1: i32) -> (i32, i32, i32) {
    %c0_i32 = arith.constant 0 : i32
    %c0_i32_0 = arith.constant 0 : i32
    return %arg0, %c0_i32, %arg1 : i32, i32, i32
  }
  func.func @transform_1(%arg0: i32, %arg1: i32) -> (i32, i32, i32) {
    %c0_i32 = arith.constant 0 : i32
    %c0_i32_0 = arith.constant 0 : i32
    return %arg0, %c0_i32, %arg1 : i32, i32, i32
  }
  func.func @transform_2(%arg0: i32, %arg1: i32) -> (i32, i32, i32, i32) {
    %c0_i32 = arith.constant 0 : i32
    %c0_i32_0 = arith.constant 0 : i32
    %c0_i32_1 = arith.constant 0 : i32
    return %arg0, %arg1, %c0_i32, %c0_i32_0 : i32, i32, i32, i32
  }
}

</mosaic_0001>

<bundles_post_ra>
// kernel: tpu_custom_call.1
= control target key start
LH: loop header
LB: loop body
LE: loop exit
PB: predicated region body
PF: predicated region fallthrough
CT: control target
= control target key end

     0   :  { %s5098_s0 = inlined_call_operand.hbm [shape: f32[2,256,1024], index: 0, kind: input, shape index: {}]   ;;  %s5099_s1 = inlined_call_operand.hbm [shape: s32[2,1,1024], index: 1, kind: input, shape index: {}]   ;;  %s5100_s2 = inlined_call_operand.hbm [shape: f32[2,2,1,512], index: 2, kind: output, shape index: {}]  }
   0x1   :  { %5362 = sst [smem:[#allocation195_spill]] %s5098_s0 }
   0x2   :  { %7 = vsyncpa [#allocation3], 0 }
   0x3   :  { %9 = vsyncpa [#allocation3 + $0x1], 0 }
   0x4   :  { %10 = vsyncpa [#allocation6], 0 }
   0x5   :  { %12 = vsyncpa [#allocation6 + $0x1], 0 }
   0x6   :  { %13 = vsyncpa [#allocation4], 0 }
   0x7   :  { %15 = vsyncpa [#allocation4 + $0x1], 0  ;;  %s2215_s9 = smov 0   ;;  %s2217_s10 = smov 0  }
   0x8   :  { %s2219_s11 = smov 0   ;;  %s2221_s12 = smov 0  }
   0x9   :  { %s2223_s13 = smov 0   ;;  %s2225_s14 = smov 0  }
   0xa   :  { %s2227_s15 = smov 0   ;;  %s2229_s16 = smov 0  }
   0xb LB: > { %5363 = sst [smem:[#allocation11_spill]] %s2171_s11  ;;  %s1662_s17 = sadd.s32 4294967295, %s2191_s16   ;;  %s2191_s16 = sphi %s2229_s16, %s21_s16   ;;  %s2187_s15 = sphi %s2227_s15, %s6119_s15   ;;  %s2183_s14 = sphi %s2225_s14, %s6118_s14   ;;  %s2179_s13 = sphi %s2223_s13, %s6117_s13   ;;  %s2175_s12 = sphi %s2221_s12, %s6116_s12   ;;  %s2171_s11 = sphi %s2219_s11, %s6111_s11   ;;  %s2167_s10 = sphi %s2217_s10, %s6115_s10   ;;  %s2163_s9 = sphi %s2215_s9, %s6114_s9  }
   0xc   : > { %s1663_s18 = sadd.s32 4294967294, %s2191_s16   ;;  %s30_s19 = sadd.s32 1, %s2183_s14 }
   0xd   : > { %s33_s20 = sadd.s32 1, %s2187_s15  ;;  %p31_p0 = scmp.ge.s32.totalorder %s30_s19, 2 }
   0xe   : > { %s42_s21 = sadd.s32 1, %s2171_s11  ;;  %p49_p1 = scmp.ne.s32.totalorder %s2171_s11, %s2167_s10 }
   0xf   : > { %p50_p2 = scmp.eq.s32.totalorder %s2191_s16, 0  ;;  %s6121_s19 = smov (%p31_p0, %s30_s19), 0 }
  0x10   : > { %5364 = sst [smem:[#allocation12_spill]] %s6121_s19  ;;  %s6123_s20 = smov (!%p31_p0, %s33_s20), %s2187_s15 }
  0x11   : > { %s38_s22 = ssub.s32 %s2183_s14, %s6121_s19  ;;  %p2268_p3 = por %p50_p2, %p49_p1 }
  0x12   : > { %p35_p4 = scmp.ge.s32.totalorder %s6123_s20, 2  ;;  %p55_p5 = scmp.ne.s32.totalorder %s2167_s10, %s2163_s9 }
  0x13   : > { %p56_p6 = scmp.eq.s32.totalorder %s1662_s17, 0  ;;  %p109_p7 = scmp.eq.s32.totalorder %s1662_s17, 3 }
  0x14   : > { %s6125_s20 = smov (%p35_p4, %s6123_s20), 0  ;;  %p115_p10 = scmp.eq.s32.totalorder %s1663_s18, 3 }
  0x15   : > { %5366 = sst [smem:[#allocation13_spill]] %s6125_s20  ;;  %p2276_p8 = por %p56_p6, %p55_p5 }
  0x16   : > { %p2280_p9 = por %p109_p7, %p49_p1  ;;  %s37_s26 = ssub.s32 %s2187_s15, %s6125_s20 }
  0x17   : > { %s39_s27 = sor.u32 %s38_s22, %s37_s26  ;;  %p2286_p12 = por %p115_p10, %p55_p5 }
  0x18   : > { %p40_p11 = scmp.eq.s32.totalorder %s39_s27, 0  ;;  %p1701_p13 = scmp.lt.s32.totalorder %s2191_s16, 4 }
  0x19   : > { %s5369_s28 = scalar_select %p2286_p12, 1, 0 }
  0x1a   : > { %s2292_s29 = sand.u32 1, %s2171_s11   ;;  %s1667_s4 = sshll.u32 %s2183_s14, 2 }
  0x1b   : > { %5370 = sst [smem:[#allocation14_spill]] %s5369_s28  ;;  %s1666_s3 = sshll.u32 %s2292_s29, 10 }
  0x1c   : > { %s2295_s30 = scalar_select %p40_p11, %s2171_s11, %s42_s21  }
  0x1d   : > { %s1668_s5 = sshll.u32 %s2187_s15, 8  ;;  %s139_s6 = scalar_lea.vmem [#allocation2], %s1666_s3 }
  0x1e   : > { %5371 = sst [smem:[#allocation15_spill]] %s2295_s30  ;;  %s148_s7 = sshll.u32 %s139_s6, 4  ;;  %s149_s7 = int_to_ptr.vmem [resolvable:$true] %s148_s7 }
  0x1f   : > { %s145_s8 = sadd.s32 %s1668_s5, %s1667_s4  ;;  %p2304_p0 = pnand %p1701_p13, %p2268_p3 }
  0x20   : > { %s1669_s17 = sshll.u32 %s145_s8, 7  ;;  %s5373_s0 = sld [smem:[#allocation195_spill]] }
  0x21   : > { %p1674_p1 = scmp.ge.s32.totalorder %s2191_s16, 1  ;;  %s136_s27 = scalar_lea.sflag [#allocation3], %s2292_s29 }
  0x22   : > { %p2037_p2 = pneg %p2304_p0  ;;  %s2048_s3 = scalar_lea.vmem %s149_s7, 16384 }
  0x23   : > { %p2049_p4 = scmp.ne.s32.totalorder %s149_s7, %s2048_s3  ;;  %s2193_s23 = smov [#allocation2]  }
  0x24   : > { %s2053_s5 = sshll.u32 %s2193_s23, 4  ;;  %s2054_s5 = int_to_ptr.vmem [resolvable:$false] %s2053_s5 }
  0x25   : > { %p2051_p5 = pnand %p2049_p4, %p2037_p2  ;;  %s2055_s6 = scalar_lea.vmem %s2054_s5, 32768 }
  0x26   : > { %s147_s21 = scalar_lea.hbm %s5373_s0, %s1669_s17  ;;  %p2056_p3 = scmp.lt.s32.totalorder %s149_s7, %s2054_s5 }
  0x27   : > { %p2052_p6 = pneg %p2051_p5  ;;  %p2057_p7 = scmp.lt.s32.totalorder %s2055_s6, %s2048_s3 }
  0x29   : > { %p2058_p10 = por %p2057_p7, %p2056_p3 }
  0x2b   : > { %p2059_p11 = pnand %p2058_p10, %p2052_p6 }
  0x2d   : > { %2062 = shalt.err (!%p2059_p11)
}
  0x2e   : > { %s2194_s8 = smov 1024   ;;  %s2195_s17 = smov 512  }
  0x2f   : > { %s2196_s22 = smov 32   ;;  %p177_p13 = scmp.lt.s32.totalorder %s2191_s16, 5 }
  0x30   : > { %1693 = dma.hbm_to_vmem [thread:$0]  (!%p2304_p0), %s147_s21, 16384, %s149_s7, %s136_s27, %s2194_s8, %s2195_s17, %s2196_s22  }
  0x31   : > { %s1670_s26 = sshll.u32 %s2292_s29, 2  ;;  %s1672_s23 = sshll.u32 %s2187_s15, 3 }
  0x32   : > { %p2325_p4 = pnand %p1674_p1, %p177_p13  ;;  %s168_s5 = sadd.s32 %s1672_s23, %s1667_s4 }
  0x33   : > { %s162_s6 = scalar_lea.vmem [#allocation5], %s1670_s26  ;;  %s1673_s20 = sshll.u32 %s168_s5, 4 }
  0x34   : > { %s172_s0 = sshll.u32 %s162_s6, 4  ;;  %s170_s11 = scalar_lea.hbm %s5099_s1, %s1673_s20  ;;  %s173_s0 = int_to_ptr.vmem [resolvable:$true] %s172_s0 }
  0x35   : > { %s159_s28 = scalar_lea.sflag [#allocation6], %s2292_s29  ;;  %s2076_s7 = scalar_lea.vmem %s173_s0, 64 }
  0x36   : > { %p2077_p5 = scmp.ne.s32.totalorder %s173_s0, %s2076_s7  ;;  %s2197_s21 = smov [#allocation5]  }
  0x37   : > { %s2081_s27 = sshll.u32 %s2197_s21, 4  ;;  %s2082_s27 = int_to_ptr.vmem [resolvable:$false] %s2081_s27 }
  0x38   : > { %p2079_p6 = pnand %p2077_p5, %p2037_p2  ;;  %s2083_s8 = scalar_lea.vmem %s2082_s27, 128 }
  0x39   : > { %p2084_p3 = scmp.lt.s32.totalorder %s173_s0, %s2082_s27  ;;  %p2085_p7 = scmp.lt.s32.totalorder %s2083_s8, %s2076_s7 }
  0x3a   : > { %p2080_p1 = pneg %p2079_p6 }
  0x3b   : > { %p2086_p10 = por %p2085_p7, %p2084_p3 }
  0x3d   : > { %p2087_p11 = pnand %p2086_p10, %p2080_p1 }
  0x3f   : > { %2090 = shalt.err (!%p2087_p11)
}
  0x40   : > { %1696 = dma.hbm_to_vmem [thread:$0]  (!%p2304_p0), %s170_s11, 64, %s173_s0, %s159_s28  }
  0x41   : > { %181 = sbr.rel (%p2325_p4) target bundleno = 452 (0x1c4), region = 28 }
  0x46   : > { %s2343_s19 = sand.u32 1, %s2167_s10  }
  0x47   : > { %s1675_s20 = sshll.u32 %s2343_s19, 10  ;;  %s184_s29 = scalar_lea.sflag [#allocation3], %s2343_s19 }
  0x48   : > { %s2347_s30 = scalar_lea.vmem [#allocation2], %s1675_s20 }
  0x49   : > { %2150 = dma.done.wait (%p2276_p8), %s184_s29, 16384  }
  0x4a   : > { %2152 = vsyncadd (%p2276_p8), %s184_s29, 4294950912  ;;  %s1676_s0 = sshll.u32 %s2343_s19, 2  ;;  %s193_s11 = scalar_lea.sflag [#allocation6], %s2343_s19 }
  0x4b   : > { %s2357_s28 = scalar_lea.vmem [#allocation5], %s1676_s0 }
  0x4c   : > { %2154 = dma.done.wait (%p2276_p8), %s193_s11, 64  }
  0x4d   : > { %2156 = vsyncadd (%p2276_p8), %s193_s11, 4294967232  ;;  %v2364_v0 = vld [vmem:[%s2347_s30 + $0x40] sm:$0xff]  ;;  %v2367_v1 = vld [vmem:[%s2347_s30 + $0x48] sm:$0xff]  ;;  %s1679_s24 = sshll.u32 %s2175_s12, 2  ;;  %s1680_s4 = sshll.u32 %s2179_s13, 3 }
  0x4e   : > { %v2370_v2 = vld [vmem:[%s2347_s30 + $0x50] sm:$0xff]  ;;  %v2373_v3 = vld [vmem:[%s2347_s30 + $0x58] sm:$0xff]  ;;  %v2376_v4 = vld [vmem:[%s2347_s30 + $0x60] sm:$0xff]  ;;  %s1545_s18 = sadd.s32 %s1680_s4, %s1679_s24  ;;  %s221_s22 = scalar_lea.vmem [#allocation7], %s1676_s0 }
  0x4f   : > { %v2379_v5 = vld [vmem:[%s2347_s30 + $0x68] sm:$0xff]  ;;  %v2382_v6 = vld [vmem:[%s2347_s30 + $0x70] sm:$0xff]  ;;  %v354_v7 = vmax.f32 %v2376_v4, %v2364_v0  ;;  %v2391_v10 = vld [vmem:[%s2347_s30 + $0x78] sm:$0xff]  ;;  %s1681_s17 = sshll.u32 %s1545_s18, 4  ;;  %s1549_s26 = sshll.u32 %s221_s22, 4  ;;  %s1550_s26 = int_to_ptr.vmem [resolvable:$true] %s1549_s26 }
  0x50   : > { %v391_v8 = vmax.f32 %v2379_v5, %v2367_v1  ;;  %v428_v9 = vmax.f32 %v2382_v6, %v2370_v2  ;;  %v2394_v11 = vld [vmem:[%s2347_s30 + $0x80] sm:$0xff]  ;;  %v2397_v12 = vld [vmem:[%s2347_s30 + $0x88] sm:$0xff]  ;;  %v465_v13 = vmax.f32 %v2391_v10, %v2373_v3  ;;  %v2402_v14 = vld [vmem:[%s2347_s30 + $0x90] sm:$0xff]  ;;  %s1547_s13 = scalar_lea.hbm %s5100_s2, %s1681_s17  ;;  %s1533_s3 = scalar_lea.sflag [#allocation4], %s2343_s19 }
  0x51   : > { %v2405_v15 = vld [vmem:[%s2347_s30 + $0x98] sm:$0xff]  ;;  %v2408_v16 = vld [vmem:[%s2347_s30 + $0xa0] sm:$0xff]  ;;  %v355_v17 = vmax.f32 %v354_v7, %v2394_v11  ;;  %v2414_v20 = vld [vmem:[%s2347_s30 + $0xa8] sm:$0xff]  ;;  %s2091_s5 = scalar_lea.vmem %s1550_s26, 64  ;;  %s2199_s6 = smov [#allocation7]  }
  0x52   : > { %v392_v18 = vmax.f32 %v391_v8, %v2397_v12  ;;  %v429_v19 = vmax.f32 %v428_v9, %v2402_v14  ;;  %v2417_v21 = vld [vmem:[%s2347_s30 + $0xb0] sm:$0xff]  ;;  %v2420_v22 = vld [vmem:[%s2347_s30 + $0xb8] sm:$0xff]  ;;  %v466_v23 = vmax.f32 %v465_v13, %v2405_v15  ;;  %v2424_v24 = vld [vmem:[%s2347_s30 + $0xc0] sm:$0xff]  ;;  %p2092_p8 = scmp.ne.s32.totalorder %s1550_s26, %s2091_s5  ;;  %s2095_s7 = sshll.u32 %s2199_s6, 4  ;;  %s2096_s7 = int_to_ptr.vmem [resolvable:$false] %s2095_s7 }
  0x53   : > { %v2427_v25 = vld [vmem:[%s2347_s30 + $0xc8] sm:$0xff]  ;;  %v2430_v26 = vld [vmem:[%s2347_s30 + $0xd0] sm:$0xff]  ;;  %v356_v27 = vmax.f32 %v355_v17, %v2408_v16  ;;  %v2436_v30 = vld [vmem:[%s2347_s30 + $0xd8] sm:$0xff]  ;;  %s2097_s21 = scalar_lea.vmem %s2096_s7, 128  ;;  %p2098_p13 = scmp.lt.s32.totalorder %s1550_s26, %s2096_s7 }
  0x54   : > { %v393_v28 = vmax.f32 %v392_v18, %v2414_v20  ;;  %v430_v29 = vmax.f32 %v429_v19, %v2417_v21  ;;  %v467_v31 = vmax.f32 %v466_v23, %v2420_v22  ;;  %v2440_v32 = vld [vmem:[%s2347_s30 + $0xe0] sm:$0xff]  ;;  %v2443_v33 = vld [vmem:[%s2347_s30 + $0xe8] sm:$0xff]  ;;  %v2446_v34 = vld [vmem:[%s2347_s30 + $0xf0] sm:$0xff]  ;;  %p2093_p0 = pnand %p2092_p8, %p2280_p9  ;;  %p2099_p4 = scmp.lt.s32.totalorder %s2097_s21, %s2091_s5 }
  0x55   : > { %v357_v35 = vmax.f32 %v356_v27, %v2424_v24  ;;  %v2452_v38 = vld [vmem:[%s2347_s30 + $0xf8] sm:$0xff]  ;;  %v2456_v40 = vld [vmem:[%s2347_s30 + $0x100] sm:$0xff]  ;;  %v2459_v41 = vld [vmem:[%s2347_s30 + $0x108] sm:$0xff] }
  0x56   : > { %v394_v36 = vmax.f32 %v393_v28, %v2427_v25  ;;  %v431_v37 = vmax.f32 %v430_v29, %v2430_v26  ;;  %v468_v39 = vmax.f32 %v467_v31, %v2436_v30  ;;  %v2462_v42 = vld [vmem:[%s2347_s30 + $0x110] sm:$0xff]  ;;  %v2468_v46 = vld [vmem:[%s2347_s30 + $0x118] sm:$0xff]  ;;  %v2472_v48 = vld [vmem:[%s2347_s30 + $0x120] sm:$0xff]  ;;  %p2094_p2 = pneg %p2093_p0  ;;  %p2100_p5 = por %p2099_p4, %p2098_p13 }
  0x57   : > { %v358_v43 = vmax.f32 %v357_v35, %v2440_v32  ;;  %v2475_v49 = vld [vmem:[%s2347_s30 + $0x128] sm:$0xff]  ;;  %v2478_v50 = vld [vmem:[%s2347_s30 + $0x130] sm:$0xff]  ;;  %v2484_v54 = vld [vmem:[%s2347_s30 + $0x138] sm:$0xff] }
  0x58   : > { %v395_v44 = vmax.f32 %v394_v36, %v2443_v33  ;;  %v432_v45 = vmax.f32 %v431_v37, %v2446_v34  ;;  %v469_v47 = vmax.f32 %v468_v39, %v2452_v38  ;;  %5375 = vst [vmem:[#allocation16_spill] sm:$0xff] %v2478_v50  ;;  %5376 = vst [vmem:[#allocation17_spill] sm:$0xff] %v2484_v54  ;;  %v2488_v56 = vld [vmem:[%s2347_s30 + $0x140] sm:$0xff]  ;;  %v2491_v57 = vld [vmem:[%s2347_s30 + $0x148] sm:$0xff]  ;;  %p2101_p6 = pnand %p2100_p5, %p2094_p2 }
  0x59   : > { %v359_v51 = vmax.f32 %v358_v43, %v2456_v40  ;;  %5377 = vst [vmem:[#allocation18_spill] sm:$0xff] %v2488_v56  ;;  %5378 = vst [vmem:[#allocation19_spill] sm:$0xff] %v2491_v57  ;;  %v2494_v58 = vld [vmem:[%s2347_s30 + $0x150] sm:$0xff]  ;;  %v2500_v62 = vld [vmem:[%s2347_s30 + $0x158] sm:$0xff] }
  0x5a   : > { %v396_v52 = vmax.f32 %v395_v44, %v2459_v41  ;;  %v433_v53 = vmax.f32 %v432_v45, %v2462_v42  ;;  %v470_v55 = vmax.f32 %v469_v47, %v2468_v46  ;;  %5379 = vst [vmem:[#allocation20_spill] sm:$0xff] %v2494_v58  ;;  %5380 = vst [vmem:[#allocation21_spill] sm:$0xff] %v2500_v62  ;;  %v2504_v7 = vld [vmem:[%s2347_s30 + $0x160] sm:$0xff]  ;;  %v2507_v8 = vld [vmem:[%s2347_s30 + $0x168] sm:$0xff] }
  0x5b   : > { %v360_v59 = vmax.f32 %v359_v51, %v2472_v48  ;;  %5381 = vst [vmem:[#allocation22_spill] sm:$0xff] %v2504_v7  ;;  %5382 = vst [vmem:[#allocation23_spill] sm:$0xff] %v2507_v8  ;;  %v2510_v9 = vld [vmem:[%s2347_s30 + $0x170] sm:$0xff]  ;;  %v2516_v19 = vld [vmem:[%s2347_s30 + $0x178] sm:$0xff] }
  0x5c   : > { %v397_v60 = vmax.f32 %v396_v52, %v2475_v49  ;;  %v434_v61 = vmax.f32 %v433_v53, %v2478_v50  ;;  %v471_v63 = vmax.f32 %v470_v55, %v2484_v54  ;;  %5383 = vst [vmem:[#allocation24_spill] sm:$0xff] %v2510_v9  ;;  %5384 = vst [vmem:[#allocation25_spill] sm:$0xff] %v2516_v19  ;;  %v2520_v27 = vld [vmem:[%s2347_s30 + $0x180] sm:$0xff]  ;;  %v2523_v28 = vld [vmem:[%s2347_s30 + $0x188] sm:$0xff] }
  0x5d   : > { %v361_v13 = vmax.f32 %v360_v59, %v2488_v56  ;;  %5385 = vst [vmem:[#allocation26_spill] sm:$0xff] %v2520_v27  ;;  %5386 = vst [vmem:[#allocation27_spill] sm:$0xff] %v2523_v28  ;;  %v2526_v29 = vld [vmem:[%s2347_s30 + $0x190] sm:$0xff]  ;;  %v2532_v37 = vld [vmem:[%s2347_s30 + $0x198] sm:$0xff] }
  0x5e   : > { %v398_v17 = vmax.f32 %v397_v60, %v2491_v57  ;;  %v435_v18 = vmax.f32 %v434_v61, %v2494_v58  ;;  %v472_v23 = vmax.f32 %v471_v63, %v2500_v62  ;;  %5387 = vst [vmem:[#allocation28_spill] sm:$0xff] %v2526_v29  ;;  %5388 = vst [vmem:[#allocation29_spill] sm:$0xff] %v2532_v37  ;;  %v2536_v43 = vld [vmem:[%s2347_s30 + $0x1a0] sm:$0xff]  ;;  %v2539_v44 = vld [vmem:[%s2347_s30 + $0x1a8] sm:$0xff] }
  0x5f   : > { %v362_v31 = vmax.f32 %v361_v13, %v2504_v7  ;;  %5389 = vst [vmem:[#allocation30_spill] sm:$0xff] %v2536_v43  ;;  %5390 = vst [vmem:[#allocation31_spill] sm:$0xff] %v2539_v44  ;;  %v2542_v45 = vld [vmem:[%s2347_s30 + $0x1b0] sm:$0xff]  ;;  %v2548_v53 = vld [vmem:[%s2347_s30 + $0x1b8] sm:$0xff] }
  0x60   : > { %v399_v35 = vmax.f32 %v398_v17, %v2507_v8  ;;  %v436_v36 = vmax.f32 %v435_v18, %v2510_v9  ;;  %v473_v39 = vmax.f32 %v472_v23, %v2516_v19  ;;  %5391 = vst [vmem:[#allocation32_spill] sm:$0xff] %v2542_v45  ;;  %5392 = vst [vmem:[#allocation33_spill] sm:$0xff] %v2548_v53  ;;  %v2552_v59 = vld [vmem:[%s2347_s30 + $0x1c0] sm:$0xff]  ;;  %v2555_v60 = vld [vmem:[%s2347_s30 + $0x1c8] sm:$0xff] }
  0x61   : > { %v363_v47 = vmax.f32 %v362_v31, %v2520_v27  ;;  %5393 = vst [vmem:[#allocation34_spill] sm:$0xff] %v2552_v59  ;;  %5394 = vst [vmem:[#allocation35_spill] sm:$0xff] %v2555_v60  ;;  %v2558_v61 = vld [vmem:[%s2347_s30 + $0x1d0] sm:$0xff]  ;;  %v2564_v18 = vld [vmem:[%s2347_s30 + $0x1d8] sm:$0xff] }
  0x62   : > { %v400_v51 = vmax.f32 %v399_v35, %v2523_v28  ;;  %v437_v52 = vmax.f32 %v436_v36, %v2526_v29  ;;  %v474_v55 = vmax.f32 %v473_v39, %v2532_v37  ;;  %5395 = vst [vmem:[#allocation36_spill] sm:$0xff] %v2558_v61  ;;  %5396 = vst [vmem:[#allocation37_spill] sm:$0xff] %v2564_v18  ;;  %v2568_v31 = vld [vmem:[%s2347_s30 + $0x1e0] sm:$0xff]  ;;  %v2571_v35 = vld [vmem:[%s2347_s30 + $0x1e8] sm:$0xff] }
  0x63   : > { %v364_v63 = vmax.f32 %v363_v47, %v2536_v43  ;;  %5397 = vst [vmem:[#allocation38_spill] sm:$0xff] %v2568_v31  ;;  %5398 = vst [vmem:[#allocation39_spill] sm:$0xff] %v2571_v35  ;;  %v2574_v36 = vld [vmem:[%s2347_s30 + $0x1f0] sm:$0xff]  ;;  %v2852_v37 = vld [vmem:[%s2347_s30 + $0x3e8] sm:$0xff] }
  0x64   : > { %v401_v13 = vmax.f32 %v400_v51, %v2539_v44  ;;  %v438_v17 = vmax.f32 %v437_v52, %v2542_v45  ;;  %v475_v23 = vmax.f32 %v474_v55, %v2548_v53  ;;  %5399 = vst [vmem:[#allocation40_spill] sm:$0xff] %v2574_v36  ;;  %v2580_v52 = vld [vmem:[%s2347_s30 + $0x1f8] sm:$0xff]  ;;  %v2584_v53 = vld [vmem:[%s2347_s30 + $0x200] sm:$0xff]  ;;  %v2587_v45 = vld [vmem:[%s2347_s30 + $0x208] sm:$0xff] }
  0x65   : > { %v365_v39 = vmax.f32 %v364_v63, %v2552_v59  ;;  %5400 = vst [vmem:[#allocation41_spill] sm:$0xff] %v2580_v52  ;;  %5401 = vst [vmem:[#allocation42_spill] sm:$0xff] %v2584_v53  ;;  %v2590_v44 = vld [vmem:[%s2347_s30 + $0x210] sm:$0xff]  ;;  %v2855_v29 = vld [vmem:[%s2347_s30 + $0x38] sm:$0xff] }
  0x66   : > { %v402_v47 = vmax.f32 %v401_v13, %v2555_v60  ;;  %v439_v51 = vmax.f32 %v438_v17, %v2558_v61  ;;  %v476_v55 = vmax.f32 %v475_v23, %v2564_v18  ;;  %5402 = vst [vmem:[#allocation43_spill] sm:$0xff] %v2587_v45  ;;  %5403 = vst [vmem:[#allocation44_spill] sm:$0xff] %v2590_v44  ;;  %v2596_v61 = vld [vmem:[%s2347_s30 + $0x218] sm:$0xff]  ;;  %v2600_v18 = vld [vmem:[%s2347_s30 + $0x220] sm:$0xff] }
  0x67   : > { %v366_v63 = vmax.f32 %v365_v39, %v2568_v31  ;;  %5404 = vst [vmem:[#allocation45_spill] sm:$0xff] %v2596_v61  ;;  %5405 = vst [vmem:[#allocation46_spill] sm:$0xff] %v2600_v18  ;;  %v2603_v60 = vld [vmem:[%s2347_s30 + $0x228] sm:$0xff]  ;;  %v2606_v59 = vld [vmem:[%s2347_s30 + $0x230] sm:$0xff] }
  0x68   : > { %v403_v13 = vmax.f32 %v402_v47, %v2571_v35  ;;  %v440_v17 = vmax.f32 %v439_v51, %v2574_v36  ;;  %v477_v23 = vmax.f32 %v476_v55, %v2580_v52  ;;  %5406 = vst [vmem:[#allocation47_spill] sm:$0xff] %v2603_v60  ;;  %5407 = vst [vmem:[#allocation48_spill] sm:$0xff] %v2606_v59  ;;  %v2612_v36 = vld [vmem:[%s2347_s30 + $0x238] sm:$0xff]  ;;  %v2616_v52 = vld [vmem:[%s2347_s30 + $0x240] sm:$0xff] }
  0x69   : > { %v367_v39 = vmax.f32 %v366_v63, %v2584_v53  ;;  %5408 = vst [vmem:[#allocation49_spill] sm:$0xff] %v2612_v36  ;;  %5409 = vst [vmem:[#allocation50_spill] sm:$0xff] %v2616_v52  ;;  %v2619_v35 = vld [vmem:[%s2347_s30 + $0x248] sm:$0xff]  ;;  %v2622_v31 = vld [vmem:[%s2347_s30 + $0x250] sm:$0xff] }
  0x6a   : > { %v404_v47 = vmax.f32 %v403_v13, %v2587_v45  ;;  %v441_v51 = vmax.f32 %v440_v17, %v2590_v44  ;;  %v478_v55 = vmax.f32 %v477_v23, %v2596_v61  ;;  %5410 = vst [vmem:[#allocation51_spill] sm:$0xff] %v2619_v35  ;;  %5411 = vst [vmem:[#allocation52_spill] sm:$0xff] %v2622_v31  ;;  %v2628_v44 = vld [vmem:[%s2347_s30 + $0x258] sm:$0xff]  ;;  %v2632_v61 = vld [vmem:[%s2347_s30 + $0x260] sm:$0xff] }
  0x6b   : > { %v368_v63 = vmax.f32 %v367_v39, %v2600_v18  ;;  %5412 = vst [vmem:[#allocation53_spill] sm:$0xff] %v2628_v44  ;;  %5413 = vst [vmem:[#allocation54_spill] sm:$0xff] %v2632_v61  ;;  %v2635_v45 = vld [vmem:[%s2347_s30 + $0x268] sm:$0xff]  ;;  %v2638_v53 = vld [vmem:[%s2347_s30 + $0x270] sm:$0xff] }
  0x6c   : > { %v405_v13 = vmax.f32 %v404_v47, %v2603_v60  ;;  %v442_v17 = vmax.f32 %v441_v51, %v2606_v59  ;;  %v479_v23 = vmax.f32 %v478_v55, %v2612_v36  ;;  %5414 = vst [vmem:[#allocation55_spill] sm:$0xff] %v2635_v45  ;;  %5415 = vst [vmem:[#allocation56_spill] sm:$0xff] %v2638_v53  ;;  %v2644_v59 = vld [vmem:[%s2347_s30 + $0x278] sm:$0xff]  ;;  %v2648_v36 = vld [vmem:[%s2347_s30 + $0x280] sm:$0xff] }
  0x6d   : > { %v369_v39 = vmax.f32 %v368_v63, %v2616_v52  ;;  %5416 = vst [vmem:[#allocation57_spill] sm:$0xff] %v2644_v59  ;;  %5417 = vst [vmem:[#allocation58_spill] sm:$0xff] %v2648_v36  ;;  %v2651_v60 = vld [vmem:[%s2347_s30 + $0x288] sm:$0xff]  ;;  %v2654_v18 = vld [vmem:[%s2347_s30 + $0x290] sm:$0xff] }
  0x6e   : > { %v406_v47 = vmax.f32 %v405_v13, %v2619_v35  ;;  %v443_v51 = vmax.f32 %v442_v17, %v2622_v31  ;;  %v480_v55 = vmax.f32 %v479_v23, %v2628_v44  ;;  %5418 = vst [vmem:[#allocation59_spill] sm:$0xff] %v2651_v60  ;;  %5419 = vst [vmem:[#allocation60_spill] sm:$0xff] %v2654_v18  ;;  %v2660_v31 = vld [vmem:[%s2347_s30 + $0x298] sm:$0xff]  ;;  %v2664_v44 = vld [vmem:[%s2347_s30 + $0x2a0] sm:$0xff] }
  0x6f   : > { %v370_v63 = vmax.f32 %v369_v39, %v2632_v61  ;;  %5420 = vst [vmem:[#allocation61_spill] sm:$0xff] %v2660_v31  ;;  %5421 = vst [vmem:[#allocation62_spill] sm:$0xff] %v2664_v44  ;;  %v2667_v35 = vld [vmem:[%s2347_s30 + $0x2a8] sm:$0xff]  ;;  %v2670_v52 = vld [vmem:[%s2347_s30 + $0x2b0] sm:$0xff] }
  0x70   : > { %v407_v13 = vmax.f32 %v406_v47, %v2635_v45  ;;  %v444_v17 = vmax.f32 %v443_v51, %v2638_v53  ;;  %v481_v23 = vmax.f32 %v480_v55, %v2644_v59  ;;  %5422 = vst [vmem:[#allocation63_spill] sm:$0xff] %v2667_v35  ;;  %5423 = vst [vmem:[#allocation64_spill] sm:$0xff] %v2670_v52  ;;  %v2676_v53 = vld [vmem:[%s2347_s30 + $0x2b8] sm:$0xff]  ;;  %v2680_v59 = vld [vmem:[%s2347_s30 + $0x2c0] sm:$0xff] }
  0x71   : > { %v371_v39 = vmax.f32 %v370_v63, %v2648_v36  ;;  %5424 = vst [vmem:[#allocation65_spill] sm:$0xff] %v2676_v53  ;;  %5425 = vst [vmem:[#allocation66_spill] sm:$0xff] %v2680_v59  ;;  %v2683_v45 = vld [vmem:[%s2347_s30 + $0x2c8] sm:$0xff]  ;;  %v2686_v61 = vld [vmem:[%s2347_s30 + $0x2d0] sm:$0xff] }
  0x72   : > { %v408_v47 = vmax.f32 %v407_v13, %v2651_v60  ;;  %v445_v51 = vmax.f32 %v444_v17, %v2654_v18  ;;  %v482_v55 = vmax.f32 %v481_v23, %v2660_v31  ;;  %5426 = vst [vmem:[#allocation67_spill] sm:$0xff] %v2683_v45  ;;  %5427 = vst [vmem:[#allocation68_spill] sm:$0xff] %v2686_v61  ;;  %v2692_v18 = vld [vmem:[%s2347_s30 + $0x2d8] sm:$0xff]  ;;  %v2696_v31 = vld [vmem:[%s2347_s30 + $0x2e0] sm:$0xff] }
  0x73   : > { %v372_v63 = vmax.f32 %v371_v39, %v2664_v44  ;;  %5428 = vst [vmem:[#allocation69_spill] sm:$0xff] %v2692_v18  ;;  %5429 = vst [vmem:[#allocation70_spill] sm:$0xff] %v2696_v31  ;;  %v2699_v60 = vld [vmem:[%s2347_s30 + $0x2e8] sm:$0xff]  ;;  %v2702_v36 = vld [vmem:[%s2347_s30 + $0x2f0] sm:$0xff] }
  0x74   : > { %v409_v13 = vmax.f32 %v408_v47, %v2667_v35  ;;  %v446_v17 = vmax.f32 %v445_v51, %v2670_v52  ;;  %v483_v23 = vmax.f32 %v482_v55, %v2676_v53  ;;  %5430 = vst [vmem:[#allocation71_spill] sm:$0xff] %v2699_v60  ;;  %5431 = vst [vmem:[#allocation72_spill] sm:$0xff] %v2702_v36  ;;  %v2708_v51 = vld [vmem:[%s2347_s30 + $0x2f8] sm:$0xff]  ;;  %v2712_v55 = vld [vmem:[%s2347_s30 + $0x300] sm:$0xff] }
  0x75   : > { %v373_v43 = vmax.f32 %v372_v63, %v2680_v59  ;;  %5432 = vst [vmem:[#allocation73_spill] sm:$0xff] %v2708_v51  ;;  %5433 = vst [vmem:[#allocation74_spill] sm:$0xff] %v2712_v55  ;;  %v2715_v53 = vld [vmem:[%s2347_s30 + $0x308] sm:$0xff]  ;;  %v2718_v35 = vld [vmem:[%s2347_s30 + $0x310] sm:$0xff] }
  0x76   : > { %v410_v39 = vmax.f32 %v409_v13, %v2683_v45  ;;  %v447_v47 = vmax.f32 %v446_v17, %v2686_v61  ;;  %v484_v52 = vmax.f32 %v483_v23, %v2692_v18  ;;  %5434 = vst [vmem:[#allocation75_spill] sm:$0xff] %v2715_v53  ;;  %5435 = vst [vmem:[#allocation76_spill] sm:$0xff] %v2718_v35  ;;  %v2724_v17 = vld [vmem:[%s2347_s30 + $0x318] sm:$0xff]  ;;  %v2731_v44 = vld [vmem:[%s2347_s30 + $0x320] sm:$0xff] }
  0x77   : > { %v374_v63 = vmax.f32 %v373_v43, %v2696_v31  ;;  %5436 = vst [vmem:[#allocation77_spill] sm:$0xff] %v2724_v17  ;;  %5437 = vst [vmem:[#allocation78_spill] sm:$0xff] %v2731_v44  ;;  %v2734_v43 = vld [vmem:[%s2347_s30 + $0x328] sm:$0xff]  ;;  %v2849_v31 = vld [vmem:[%s2347_s30 + $0x3e0] sm:$0xff] }
  0x78   : > { %v411_v59 = vmax.f32 %v410_v39, %v2699_v60  ;;  %v448_v13 = vmax.f32 %v447_v47, %v2702_v36  ;;  %v485_v23 = vmax.f32 %v484_v52, %v2708_v51  ;;  %5438 = vst [vmem:[#allocation79_spill] sm:$0xff] %v2734_v43  ;;  %v2738_v47 = vld [vmem:[%s2347_s30 + $0x330] sm:$0xff]  ;;  %v2741_v36 = vld [vmem:[%s2347_s30 + $0x338] sm:$0xff]  ;;  %5461 = vst [vmem:[#allocation102_spill] sm:$0xff] %v2849_v31 }
  0x79   : > { %v375_v18 = vmax.f32 %v374_v63, %v2712_v55  ;;  %5439 = vst [vmem:[#allocation80_spill] sm:$0xff] %v2738_v47  ;;  %5440 = vst [vmem:[#allocation81_spill] sm:$0xff] %v2741_v36  ;;  %v2844_v55 = vld [vmem:[%s2347_s30 + $0x30] sm:$0xff]  ;;  %v2861_v27 = vld [vmem:[%s2347_s30 + $0x3f8] sm:$0xff] }
  0x7a   : > { %v412_v61 = vmax.f32 %v411_v59, %v2715_v53  ;;  %v449_v45 = vmax.f32 %v448_v13, %v2718_v35  ;;  %v486_v39 = vmax.f32 %v485_v23, %v2724_v17  ;;  %v2748_v35 = vld [vmem:[%s2347_s30 + $0x340] sm:$0xff]  ;;  %v2751_v53 = vld [vmem:[%s2347_s30 + $0x348] sm:$0xff]  ;;  %v2754_v23 = vld [vmem:[%s2347_s30 + $0x350] sm:$0xff]  ;;  %5462 = vst [vmem:[#allocation103_spill] sm:$0xff] %v2852_v37 }
  0x7b   : > { %v376_v52 = vmax.f32 %v375_v18, %v2731_v44  ;;  %5441 = vst [vmem:[#allocation82_spill] sm:$0xff] %v2748_v35  ;;  %5442 = vst [vmem:[#allocation83_spill] sm:$0xff] %v2751_v53  ;;  %v2757_v17 = vld [vmem:[%s2347_s30 + $0x358] sm:$0xff]  ;;  %v2858_v28 = vld [vmem:[%s2347_s30 + $0x3f0] sm:$0xff] }
  0x7c   : > { %v413_v59 = vmax.f32 %v412_v61, %v2734_v43  ;;  %v450_v63 = vmax.f32 %v449_v45, %v2738_v47  ;;  %v487_v13 = vmax.f32 %v486_v39, %v2741_v36  ;;  %5443 = vst [vmem:[#allocation84_spill] sm:$0xff] %v2754_v23  ;;  %5444 = vst [vmem:[#allocation85_spill] sm:$0xff] %v2757_v17  ;;  %v2764_v36 = vld [vmem:[%s2347_s30 + $0x360] sm:$0xff]  ;;  %v2767_v47 = vld [vmem:[%s2347_s30 + $0x368] sm:$0xff] }
  0x7d   : > { %v377_v18 = vmax.f32 %v376_v52, %v2748_v35  ;;  %5445 = vst [vmem:[#allocation86_spill] sm:$0xff] %v2764_v36  ;;  %5446 = vst [vmem:[#allocation87_spill] sm:$0xff] %v2767_v47  ;;  %v2770_v43 = vld [vmem:[%s2347_s30 + $0x370] sm:$0xff]  ;;  %v2773_v44 = vld [vmem:[%s2347_s30 + $0x378] sm:$0xff] }
  0x7e   : > { %v414_v61 = vmax.f32 %v413_v59, %v2751_v53  ;;  %v451_v45 = vmax.f32 %v450_v63, %v2754_v23  ;;  %v488_v39 = vmax.f32 %v487_v13, %v2757_v17  ;;  %5447 = vst [vmem:[#allocation88_spill] sm:$0xff] %v2770_v43  ;;  %5448 = vst [vmem:[#allocation89_spill] sm:$0xff] %v2773_v44  ;;  %v2780_v17 = vld [vmem:[%s2347_s30 + $0x380] sm:$0xff]  ;;  %v2783_v23 = vld [vmem:[%s2347_s30 + $0x388] sm:$0xff] }
  0x7f   : > { %v378_v52 = vmax.f32 %v377_v18, %v2764_v36  ;;  %5449 = vst [vmem:[#allocation90_spill] sm:$0xff] %v2780_v17  ;;  %5450 = vst [vmem:[#allocation91_spill] sm:$0xff] %v2783_v23  ;;  %v2786_v53 = vld [vmem:[%s2347_s30 + $0x390] sm:$0xff]  ;;  %v2789_v35 = vld [vmem:[%s2347_s30 + $0x398] sm:$0xff] }
  0x80   : > { %v415_v59 = vmax.f32 %v414_v61, %v2767_v47  ;;  %v452_v63 = vmax.f32 %v451_v45, %v2770_v43  ;;  %v489_v13 = vmax.f32 %v488_v39, %v2773_v44  ;;  %5451 = vst [vmem:[#allocation92_spill] sm:$0xff] %v2786_v53  ;;  %5452 = vst [vmem:[#allocation93_spill] sm:$0xff] %v2789_v35  ;;  %v2796_v44 = vld [vmem:[%s2347_s30 + $0x3a0] sm:$0xff]  ;;  %v2799_v43 = vld [vmem:[%s2347_s30 + $0x3a8] sm:$0xff] }
  0x81   : > { %v379_v18 = vmax.f32 %v378_v52, %v2780_v17  ;;  %5453 = vst [vmem:[#allocation94_spill] sm:$0xff] %v2796_v44  ;;  %5454 = vst [vmem:[#allocation95_spill] sm:$0xff] %v2799_v43  ;;  %v2802_v47 = vld [vmem:[%s2347_s30 + $0x3b0] sm:$0xff]  ;;  %v2805_v36 = vld [vmem:[%s2347_s30 + $0x3b8] sm:$0xff] }
  0x82   : > { %v416_v61 = vmax.f32 %v415_v59, %v2783_v23  ;;  %v453_v45 = vmax.f32 %v452_v63, %v2786_v53  ;;  %v490_v39 = vmax.f32 %v489_v13, %v2789_v35  ;;  %5455 = vst [vmem:[#allocation96_spill] sm:$0xff] %v2802_v47  ;;  %5456 = vst [vmem:[#allocation97_spill] sm:$0xff] %v2805_v36  ;;  %v2812_v35 = vld [vmem:[%s2347_s30 + $0x3c0] sm:$0xff]  ;;  %v2815_v53 = vld [vmem:[%s2347_s30 + $0x3c8] sm:$0xff] }
  0x83   : > { %v380_v52 = vmax.f32 %v379_v18, %v2796_v44  ;;  %5457 = vst [vmem:[#allocation98_spill] sm:$0xff] %v2812_v35  ;;  %5458 = vst [vmem:[#allocation99_spill] sm:$0xff] %v2815_v53  ;;  %v2818_v23 = vld [vmem:[%s2347_s30 + $0x3d0] sm:$0xff]  ;;  %v2821_v17 = vld [vmem:[%s2347_s30 + $0x3d8] sm:$0xff] }
  0x84   : > { %v417_v59 = vmax.f32 %v416_v61, %v2799_v43  ;;  %v454_v63 = vmax.f32 %v453_v45, %v2802_v47  ;;  %v491_v13 = vmax.f32 %v490_v39, %v2805_v36  ;;  %5459 = vst [vmem:[#allocation100_spill] sm:$0xff] %v2818_v23  ;;  %5460 = vst [vmem:[#allocation101_spill] sm:$0xff] %v2821_v17  ;;  %v2824_v18 = vld [vmem:[%s2347_s30] sm:$0xff]  ;;  %v2827_v61 = vld [vmem:[%s2347_s30 + $0x8] sm:$0xff] }
  0x85   : > { %v2830_v45 = vld [vmem:[%s2347_s30 + $0x10] sm:$0xff]  ;;  %v2833_v39 = vld [vmem:[%s2347_s30 + $0x18] sm:$0xff]  ;;  %v2836_v36 = vld [vmem:[%s2347_s30 + $0x20] sm:$0xff]  ;;  %v381_v43 = vmax.f32 %v380_v52, %v2812_v35  ;;  %5463 = vst [vmem:[#allocation104_spill] sm:$0xff] %v2858_v28 }
  0x86   : > { %v2839_v47 = vld [vmem:[%s2347_s30 + $0x28] sm:$0xff]  ;;  %v418_v44 = vmax.f32 %v417_v59, %v2815_v53  ;;  %v455_v51 = vmax.f32 %v454_v63, %v2818_v23  ;;  %v492_v60 = vmax.f32 %v491_v13, %v2821_v17  ;;  %5464 = vst [vmem:[#allocation105_spill] sm:$0xff] %v2861_v27  ;;  %v353_v53 = vmax.f32 %v2824_v18, %v2836_v36 }
  0x87   : > { %v382_v52 = vmax.f32 %v381_v43, %v2849_v31  ;;  %v390_v63 = vmax.f32 %v2827_v61, %v2839_v47  ;;  %v427_v23 = vmax.f32 %v2830_v45, %v2844_v55  ;;  %v464_v35 = vmax.f32 %v2833_v39, %v2855_v29 }
  0x88   : > { %v419_v59 = vmax.f32 %v418_v44, %v2852_v37  ;;  %v456_v13 = vmax.f32 %v455_v51, %v2858_v28  ;;  %v493_v17 = vmax.f32 %v492_v60, %v2861_v27  ;;  %v5195_v28 = vlaneseq }
  0x89   : > { %v383_v19 = vmax.f32 %v382_v52, %v353_v53 }
  0x8a   : > { %v420_v43 = vmax.f32 %v419_v59, %v390_v63  ;;  %v457_v31 = vmax.f32 %v456_v13, %v427_v23  ;;  %v494_v44 = vmax.f32 %v493_v17, %v464_v35  ;;  %v2876_v50 = vshrl.u32 %v5195_v28, 7 }
  0x8b   : > { %v384_v37 = vrot.slane %v383_v19, 4 }
  0x8c   : > { %v421_v9 = vrot.slane %v420_v43, 4  ;;  %v458_v8 = vrot.slane %v457_v31, 4  ;;  %v495_v7 = vrot.slane %v494_v44, 4  ;;  %5465 = vst [vmem:[#allocation106_spill] sm:$0xff] %v2876_v50  ;;  %v2879_v53 = vadd.s32 8, %v2876_v50 }
  0x8d   : > { %v385_v62 = vmax.f32 %v383_v19, %v384_v37  ;;  %v2882_v23 = vadd.s32 16, %v2876_v50  ;;  %v2888_v19 = vadd.s32 32, %v2876_v50  ;;  %v2891_v37 = vadd.s32 40, %v2876_v50 }
  0x8e   : > { %v422_v58 = vmax.f32 %v420_v43, %v421_v9  ;;  %v459_v57 = vmax.f32 %v457_v31, %v458_v8  ;;  %v496_v51 = vmax.f32 %v494_v44, %v495_v7  ;;  %5466 = vst [vmem:[#allocation107_spill] sm:$0xff] %v2879_v53  ;;  %v2885_v9 = vadd.s32 24, %v2876_v50  ;;  %v5561_v53 = vld [vmem:[#allocation27_spill] sm:$0xff] }
  0x8f   : > { %v386_v60 = vrot.slane %v385_v62, 2  ;;  %5467 = vst [vmem:[#allocation108_spill] sm:$0xff] %v2882_v23  ;;  %5469 = vst [vmem:[#allocation110_spill] sm:$0xff] %v2888_v19  ;;  %v2894_v31 = vadd.s32 48, %v2876_v50  ;;  %v2915_v52 = vadd.s32 104, %v2876_v50  ;;  %v2918_v13 = vadd.s32 112, %v2876_v50 }
  0x90   : > { %v423_v27 = vrot.slane %v422_v58, 2  ;;  %v460_v56 = vrot.slane %v459_v57, 2  ;;  %v497_v54 = vrot.slane %v496_v51, 2  ;;  %5468 = vst [vmem:[#allocation109_spill] sm:$0xff] %v2885_v9  ;;  %5470 = vst [vmem:[#allocation111_spill] sm:$0xff] %v2891_v37  ;;  %v2921_v43 = vadd.s32 120, %v2876_v50 }
  0x91   : > { %v387_v35 = vmax.f32 %v385_v62, %v386_v60  ;;  %5471 = vst [vmem:[#allocation112_spill] sm:$0xff] %v2894_v31  ;;  %v2897_v62 = vadd.s32 56, %v2876_v50  ;;  %5478 = vst [vmem:[#allocation119_spill] sm:$0xff] %v2915_v52  ;;  %v2924_v60 = vadd.s32 128, %v2876_v50  ;;  %v2927_v28 = vadd.s32 136, %v2876_v50  ;;  %v5553_v37 = vld [vmem:[#allocation23_spill] sm:$0xff] }
  0x92   : > { %v424_v17 = vmax.f32 %v422_v58, %v423_v27  ;;  %v461_v7 = vmax.f32 %v459_v57, %v460_v56  ;;  %v498_v8 = vmax.f32 %v496_v51, %v497_v54  ;;  %v2900_v58 = vadd.s32 64, %v2876_v50  ;;  %5479 = vst [vmem:[#allocation120_spill] sm:$0xff] %v2918_v13  ;;  %5480 = vst [vmem:[#allocation121_spill] sm:$0xff] %v2921_v43  ;;  %v5555_v19 = vld [vmem:[#allocation24_spill] sm:$0xff]  ;;  %v5557_v9 = vld [vmem:[#allocation25_spill] sm:$0xff] }
  0x93   : > { %5472 = vst [vmem:[#allocation113_spill] sm:$0xff] %v2897_v62  ;;  %v2903_v27 = vadd.s32 72, %v2876_v50  ;;  %v2906_v54 = vadd.s32 80, %v2876_v50  ;;  %v2909_v56 = vadd.s32 88, %v2876_v50  ;;  %v2912_v57 = vadd.s32 96, %v2876_v50  ;;  %5481 = vst [vmem:[#allocation122_spill] sm:$0xff] %v2924_v60 }
  0x94   : > { %5473 = vst [vmem:[#allocation114_spill] sm:$0xff] %v2900_v58  ;;  %v388_v59 = vrot.slane %v387_v35, 1  ;;  %v425_v63 = vrot.slane %v424_v17, 1  ;;  %v462_v44 = vrot.slane %v461_v7, 1  ;;  %v499_v51 = vrot.slane %v498_v8, 1  ;;  %5482 = vst [vmem:[#allocation123_spill] sm:$0xff] %v2927_v28 }
  0x95   : > { %5474 = vst [vmem:[#allocation115_spill] sm:$0xff] %v2903_v27  ;;  %5475 = vst [vmem:[#allocation116_spill] sm:$0xff] %v2906_v54  ;;  %v2933_v52 = vadd.s32 152, %v2876_v50  ;;  %v2939_v13 = vadd.s32 168, %v2876_v50  ;;  %v2942_v43 = vadd.s32 176, %v2876_v50  ;;  %v2945_v60 = vadd.s32 184, %v2876_v50 }
  0x96   : > { %5476 = vst [vmem:[#allocation117_spill] sm:$0xff] %v2909_v56  ;;  %5477 = vst [vmem:[#allocation118_spill] sm:$0xff] %v2912_v57  ;;  %v2930_v57 = vadd.s32 144, %v2876_v50  ;;  %v2936_v56 = vadd.s32 160, %v2876_v50  ;;  %v664_v28 = vsub.s32 0, %v2876_v50  ;;  %v668_v54 = vsub.s32 1, %v2876_v50 }
  0x97   : > { %5484 = vst [vmem:[#allocation125_spill] sm:$0xff] %v2933_v52  ;;  %5486 = vst [vmem:[#allocation127_spill] sm:$0xff] %v2939_v13  ;;  %v2950_v27 = vmax.f32 %v387_v35, %v388_v59  ;;  %v2952_v52 = vmax.f32 %v424_v17, %v425_v63  ;;  %v676_v58 = vsub.s32 3, %v2876_v50  ;;  %v2956_v13 = vmax.f32 %v461_v7, %v462_v44  ;;  %v5559_v23 = vld [vmem:[#allocation26_spill] sm:$0xff] }
  0x98   : > { %5483 = vst [vmem:[#allocation124_spill] sm:$0xff] %v2930_v57  ;;  %5485 = vst [vmem:[#allocation126_spill] sm:$0xff] %v2936_v56  ;;  %v352_v57 = vld [vmem:[%s2357_s28] sm:$0xf]  ;;  %v672_v56 = vsub.s32 2, %v2876_v50  ;;  %v2958_v62 = vmax.f32 %v498_v8, %v499_v51  ;;  %v2967_v31 = vadd.s32 208, %v2876_v50 }
  0x99   : > { %5487 = vst [vmem:[#allocation128_spill] sm:$0xff] %v2942_v43  ;;  %5488 = vst [vmem:[#allocation129_spill] sm:$0xff] %v2945_v60  ;;  %v2961_v43 = vadd.s32 192, %v2876_v50  ;;  %v2964_v60 = vadd.s32 200, %v2876_v50  ;;  %v2970_v35 = vadd.s32 216, %v2876_v50  ;;  %v2973_v17 = vadd.s32 224, %v2876_v50 }
  0x9a   : > { %5491 = vst [vmem:[#allocation132_spill] sm:$0xff] %v2967_v31  ;;  %v2976_v7 = vadd.s32 232, %v2876_v50  ;;  %v2979_v8 = vadd.s32 240, %v2876_v50  ;;  %v2982_v59 = vadd.s32 248, %v2876_v50  ;;  %v2984_v63 = vrot.slane %v352_v57, %v664_v28  ;;  %v5547_v31 = vld [vmem:[#allocation20_spill] sm:$0xff]  ;;  %v5569_v50 = vld [vmem:[#allocation31_spill] sm:$0xff] }
  0x9b   : > { %5489 = vst [vmem:[#allocation130_spill] sm:$0xff] %v2961_v43  ;;  %5490 = vst [vmem:[#allocation131_spill] sm:$0xff] %v2964_v60  ;;  %v2986_v44 = vrot.slane %v352_v57, %v668_v54  ;;  %v2990_v51 = vsub.f32 %v2824_v18, %v2950_v27  ;;  %v3006_v28 = vsub.f32 %v2833_v39, %v2958_v62  ;;  %v5539_v54 = vld [vmem:[#allocation16_spill] sm:$0xff]  ;;  %v5549_v60 = vld [vmem:[#allocation21_spill] sm:$0xff] }
  0x9c   : > { %5492 = vst [vmem:[#allocation133_spill] sm:$0xff] %v2970_v35  ;;  %5493 = vst [vmem:[#allocation134_spill] sm:$0xff] %v2973_v17  ;;  %v2994_v17 = vsub.f32 %v2827_v61, %v2952_v52  ;;  %v2996_v35 = vrot.slane %v352_v57, %v672_v56  ;;  %v3010_v18 = vsub.f32 %v2836_v36, %v2950_v27  ;;  %v5541_v56 = vld [vmem:[#allocation17_spill] sm:$0xff]  ;;  %v5551_v43 = vld [vmem:[#allocation22_spill] sm:$0xff] }
  0x9d   : > { %5494 = vst [vmem:[#allocation135_spill] sm:$0xff] %v2976_v7  ;;  %5495 = vst [vmem:[#allocation136_spill] sm:$0xff] %v2979_v8  ;;  %v2998_v7 = vrot.slane %v352_v57, %v676_v58  ;;  %v3002_v8 = vsub.f32 %v2830_v45, %v2956_v13  ;;  %v3014_v61 = vsub.f32 %v2839_v47, %v2952_v52  ;;  %v5543_v57 = vld [vmem:[#allocation18_spill] sm:$0xff] }
  0x9e   : > { %5496 = vst [vmem:[#allocation137_spill] sm:$0xff] %v2982_v59  ;;  %5497 = vst [vmem:[#allocation138_spill] sm:$0xff] %v2984_v63  ;;  %v3018_v58 = vsub.f32 %v2844_v55, %v2956_v13  ;;  %v3022_v45 = vsub.f32 %v2855_v29, %v2958_v62  ;;  %v3026_v39 = vsub.f32 %v2364_v0, %v2950_v27  ;;  %v5545_v59 = vld [vmem:[#allocation19_spill] sm:$0xff]  ;;  %v5571_v63 = vld [vmem:[#allocation32_spill] sm:$0xff] }
  0x9f   : > { %5498 = vst [vmem:[#allocation139_spill] sm:$0xff] %v2986_v44  ;;  %5499 = vst [vmem:[#allocation140_spill] sm:$0xff] %v2990_v51  ;;  %v3030_v36 = vsub.f32 %v2367_v1, %v2952_v52  ;;  %v3034_v47 = vsub.f32 %v2370_v2, %v2956_v13  ;;  %v3038_v55 = vsub.f32 %v2373_v3, %v2958_v62  ;;  %v5567_v44 = vld [vmem:[#allocation30_spill] sm:$0xff] }
  0xa0   : > { %5500 = vst [vmem:[#allocation141_spill] sm:$0xff] %v2994_v17  ;;  %5501 = vst [vmem:[#allocation142_spill] sm:$0xff] %v2996_v35  ;;  %v3042_v29 = vsub.f32 %v2376_v4, %v2950_v27  ;;  %v3046_v0 = vsub.f32 %v2379_v5, %v2952_v52  ;;  %v3050_v1 = vsub.f32 %v2382_v6, %v2956_v13  ;;  %v5565_v35 = vld [vmem:[#allocation29_spill] sm:$0xff] }
  0xa1   : > { %5502 = vst [vmem:[#allocation143_spill] sm:$0xff] %v2998_v7  ;;  %5503 = vst [vmem:[#allocation144_spill] sm:$0xff] %v3002_v8  ;;  %v3054_v2 = vsub.f32 %v2391_v10, %v2958_v62  ;;  %v3058_v3 = vsub.f32 %v2394_v11, %v2950_v27  ;;  %v3062_v4 = vsub.f32 %v2397_v12, %v2952_v52  ;;  %v5563_v7 = vld [vmem:[#allocation28_spill] sm:$0xff] }
  0xa2   : > { %5504 = vst [vmem:[#allocation145_spill] sm:$0xff] %v3006_v28  ;;  %5505 = vst [vmem:[#allocation146_spill] sm:$0xff] %v3010_v18  ;;  %v3066_v5 = vsub.f32 %v2402_v14, %v2956_v13  ;;  %v3070_v6 = vsub.f32 %v2405_v15, %v2958_v62  ;;  %v3074_v10 = vsub.f32 %v2408_v16, %v2950_v27 }
  0xa3   : > { %5506 = vst [vmem:[#allocation147_spill] sm:$0xff] %v3014_v61  ;;  %5507 = vst [vmem:[#allocation148_spill] sm:$0xff] %v3018_v58  ;;  %v3078_v11 = vsub.f32 %v2414_v20, %v2952_v52  ;;  %v3082_v12 = vsub.f32 %v2417_v21, %v2956_v13  ;;  %v3086_v14 = vsub.f32 %v2420_v22, %v2958_v62 }
  0xa4   : > { %5508 = vst [vmem:[#allocation149_spill] sm:$0xff] %v3022_v45  ;;  %5509 = vst [vmem:[#allocation150_spill] sm:$0xff] %v3026_v39  ;;  %v3090_v15 = vsub.f32 %v2424_v24, %v2950_v27  ;;  %v3094_v16 = vsub.f32 %v2427_v25, %v2952_v52  ;;  %v3098_v20 = vsub.f32 %v2430_v26, %v2956_v13 }
  0xa5   : > { %5510 = vst [vmem:[#allocation151_spill] sm:$0xff] %v3030_v36  ;;  %5511 = vst [vmem:[#allocation152_spill] sm:$0xff] %v3034_v47  ;;  %v3102_v21 = vsub.f32 %v2436_v30, %v2958_v62  ;;  %v3106_v22 = vsub.f32 %v2440_v32, %v2950_v27  ;;  %v3110_v24 = vsub.f32 %v2443_v33, %v2952_v52 }
  0xa6   : > { %5512 = vst [vmem:[#allocation153_spill] sm:$0xff] %v3038_v55  ;;  %5513 = vst [vmem:[#allocation154_spill] sm:$0xff] %v3042_v29  ;;  %v3114_v25 = vsub.f32 %v2446_v34, %v2956_v13  ;;  %v3118_v26 = vsub.f32 %v2452_v38, %v2958_v62  ;;  %v3122_v30 = vsub.f32 %v2456_v40, %v2950_v27 }
  0xa7   : > { %5514 = vst [vmem:[#allocation155_spill] sm:$0xff] %v3046_v0  ;;  %5515 = vst [vmem:[#allocation156_spill] sm:$0xff] %v3050_v1  ;;  %v3126_v32 = vsub.f32 %v2459_v41, %v2952_v52  ;;  %v3130_v33 = vsub.f32 %v2462_v42, %v2956_v13  ;;  %v3134_v34 = vsub.f32 %v2468_v46, %v2958_v62 }
  0xa8   : > { %5516 = vst [vmem:[#allocation157_spill] sm:$0xff] %v3054_v2  ;;  %5517 = vst [vmem:[#allocation158_spill] sm:$0xff] %v3058_v3  ;;  %v3138_v38 = vsub.f32 %v2472_v48, %v2950_v27  ;;  %v3142_v40 = vsub.f32 %v2475_v49, %v2952_v52  ;;  %v3146_v41 = vsub.f32 %v5539_v54, %v2956_v13 }
  0xa9   : > { %5518 = vst [vmem:[#allocation159_spill] sm:$0xff] %v3062_v4  ;;  %5519 = vst [vmem:[#allocation160_spill] sm:$0xff] %v3066_v5  ;;  %v3150_v42 = vsub.f32 %v5541_v56, %v2958_v62  ;;  %v3154_v46 = vsub.f32 %v5543_v57, %v2950_v27  ;;  %v3158_v48 = vsub.f32 %v5545_v59, %v2952_v52 }
  0xaa   : > { %5520 = vst [vmem:[#allocation161_spill] sm:$0xff] %v3070_v6  ;;  %5521 = vst [vmem:[#allocation162_spill] sm:$0xff] %v3074_v10  ;;  %v3162_v49 = vsub.f32 %v5547_v31, %v2956_v13  ;;  %v3166_v54 = vsub.f32 %v5549_v60, %v2958_v62  ;;  %v3170_v56 = vsub.f32 %v5551_v43, %v2950_v27 }
  0xab   : > { %5522 = vst [vmem:[#allocation163_spill] sm:$0xff] %v3078_v11  ;;  %5523 = vst [vmem:[#allocation164_spill] sm:$0xff] %v3082_v12  ;;  %v3174_v57 = vsub.f32 %v5553_v37, %v2952_v52  ;;  %v3178_v59 = vsub.f32 %v5555_v19, %v2956_v13  ;;  %v3182_v31 = vsub.f32 %v5557_v9, %v2958_v62 }
  0xac   : > { %5524 = vst [vmem:[#allocation165_spill] sm:$0xff] %v3086_v14  ;;  %5525 = vst [vmem:[#allocation166_spill] sm:$0xff] %v3090_v15  ;;  %v3186_v60 = vsub.f32 %v5559_v23, %v2950_v27  ;;  %v3190_v43 = vsub.f32 %v5561_v53, %v2952_v52  ;;  %v3194_v37 = vsub.f32 %v5563_v7, %v2956_v13 }
  0xad   : > { %5526 = vst [vmem:[#allocation167_spill] sm:$0xff] %v3094_v16  ;;  %5527 = vst [vmem:[#allocation168_spill] sm:$0xff] %v3098_v20  ;;  %v3198_v19 = vsub.f32 %v5565_v35, %v2958_v62  ;;  %v3202_v9 = vsub.f32 %v5567_v44, %v2950_v27  ;;  %v3206_v23 = vsub.f32 %v5569_v50, %v2952_v52 }
  0xae   : > { %5528 = vst [vmem:[#allocation169_spill] sm:$0xff] %v3102_v21  ;;  %5529 = vst [vmem:[#allocation170_spill] sm:$0xff] %v3106_v22  ;;  %v3210_v53 = vsub.f32 %v5571_v63, %v2956_v13 }
  0xaf   : > { %5530 = vst [vmem:[#allocation171_spill] sm:$0xff] %v3110_v24  ;;  %5531 = vst [vmem:[#allocation172_spill] sm:$0xff] %v3114_v25 }
  0xb0   : > { %5532 = vst [vmem:[#allocation173_spill] sm:$0xff] %v3118_v26  ;;  %5533 = vst [vmem:[#allocation174_spill] sm:$0xff] %v3122_v30 }
  0xb1   : > { %5534 = vst [vmem:[#allocation175_spill] sm:$0xff] %v3126_v32  ;;  %5535 = vst [vmem:[#allocation176_spill] sm:$0xff] %v3130_v33 }
  0xb2   : > { %5536 = vst [vmem:[#allocation177_spill] sm:$0xff] %v3134_v34  ;;  %5537 = vst [vmem:[#allocation178_spill] sm:$0xff] %v3138_v38 }
  0xb3   : > { %5538 = vst [vmem:[#allocation179_spill] sm:$0xff] %v3142_v40  ;;  %5540 = vst [vmem:[#allocation16_spill] sm:$0xff] %v3146_v41 }
  0xb4   : > { %5542 = vst [vmem:[#allocation17_spill] sm:$0xff] %v3150_v42  ;;  %5544 = vst [vmem:[#allocation18_spill] sm:$0xff] %v3154_v46 }
  0xb5   : > { %5546 = vst [vmem:[#allocation19_spill] sm:$0xff] %v3158_v48  ;;  %5548 = vst [vmem:[#allocation20_spill] sm:$0xff] %v3162_v49 }
  0xb6   : > { %5550 = vst [vmem:[#allocation21_spill] sm:$0xff] %v3166_v54  ;;  %5552 = vst [vmem:[#allocation22_spill] sm:$0xff] %v3170_v56 }
  0xb7   : > { %5554 = vst [vmem:[#allocation23_spill] sm:$0xff] %v3174_v57  ;;  %5556 = vst [vmem:[#allocation24_spill] sm:$0xff] %v3178_v59 }
  0xb8   : > { %5558 = vst [vmem:[#allocation25_spill] sm:$0xff] %v3182_v31  ;;  %5560 = vst [vmem:[#allocation26_spill] sm:$0xff] %v3186_v60 }
  0xb9   : > { %5562 = vst [vmem:[#allocation27_spill] sm:$0xff] %v3190_v43  ;;  %5564 = vst [vmem:[#allocation28_spill] sm:$0xff] %v3194_v37  ;;  %v5573_v43 = vld [vmem:[#allocation33_spill] sm:$0xff]  ;;  %v5575_v37 = vld [vmem:[#allocation34_spill] sm:$0xff] }
  0xba   : > { %5566 = vst [vmem:[#allocation29_spill] sm:$0xff] %v3198_v19  ;;  %5568 = vst [vmem:[#allocation30_spill] sm:$0xff] %v3202_v9  ;;  %v3214_v7 = vsub.f32 %v5573_v43, %v2958_v62  ;;  %v3218_v35 = vsub.f32 %v5575_v37, %v2950_v27  ;;  %v5577_v19 = vld [vmem:[#allocation35_spill] sm:$0xff]  ;;  %v5579_v9 = vld [vmem:[#allocation36_spill] sm:$0xff] }
  0xbb   : > { %5570 = vst [vmem:[#allocation31_spill] sm:$0xff] %v3206_v23  ;;  %5572 = vst [vmem:[#allocation32_spill] sm:$0xff] %v3210_v53  ;;  %v3222_v44 = vsub.f32 %v5577_v19, %v2952_v52  ;;  %v3226_v50 = vsub.f32 %v5579_v9, %v2956_v13  ;;  %v5581_v23 = vld [vmem:[#allocation37_spill] sm:$0xff]  ;;  %v5583_v53 = vld [vmem:[#allocation38_spill] sm:$0xff] }
  0xbc   : > { %5574 = vst [vmem:[#allocation33_spill] sm:$0xff] %v3214_v7  ;;  %5576 = vst [vmem:[#allocation34_spill] sm:$0xff] %v3218_v35  ;;  %v3230_v63 = vsub.f32 %v5581_v23, %v2958_v62  ;;  %v3234_v43 = vsub.f32 %v5583_v53, %v2950_v27  ;;  %v5585_v7 = vld [vmem:[#allocation39_spill] sm:$0xff]  ;;  %v5587_v35 = vld [vmem:[#allocation40_spill] sm:$0xff] }
  0xbd   : > { %5578 = vst [vmem:[#allocation35_spill] sm:$0xff] %v3222_v44  ;;  %5580 = vst [vmem:[#allocation36_spill] sm:$0xff] %v3226_v50  ;;  %v3238_v37 = vsub.f32 %v5585_v7, %v2952_v52  ;;  %v3242_v19 = vsub.f32 %v5587_v35, %v2956_v13  ;;  %v5589_v44 = vld [vmem:[#allocation41_spill] sm:$0xff]  ;;  %v5591_v50 = vld [vmem:[#allocation42_spill] sm:$0xff] }
  0xbe   : > { %5582 = vst [vmem:[#allocation37_spill] sm:$0xff] %v3230_v63  ;;  %5584 = vst [vmem:[#allocation38_spill] sm:$0xff] %v3234_v43  ;;  %v3246_v9 = vsub.f32 %v5589_v44, %v2958_v62  ;;  %v3250_v23 = vsub.f32 %v5591_v50, %v2950_v27  ;;  %v5593_v63 = vld [vmem:[#allocation43_spill] sm:$0xff]  ;;  %v5595_v43 = vld [vmem:[#allocation44_spill] sm:$0xff] }
  0xbf   : > { %5586 = vst [vmem:[#allocation39_spill] sm:$0xff] %v3238_v37  ;;  %5588 = vst [vmem:[#allocation40_spill] sm:$0xff] %v3242_v19  ;;  %v3254_v53 = vsub.f32 %v5593_v63, %v2952_v52  ;;  %v3258_v7 = vsub.f32 %v5595_v43, %v2956_v13  ;;  %v5597_v37 = vld [vmem:[#allocation45_spill] sm:$0xff]  ;;  %v5599_v19 = vld [vmem:[#allocation46_spill] sm:$0xff] }
  0xc0   : > { %5590 = vst [vmem:[#allocation41_spill] sm:$0xff] %v3246_v9  ;;  %5592 = vst [vmem:[#allocation42_spill] sm:$0xff] %v3250_v23  ;;  %v3262_v35 = vsub.f32 %v5597_v37, %v2958_v62  ;;  %v3266_v44 = vsub.f32 %v5599_v19, %v2950_v27  ;;  %v5601_v9 = vld [vmem:[#allocation47_spill] sm:$0xff]  ;;  %v5603_v23 = vld [vmem:[#allocation48_spill] sm:$0xff] }
  0xc1   : > { %5594 = vst [vmem:[#allocation43_spill] sm:$0xff] %v3254_v53  ;;  %5596 = vst [vmem:[#allocation44_spill] sm:$0xff] %v3258_v7  ;;  %v3270_v50 = vsub.f32 %v5601_v9, %v2952_v52  ;;  %v3274_v63 = vsub.f32 %v5603_v23, %v2956_v13  ;;  %v5605_v53 = vld [vmem:[#allocation49_spill] sm:$0xff]  ;;  %v5607_v7 = vld [vmem:[#allocation50_spill] sm:$0xff]  ;;  %v808_v23 = vmul.f32 1.442695, %v2994_v17 }
  0xc2   : > { %5598 = vst [vmem:[#allocation45_spill] sm:$0xff] %v3262_v35  ;;  %5600 = vst [vmem:[#allocation46_spill] sm:$0xff] %v3266_v44  ;;  %v3278_v43 = vsub.f32 %v5605_v53, %v2958_v62  ;;  %v3282_v37 = vsub.f32 %v5607_v7, %v2950_v27  ;;  %v5609_v35 = vld [vmem:[#allocation51_spill] sm:$0xff]  ;;  %v5611_v44 = vld [vmem:[#allocation52_spill] sm:$0xff] }
  0xc3   : > { %5602 = vst [vmem:[#allocation47_spill] sm:$0xff] %v3270_v50  ;;  %5604 = vst [vmem:[#allocation48_spill] sm:$0xff] %v3274_v63  ;;  %v3286_v19 = vsub.f32 %v5609_v35, %v2952_v52  ;;  %v3290_v9 = vsub.f32 %v5611_v44, %v2956_v13  ;;  %v806_v50 = vmul.f32 1.442695, %v2990_v51  ;;  %v810_v63 = vmul.f32 1.442695, %v3002_v8 }
  0xc4   : > { %5606 = vst [vmem:[#allocation49_spill] sm:$0xff] %v3278_v43  ;;  %5608 = vst [vmem:[#allocation50_spill] sm:$0xff] %v3282_v37  ;;  %v5613_v53 = vld [vmem:[#allocation53_spill] sm:$0xff]  ;;  %v5615_v7 = vld [vmem:[#allocation54_spill] sm:$0xff]  ;;  %v812_v44 = vmul.f32 1.442695, %v3006_v28 }
  0xc5   : > { %5610 = vst [vmem:[#allocation51_spill] sm:$0xff] %v3286_v19  ;;  %5612 = vst [vmem:[#allocation52_spill] sm:$0xff] %v3290_v9  ;;  %v3297_v43 = vsub.f32 %v5613_v53, %v2958_v62  ;;  %v3301_v37 = vsub.f32 %v5615_v7, %v2950_v27  ;;  %v5617_v35 = vld [vmem:[#allocation55_spill] sm:$0xff]  ;;  %v5619_v51 = vld [vmem:[#allocation56_spill] sm:$0xff]  ;;  %1771 = vpow2.f32 %v806_v50  ;;  %v814_v53 = vmul.f32 1.442695, %v3010_v18 }
  0xc6   : > { %v3305_v19 = vsub.f32 %v5617_v35, %v2952_v52  ;;  %v3310_v9 = vsub.f32 %v5619_v51, %v2956_v13  ;;  %v5621_v8 = vld [vmem:[#allocation57_spill] sm:$0xff]  ;;  %v5623_v7 = vld [vmem:[#allocation58_spill] sm:$0xff]  ;;  %v5625_v35 = vld [vmem:[#allocation59_spill] sm:$0xff]  ;;  %1773 = vpow2.f32 %v808_v23  ;;  %v816_v28 = vmul.f32 1.442695, %v3014_v61 }
  0xc7   : > { %5614 = vst [vmem:[#allocation53_spill] sm:$0xff] %v3297_v43  ;;  %5616 = vst [vmem:[#allocation54_spill] sm:$0xff] %v3301_v37  ;;  %v3314_v17 = vsub.f32 %v5621_v8, %v2958_v62  ;;  %v3319_v37 = vsub.f32 %v5623_v7, %v2950_v27  ;;  %v5627_v51 = vld [vmem:[#allocation60_spill] sm:$0xff]  ;;  %v5629_v8 = vld [vmem:[#allocation61_spill] sm:$0xff]  ;;  %1775 = vpow2.f32 %v810_v63  ;;  %v818_v18 = vmul.f32 1.442695, %v3018_v58 }
  0xc8   : > { %5618 = vst [vmem:[#allocation55_spill] sm:$0xff] %v3305_v19  ;;  %5620 = vst [vmem:[#allocation56_spill] sm:$0xff] %v3310_v9  ;;  %v3323_v19 = vsub.f32 %v5625_v35, %v2952_v52  ;;  %v3328_v9 = vsub.f32 %v5627_v51, %v2956_v13  ;;  %v3332_v50 = vsub.f32 %v5629_v8, %v2958_v62  ;;  %v5631_v7 = vld [vmem:[#allocation62_spill] sm:$0xff]  ;;  %v5633_v35 = vld [vmem:[#allocation63_spill] sm:$0xff]  ;;  %1777 = vpow2.f32 %v812_v44 }
  0xc9   : > { %5622 = vst [vmem:[#allocation57_spill] sm:$0xff] %v3314_v17  ;;  %5624 = vst [vmem:[#allocation58_spill] sm:$0xff] %v3319_v37  ;;  %v3337_v37 = vsub.f32 %v5631_v7, %v2950_v27  ;;  %v3341_v23 = vsub.f32 %v5633_v35, %v2952_v52  ;;  %v820_v61 = vmul.f32 1.442695, %v3022_v45  ;;  %v5635_v51 = vld [vmem:[#allocation64_spill] sm:$0xff]  ;;  %v5637_v8 = vld [vmem:[#allocation65_spill] sm:$0xff]  ;;  %1779 = vpow2.f32 %v814_v53 }
  0xca   : > { %5626 = vst [vmem:[#allocation59_spill] sm:$0xff] %v3323_v19  ;;  %5628 = vst [vmem:[#allocation60_spill] sm:$0xff] %v3328_v9  ;;  %v3346_v9 = vsub.f32 %v5635_v51, %v2956_v13  ;;  %v3350_v63 = vsub.f32 %v5637_v8, %v2958_v62  ;;  %v822_v58 = vmul.f32 1.442695, %v3026_v39  ;;  %v5639_v7 = vld [vmem:[#allocation66_spill] sm:$0xff]  ;;  %v5641_v35 = vld [vmem:[#allocation67_spill] sm:$0xff]  ;;  %1781 = vpow2.f32 %v816_v28 }
  0xcb   : > { %5630 = vst [vmem:[#allocation61_spill] sm:$0xff] %v3332_v50  ;;  %5632 = vst [vmem:[#allocation62_spill] sm:$0xff] %v3337_v37  ;;  %v3355_v37 = vsub.f32 %v5639_v7, %v2950_v27  ;;  %v3359_v44 = vsub.f32 %v5641_v35, %v2952_v52  ;;  %v824_v45 = vmul.f32 1.442695, %v3030_v36  ;;  %v5643_v51 = vld [vmem:[#allocation68_spill] sm:$0xff]  ;;  %v5645_v8 = vld [vmem:[#allocation69_spill] sm:$0xff]  ;;  %1783 = vpow2.f32 %v818_v18 }
  0xcc   : > { %5634 = vst [vmem:[#allocation63_spill] sm:$0xff] %v3341_v23  ;;  %5636 = vst [vmem:[#allocation64_spill] sm:$0xff] %v3346_v9  ;;  %v3364_v9 = vsub.f32 %v5643_v51, %v2956_v13  ;;  %v3368_v53 = vsub.f32 %v5645_v8, %v2958_v62  ;;  %v826_v39 = vmul.f32 1.442695, %v3034_v47  ;;  %v5647_v7 = vld [vmem:[#allocation70_spill] sm:$0xff]  ;;  %v5649_v35 = vld [vmem:[#allocation71_spill] sm:$0xff]  ;;  %1785 = vpow2.f32 %v820_v61 }
  0xcd   : > { %5638 = vst [vmem:[#allocation65_spill] sm:$0xff] %v3350_v63  ;;  %5640 = vst [vmem:[#allocation66_spill] sm:$0xff] %v3355_v37  ;;  %v3373_v37 = vsub.f32 %v5647_v7, %v2950_v27  ;;  %v3377_v28 = vsub.f32 %v5649_v35, %v2952_v52  ;;  %v828_v36 = vmul.f32 1.442695, %v3038_v55  ;;  %v5651_v51 = vld [vmem:[#allocation72_spill] sm:$0xff]  ;;  %v5653_v8 = vld [vmem:[#allocation73_spill] sm:$0xff]  ;;  %1787 = vpow2.f32 %v822_v58 }
  0xce   : > { %5642 = vst [vmem:[#allocation67_spill] sm:$0xff] %v3359_v44  ;;  %5644 = vst [vmem:[#allocation68_spill] sm:$0xff] %v3364_v9  ;;  %v3382_v9 = vsub.f32 %v5651_v51, %v2956_v13  ;;  %v3386_v18 = vsub.f32 %v5653_v8, %v2958_v62  ;;  %v830_v47 = vmul.f32 1.442695, %v3042_v29  ;;  %v5655_v7 = vld [vmem:[#allocation74_spill] sm:$0xff]  ;;  %v5657_v35 = vld [vmem:[#allocation75_spill] sm:$0xff]  ;;  %1789 = vpow2.f32 %v824_v45 }
  0xcf   : > { %5646 = vst [vmem:[#allocation69_spill] sm:$0xff] %v3368_v53  ;;  %5648 = vst [vmem:[#allocation70_spill] sm:$0xff] %v3373_v37  ;;  %v3391_v37 = vsub.f32 %v5655_v7, %v2950_v27  ;;  %v3395_v61 = vsub.f32 %v5657_v35, %v2952_v52  ;;  %v832_v55 = vmul.f32 1.442695, %v3046_v0  ;;  %v5659_v51 = vld [vmem:[#allocation76_spill] sm:$0xff]  ;;  %v5661_v8 = vld [vmem:[#allocation77_spill] sm:$0xff]  ;;  %1791 = vpow2.f32 %v826_v39 }
  0xd0   : > { %5650 = vst [vmem:[#allocation71_spill] sm:$0xff] %v3377_v28  ;;  %5652 = vst [vmem:[#allocation72_spill] sm:$0xff] %v3382_v9  ;;  %v3400_v9 = vsub.f32 %v5659_v51, %v2956_v13  ;;  %v3404_v58 = vsub.f32 %v5661_v8, %v2958_v62  ;;  %v834_v29 = vmul.f32 1.442695, %v3050_v1  ;;  %v5663_v7 = vld [vmem:[#allocation78_spill] sm:$0xff]  ;;  %v5665_v35 = vld [vmem:[#allocation79_spill] sm:$0xff]  ;;  %1793 = vpow2.f32 %v828_v36 }
  0xd1   : > { %5654 = vst [vmem:[#allocation73_spill] sm:$0xff] %v3386_v18  ;;  %5656 = vst [vmem:[#allocation74_spill] sm:$0xff] %v3391_v37  ;;  %v3409_v37 = vsub.f32 %v5663_v7, %v2950_v27  ;;  %v3413_v45 = vsub.f32 %v5665_v35, %v2952_v52  ;;  %v836_v0 = vmul.f32 1.442695, %v3054_v2  ;;  %v5667_v51 = vld [vmem:[#allocation80_spill] sm:$0xff]  ;;  %v5669_v8 = vld [vmem:[#allocation81_spill] sm:$0xff]  ;;  %1795 = vpow2.f32 %v830_v47 }
  0xd2   : > { %5658 = vst [vmem:[#allocation75_spill] sm:$0xff] %v3395_v61  ;;  %5660 = vst [vmem:[#allocation76_spill] sm:$0xff] %v3400_v9  ;;  %v3418_v9 = vsub.f32 %v5667_v51, %v2956_v13  ;;  %v3422_v39 = vsub.f32 %v5669_v8, %v2958_v62  ;;  %v838_v1 = vmul.f32 1.442695, %v3058_v3  ;;  %v3425_v7 = vpop.eup %1771  ;;  %v5673_v36 = vld [vmem:[#allocation83_spill] sm:$0xff]  ;;  %1797 = vpow2.f32 %v832_v55  ;;  %v5675_v8 = vld [vmem:[#allocation84_spill] sm:$0xff] }
  0xd3   : > { %5662 = vst [vmem:[#allocation77_spill] sm:$0xff] %v3404_v58  ;;  %5664 = vst [vmem:[#allocation78_spill] sm:$0xff] %v3409_v37  ;;  %v5671_v37 = vld [vmem:[#allocation82_spill] sm:$0xff]  ;;  %v3433_v2 = vsub.f32 %v5673_v36, %v2952_v52  ;;  %v840_v51 = vmul.f32 1.442695, %v3062_v4  ;;  %v3440_v47 = vsub.f32 %v5675_v8, %v2956_v13  ;;  %v5677_v3 = vld [vmem:[#allocation85_spill] sm:$0xff]  ;;  %1799 = vpow2.f32 %v834_v29 }
  0xd4   : > { %5666 = vst [vmem:[#allocation79_spill] sm:$0xff] %v3413_v45  ;;  %5668 = vst [vmem:[#allocation80_spill] sm:$0xff] %v3418_v9  ;;  %v3429_v35 = vsub.f32 %v5671_v37, %v2950_v27  ;;  %v3436_v9 = vpop.eup %1773  ;;  %v842_v37 = vmul.f32 1.442695, %v3066_v5  ;;  %v5679_v36 = vld [vmem:[#allocation86_spill] sm:$0xff]  ;;  %v5681_v4 = vld [vmem:[#allocation87_spill] sm:$0xff]  ;;  %1801 = vpow2.f32 %v836_v0 }
  0xd5   : > { %5670 = vst [vmem:[#allocation81_spill] sm:$0xff] %v3422_v39  ;;  %5674 = vst [vmem:[#allocation83_spill] sm:$0xff] %v3433_v2  ;;  %v3444_v39 = vsub.f32 %v5677_v3, %v2958_v62  ;;  %v3451_v55 = vsub.f32 %v5679_v36, %v2950_v27  ;;  %v3455_v2 = vsub.f32 %v5681_v4, %v2952_v52  ;;  %v844_v8 = vmul.f32 1.442695, %v3070_v6  ;;  %v5683_v3 = vld [vmem:[#allocation88_spill] sm:$0xff]  ;;  %v5685_v5 = vld [vmem:[#allocation89_spill] sm:$0xff] }
  0xd6   : > { %5672 = vst [vmem:[#allocation82_spill] sm:$0xff] %v3429_v35  ;;  %5676 = vst [vmem:[#allocation84_spill] sm:$0xff] %v3440_v47  ;;  %v3447_v35 = vpop.eup %1775  ;;  %v3462_v29 = vsub.f32 %v5683_v3, %v2956_v13  ;;  %1803 = vpow2.f32 %v838_v1  ;;  %v846_v36 = vmul.f32 1.442695, %v3074_v10  ;;  %v5687_v4 = vld [vmem:[#allocation90_spill] sm:$0xff]  ;;  %v5689_v6 = vld [vmem:[#allocation91_spill] sm:$0xff] }
  0xd7   : > { %5678 = vst [vmem:[#allocation85_spill] sm:$0xff] %v3444_v39  ;;  %5680 = vst [vmem:[#allocation86_spill] sm:$0xff] %v3451_v55  ;;  %v3458_v47 = vpop.eup %1777  ;;  %v3466_v39 = vsub.f32 %v5685_v5, %v2958_v62  ;;  %v3473_v0 = vsub.f32 %v5687_v4, %v2950_v27  ;;  %1805 = vpow2.f32 %v840_v51  ;;  %v848_v3 = vmul.f32 1.442695, %v3078_v11  ;;  %v5691_v5 = vld [vmem:[#allocation92_spill] sm:$0xff]  ;;  %v5693_v10 = vld [vmem:[#allocation93_spill] sm:$0xff] }
  0xd8   : > { %5682 = vst [vmem:[#allocation87_spill] sm:$0xff] %v3455_v2  ;;  %5684 = vst [vmem:[#allocation88_spill] sm:$0xff] %v3462_v29  ;;  %v3469_v55 = vpop.eup %1779  ;;  %v3477_v2 = vsub.f32 %v5689_v6, %v2952_v52  ;;  %v3484_v1 = vsub.f32 %v5691_v5, %v2956_v13  ;;  %1807 = vpow2.f32 %v842_v37  ;;  %v850_v4 = vmul.f32 1.442695, %v3082_v12  ;;  %v5695_v6 = vld [vmem:[#allocation94_spill] sm:$0xff]  ;;  %v5697_v11 = vld [vmem:[#allocation95_spill] sm:$0xff] }
  0xd9   : > { %5686 = vst [vmem:[#allocation89_spill] sm:$0xff] %v3466_v39  ;;  %5688 = vst [vmem:[#allocation90_spill] sm:$0xff] %v3473_v0  ;;  %v3480_v29 = vpop.eup %1781  ;;  %v3488_v39 = vsub.f32 %v5693_v10, %v2958_v62  ;;  %v3495_v51 = vsub.f32 %v5695_v6, %v2950_v27  ;;  %1809 = vpow2.f32 %v844_v8  ;;  %v852_v5 = vmul.f32 1.442695, %v3086_v14  ;;  %v5699_v10 = vld [vmem:[#allocation96_spill] sm:$0xff]  ;;  %v5701_v12 = vld [vmem:[#allocation97_spill] sm:$0xff] }
  0xda   : > { %5690 = vst [vmem:[#allocation91_spill] sm:$0xff] %v3477_v2  ;;  %5692 = vst [vmem:[#allocation92_spill] sm:$0xff] %v3484_v1  ;;  %v3491_v0 = vpop.eup %1783  ;;  %v3499_v2 = vsub.f32 %v5697_v11, %v2952_v52  ;;  %v3506_v37 = vsub.f32 %v5699_v10, %v2956_v13  ;;  %1811 = vpow2.f32 %v846_v36  ;;  %v854_v6 = vmul.f32 1.442695, %v3090_v15  ;;  %v5703_v11 = vld [vmem:[#allocation98_spill] sm:$0xff]  ;;  %v5705_v14 = vld [vmem:[#allocation99_spill] sm:$0xff] }
  0xdb   : > { %5694 = vst [vmem:[#allocation93_spill] sm:$0xff] %v3488_v39  ;;  %5696 = vst [vmem:[#allocation94_spill] sm:$0xff] %v3495_v51  ;;  %v3502_v1 = vpop.eup %1785  ;;  %v3510_v39 = vsub.f32 %v5701_v12, %v2958_v62  ;;  %v3517_v8 = vsub.f32 %v5703_v11, %v2950_v27  ;;  %1813 = vpow2.f32 %v848_v3  ;;  %v856_v10 = vmul.f32 1.442695, %v3094_v16  ;;  %v5707_v12 = vld [vmem:[#allocation100_spill] sm:$0xff]  ;;  %v5709_v15 = vld [vmem:[#allocation101_spill] sm:$0xff] }
  0xdc   : > { %5698 = vst [vmem:[#allocation95_spill] sm:$0xff] %v3499_v2  ;;  %5700 = vst [vmem:[#allocation96_spill] sm:$0xff] %v3506_v37  ;;  %v3513_v51 = vpop.eup %1787  ;;  %v3521_v2 = vsub.f32 %v5705_v14, %v2952_v52  ;;  %v3528_v36 = vsub.f32 %v5707_v12, %v2956_v13  ;;  %1815 = vpow2.f32 %v850_v4  ;;  %v858_v11 = vmul.f32 1.442695, %v3098_v20  ;;  %v5711_v14 = vld [vmem:[#allocation102_spill] sm:$0xff]  ;;  %v5713_v16 = vld [vmem:[#allocation103_spill] sm:$0xff] }
  0xdd   : > { %5702 = vst [vmem:[#allocation97_spill] sm:$0xff] %v3510_v39  ;;  %5704 = vst [vmem:[#allocation98_spill] sm:$0xff] %v3517_v8  ;;  %v3524_v37 = vpop.eup %1789  ;;  %v3532_v39 = vsub.f32 %v5709_v15, %v2958_v62  ;;  %v3539_v3 = vsub.f32 %v5711_v14, %v2950_v27  ;;  %1817 = vpow2.f32 %v852_v5  ;;  %v860_v12 = vmul.f32 1.442695, %v3102_v21  ;;  %v5715_v15 = vld [vmem:[#allocation104_spill] sm:$0xff]  ;;  %v5717_v20 = vld [vmem:[#allocation105_spill] sm:$0xff] }
  0xde   : > { %5706 = vst [vmem:[#allocation99_spill] sm:$0xff] %v3521_v2  ;;  %5708 = vst [vmem:[#allocation100_spill] sm:$0xff] %v3528_v36  ;;  %v3535_v8 = vpop.eup %1791  ;;  %v3543_v2 = vsub.f32 %v5713_v16, %v2952_v52  ;;  %v3550_v4 = vsub.f32 %v5715_v15, %v2956_v13  ;;  %1819 = vpow2.f32 %v854_v6  ;;  %v862_v27 = vmul.f32 1.442695, %v3106_v22  ;;  %v5722_v22 = vld [vmem:[#allocation30_spill] sm:$0xff]  ;;  %v5729_v58 = vld [vmem:[#allocation36_spill] sm:$0xff] }
  0xdf   : > { %5710 = vst [vmem:[#allocation101_spill] sm:$0xff] %v3532_v39  ;;  %5712 = vst [vmem:[#allocation102_spill] sm:$0xff] %v3539_v3  ;;  %v3546_v36 = vpop.eup %1793  ;;  %v3554_v39 = vsub.f32 %v5717_v20, %v2958_v62  ;;  %1821 = vpow2.f32 %v856_v10  ;;  %v864_v52 = vmul.f32 1.442695, %v3110_v24  ;;  %v866_v16 = vmul.f32 1.442695, %v3114_v25 }
  0xe0   : > { %5714 = vst [vmem:[#allocation103_spill] sm:$0xff] %v3543_v2  ;;  %5716 = vst [vmem:[#allocation104_spill] sm:$0xff] %v3550_v4  ;;  %v3557_v14 = vpop.eup %1795  ;;  %v868_v5 = vmul.f32 1.442695, %v3118_v26  ;;  %1823 = vpow2.f32 %v858_v11  ;;  %v870_v13 = vmul.f32 1.442695, %v3122_v30 }
  0xe1   : > { %5718 = vst [vmem:[#allocation105_spill] sm:$0xff] %v3554_v39  ;;  %v3562_v21 = vpop.eup %1797  ;;  %v872_v62 = vmul.f32 1.442695, %v3126_v32  ;;  %v874_v20 = vmul.f32 1.442695, %v3130_v33  ;;  %1825 = vpow2.f32 %v860_v12  ;;  %v5725_v2 = vld [vmem:[#allocation33_spill] sm:$0xff] }
  0xe2   : > { %v3567_v6 = vpop.eup %1799  ;;  %v876_v10 = vmul.f32 1.442695, %v3134_v34  ;;  %v878_v15 = vmul.f32 1.442695, %v3138_v38  ;;  %v880_v25 = vmul.f32 1.442695, %v3142_v40  ;;  %1827 = vpow2.f32 %v862_v27 }
  0xe3   : > { %v3572_v24 = vpop.eup %1801  ;;  %v882_v11 = vmul.f32 1.442695, %v3146_v41  ;;  %v884_v30 = vmul.f32 1.442695, %v3150_v42  ;;  %v886_v32 = vmul.f32 1.442695, %v3154_v46  ;;  %1829 = vpow2.f32 %v864_v52 }
  0xe4   : > { %v3577_v26 = vpop.eup %1803  ;;  %v888_v12 = vmul.f32 1.442695, %v3158_v48  ;;  %v890_v34 = vmul.f32 1.442695, %v3162_v49  ;;  %v3582_v38 = vmul.f32 1.442695, %v3166_v54  ;;  %1831 = vpow2.f32 %v866_v16 }
  0xe5   : > { %v3584_v40 = vpop.eup %1805  ;;  %v3587_v27 = vmul.f32 1.442695, %v3170_v56  ;;  %v3590_v42 = vmul.f32 1.442695, %v3174_v57  ;;  %v3593_v46 = vmul.f32 1.442695, %v3178_v59  ;;  %1833 = vpow2.f32 %v868_v5 }
  0xe6   : > { %v3595_v52 = vpop.eup %1807  ;;  %v3598_v49 = vmul.f32 1.442695, %v3182_v31  ;;  %v3601_v54 = vmul.f32 1.442695, %v3186_v60  ;;  %v5719_v48 = vld [vmem:[#allocation27_spill] sm:$0xff]  ;;  %1835 = vpow2.f32 %v870_v13  ;;  %v5720_v57 = vld [vmem:[#allocation28_spill] sm:$0xff] }
  0xe7   : > { %v3604_v16 = vmul.f32 1.442695, %v5719_v48  ;;  %v3606_v56 = vpop.eup %1809  ;;  %v3609_v41 = vmul.f32 1.442695, %v5720_v57  ;;  %v5721_v59 = vld [vmem:[#allocation29_spill] sm:$0xff]  ;;  %1837 = vpow2.f32 %v872_v62  ;;  %v5723_v60 = vld [vmem:[#allocation31_spill] sm:$0xff] }
  0xe8   : > { %v3612_v33 = vmul.f32 1.442695, %v5721_v59  ;;  %v3615_v5 = vmul.f32 1.442695, %v5722_v22  ;;  %v3617_v31 = vpop.eup %1811  ;;  %v3620_v39 = vmul.f32 1.442695, %v5723_v60  ;;  %1839 = vpow2.f32 %v874_v20 }
  0xe9   : > { %v5724_v48 = vld [vmem:[#allocation32_spill] sm:$0xff]  ;;  %v3626_v13 = vmul.f32 1.442695, %v5725_v2  ;;  %v3628_v57 = vpop.eup %1813  ;;  %v5726_v59 = vld [vmem:[#allocation34_spill] sm:$0xff]  ;;  %v5727_v22 = vld [vmem:[#allocation35_spill] sm:$0xff]  ;;  %1841 = vpow2.f32 %v876_v10 }
  0xea   : > { %v3623_v4 = vmul.f32 1.442695, %v5724_v48  ;;  %v3631_v3 = vmul.f32 1.442695, %v5726_v59  ;;  %v3634_v45 = vmul.f32 1.442695, %v5727_v22  ;;  %v3639_v60 = vpop.eup %1815  ;;  %1843 = vpow2.f32 %v878_v15 }
  0xeb   : > { %v3637_v62 = vmul.f32 1.442695, %v5729_v58  ;;  %v5731_v48 = vld [vmem:[#allocation37_spill] sm:$0xff]  ;;  %v5733_v2 = vld [vmem:[#allocation38_spill] sm:$0xff]  ;;  %v5735_v28 = vld [vmem:[#allocation39_spill] sm:$0xff]  ;;  %v3650_v59 = vpop.eup %1817  ;;  %1845 = vpow2.f32 %v880_v25 }
  0xec   : > { %5728 = vst [vmem:[#allocation180_spill] sm:$0xff] %v3634_v45  ;;  %v3642_v61 = vmul.f32 1.442695, %v5731_v48  ;;  %v3645_v18 = vmul.f32 1.442695, %v5733_v2  ;;  %v5737_v22 = vld [vmem:[#allocation40_spill] sm:$0xff]  ;;  %v3661_v48 = vpop.eup %1819  ;;  %1847 = vpow2.f32 %v882_v11 }
  0xed   : > { %5730 = vst [vmem:[#allocation181_spill] sm:$0xff] %v3637_v62  ;;  %v3648_v20 = vmul.f32 1.442695, %v5735_v28  ;;  %v3653_v45 = vmul.f32 1.442695, %v5737_v22  ;;  %v5739_v58 = vld [vmem:[#allocation41_spill] sm:$0xff]  ;;  %v3672_v22 = vpop.eup %1821  ;;  %1849 = vpow2.f32 %v884_v30  ;;  %v1062_v30 = vadd.f32 %v3469_v55, %v3425_v7 }
  0xee   : > { %5732 = vst [vmem:[#allocation182_spill] sm:$0xff] %v3642_v61  ;;  %5734 = vst [vmem:[#allocation183_spill] sm:$0xff] %v3645_v18  ;;  %v3656_v62 = vmul.f32 1.442695, %v5739_v58  ;;  %v5741_v53 = vld [vmem:[#allocation42_spill] sm:$0xff]  ;;  %v5743_v2 = vld [vmem:[#allocation43_spill] sm:$0xff]  ;;  %1851 = vpow2.f32 %v886_v32  ;;  %v1173_v32 = vadd.f32 %v3502_v1, %v3458_v47 }
  0xef   : > { %5736 = vst [vmem:[#allocation184_spill] sm:$0xff] %v3648_v20  ;;  %5738 = vst [vmem:[#allocation185_spill] sm:$0xff] %v3653_v45  ;;  %v3659_v10 = vmul.f32 1.442695, %v5741_v53  ;;  %v3664_v18 = vmul.f32 1.442695, %v5743_v2  ;;  %v3683_v2 = vpop.eup %1823  ;;  %1853 = vpow2.f32 %v888_v12  ;;  %v1063_v7 = vadd.f32 %v3513_v51, %v1062_v30 }
  0xf0   : > { %5740 = vst [vmem:[#allocation186_spill] sm:$0xff] %v3656_v62  ;;  %v5745_v28 = vld [vmem:[#allocation44_spill] sm:$0xff]  ;;  %v5747_v61 = vld [vmem:[#allocation45_spill] sm:$0xff]  ;;  %v5749_v58 = vld [vmem:[#allocation46_spill] sm:$0xff]  ;;  %1855 = vpow2.f32 %v890_v34  ;;  %v3724_v1 = vmul.f32 1.442695, %v3314_v17 }
  0xf1   : > { %5742 = vst [vmem:[#allocation187_spill] sm:$0xff] %v3659_v10  ;;  %5744 = vst [vmem:[#allocation188_spill] sm:$0xff] %v3664_v18  ;;  %v3667_v20 = vmul.f32 1.442695, %v5745_v28  ;;  %v3670_v15 = vmul.f32 1.442695, %v5747_v61  ;;  %v1064_v51 = vadd.f32 %v3557_v14, %v1063_v7 }
  0xf2   : > { %v3675_v62 = vmul.f32 1.442695, %v5749_v58  ;;  %v5751_v53 = vld [vmem:[#allocation47_spill] sm:$0xff]  ;;  %v5752_v45 = vld [vmem:[#allocation48_spill] sm:$0xff]  ;;  %v5754_v28 = vld [vmem:[#allocation49_spill] sm:$0xff]  ;;  %v1826_v58 = vpop.eup %1825  ;;  %1857 = vpow2.f32 %v3582_v38 }
  0xf3   : > { %5746 = vst [vmem:[#allocation189_spill] sm:$0xff] %v3667_v20  ;;  %5748 = vst [vmem:[#allocation190_spill] sm:$0xff] %v3670_v15  ;;  %v3678_v10 = vmul.f32 1.442695, %v5751_v53  ;;  %v3681_v25 = vmul.f32 1.442695, %v5752_v45  ;;  %v1065_v14 = vadd.f32 %v3577_v26, %v1064_v51 }
  0xf4   : > { %5750 = vst [vmem:[#allocation191_spill] sm:$0xff] %v3675_v62  ;;  %v3686_v20 = vmul.f32 1.442695, %v5754_v28  ;;  %v5755_v61 = vld [vmem:[#allocation50_spill] sm:$0xff]  ;;  %v5756_v18 = vld [vmem:[#allocation51_spill] sm:$0xff]  ;;  %v5757_v62 = vld [vmem:[#allocation52_spill] sm:$0xff] }
  0xf5   : > { %5753 = vst [vmem:[#allocation192_spill] sm:$0xff] %v3681_v25  ;;  %v3689_v15 = vmul.f32 1.442695, %v5755_v61  ;;  %v3692_v11 = vmul.f32 1.442695, %v5756_v18  ;;  %v1828_v25 = vpop.eup %1827  ;;  %v1099_v61 = vadd.f32 %v3480_v29, %v3436_v9  ;;  %v1136_v18 = vadd.f32 %v3491_v0, %v3447_v35  ;;  %v5762_v34 = vld [vmem:[#allocation56_spill] sm:$0xff] }
  0xf6   : > { %v3695_v53 = vmul.f32 1.442695, %v5757_v62  ;;  %v3698_v45 = vmul.f32 1.442695, %v3297_v43  ;;  %v1830_v28 = vpop.eup %1829  ;;  %v5760_v62 = vld [vmem:[#allocation54_spill] sm:$0xff]  ;;  %v5761_v43 = vld [vmem:[#allocation55_spill] sm:$0xff]  ;;  %v1174_v29 = vadd.f32 %v3546_v36, %v1173_v32  ;;  %1859 = vpow2.f32 %v3587_v27 }
  0xf7   : > { %v1832_v55 = vpop.eup %1831  ;;  %v1100_v9 = vadd.f32 %v3524_v37, %v1099_v61  ;;  %v1137_v35 = vadd.f32 %v3535_v8, %v1136_v18  ;;  %v3721_v0 = vmul.f32 1.442695, %v5762_v34  ;;  %1861 = vpow2.f32 %v3590_v42  ;;  %v5763_v8 = vld [vmem:[#allocation58_spill] sm:$0xff] }
  0xf8   : > { %5758 = vst [vmem:[#allocation193_spill] sm:$0xff] %v3695_v53  ;;  %5759 = vst [vmem:[#allocation194_spill] sm:$0xff] %v3698_v45  ;;  %v3709_v53 = vmul.f32 1.442695, %v5760_v62  ;;  %v3712_v45 = vmul.f32 1.442695, %v5761_v43  ;;  %v1834_v47 = vpop.eup %1833  ;;  %v1175_v61 = vadd.f32 %v3572_v24, %v1174_v29  ;;  %1863 = vpow2.f32 %v3593_v46 }
  0xf9   : > { %v1836_v12 = vpop.eup %1835  ;;  %v1101_v38 = vadd.f32 %v3562_v21, %v1100_v9  ;;  %v1138_v18 = vadd.f32 %v3567_v6, %v1137_v35  ;;  %v3733_v36 = vmul.f32 1.442695, %v5763_v8  ;;  %v3736_v27 = vmul.f32 1.442695, %v3323_v19  ;;  %v5764_v46 = vld [vmem:[#allocation60_spill] sm:$0xff] }
  0xfa   : > { %v1838_v37 = vpop.eup %1837  ;;  %1865 = vpow2.f32 %v3598_v49  ;;  %v1176_v24 = vadd.f32 %v3606_v56, %v1175_v61  ;;  %v3745_v32 = vmul.f32 1.442695, %v5764_v46  ;;  %v3748_v7 = vmul.f32 1.442695, %v3332_v50 }
  0xfb   : > { %v1840_v30 = vpop.eup %1839  ;;  %v1102_v21 = vadd.f32 %v3584_v40, %v1101_v38  ;;  %v1139_v42 = vadd.f32 %v3595_v52, %v1138_v18  ;;  %1867 = vpow2.f32 %v3601_v54  ;;  %v1066_v26 = vadd.f32 %v3617_v31, %v1065_v14  ;;  %v5765_v54 = vld [vmem:[#allocation62_spill] sm:$0xff] }
  0xfc   : > { %v1842_v6 = vpop.eup %1841  ;;  %1869 = vpow2.f32 %v3604_v16  ;;  %v1177_v56 = vadd.f32 %v3650_v59, %v1176_v24  ;;  %v3757_v35 = vmul.f32 1.442695, %v5765_v54  ;;  %v3760_v29 = vmul.f32 1.442695, %v3341_v23 }
  0xfd   : > { %v1844_v9 = vpop.eup %1843  ;;  %v1103_v40 = vadd.f32 %v3628_v57, %v1102_v21  ;;  %v1140_v49 = vadd.f32 %v3639_v60, %v1139_v42  ;;  %1871 = vpow2.f32 %v3609_v41  ;;  %v1067_v31 = vadd.f32 %v3661_v48, %v1066_v26  ;;  %v5766_v41 = vld [vmem:[#allocation64_spill] sm:$0xff] }
  0xfe   : > { %v1846_v52 = vpop.eup %1845  ;;  %1873 = vpow2.f32 %v3612_v33  ;;  %v1178_v16 = vadd.f32 %v1826_v58, %v1177_v56  ;;  %v3768_v38 = vmul.f32 1.442695, %v5766_v41  ;;  %v3771_v18 = vmul.f32 1.442695, %v3350_v63  ;;  %v5803_v41 = vld [vmem:[#allocation86_spill] sm:$0xff] }
  0xff   : > { %v1848_v51 = vpop.eup %1847  ;;  %v1104_v57 = vadd.f32 %v3672_v22, %v1103_v40  ;;  %v1141_v60 = vadd.f32 %v3683_v2, %v1140_v49  ;;  %1875 = vpow2.f32 %v3615_v5  ;;  %v1068_v61 = vadd.f32 %v1828_v25, %v1067_v31  ;;  %v5767_v2 = vld [vmem:[#allocation66_spill] sm:$0xff]  ;;  %v5770_v31 = vld [vmem:[#allocation180_spill] sm:$0xff] }
 0x100   : > { %v1850_v59 = vpop.eup %1849  ;;  %1877 = vpow2.f32 %v3620_v39  ;;  %v1179_v21 = vadd.f32 %v1834_v47, %v1178_v16  ;;  %v3776_v58 = vmul.f32 1.442695, %v5767_v2  ;;  %v3779_v5 = vmul.f32 1.442695, %v3359_v44  ;;  %v5794_v44 = vld [vmem:[#allocation138_spill] sm:$0xff] }
 0x101   : > { %v1852_v14 = vpop.eup %1851  ;;  %v1105_v48 = vadd.f32 %v1830_v28, %v1104_v57  ;;  %v1142_v33 = vadd.f32 %v1832_v55, %v1141_v60  ;;  %1879 = vpow2.f32 %v3623_v4  ;;  %v1069_v42 = vadd.f32 %v1836_v12, %v1068_v61  ;;  %v5768_v28 = vld [vmem:[#allocation68_spill] sm:$0xff]  ;;  %v5769_v4 = vld [vmem:[#allocation69_spill] sm:$0xff] }
 0x102   : > { %v1854_v22 = vpop.eup %1853  ;;  %1881 = vpow2.f32 %v3626_v13  ;;  %v1180_v40 = vadd.f32 %v1842_v6, %v1179_v21  ;;  %v3784_v55 = vmul.f32 1.442695, %v5768_v28  ;;  %v3787_v47 = vmul.f32 1.442695, %v5769_v4  ;;  %v5791_v4 = vld [vmem:[#allocation189_spill] sm:$0xff]  ;;  %v5793_v28 = vld [vmem:[#allocation83_spill] sm:$0xff] }
 0x103   : > { %v1856_v24 = vpop.eup %1855  ;;  %v1106_v25 = vadd.f32 %v1838_v37, %v1105_v48  ;;  %v1143_v26 = vadd.f32 %v1840_v30, %v1142_v33  ;;  %1883 = vpow2.f32 %v3631_v3  ;;  %v1070_v49 = vadd.f32 %v1844_v9, %v1069_v42  ;;  %v5771_v37 = vld [vmem:[#allocation181_spill] sm:$0xff]  ;;  %v5772_v30 = vld [vmem:[#allocation70_spill] sm:$0xff]  ;;  %v5773_v3 = vld [vmem:[#allocation71_spill] sm:$0xff] }
 0x104   : > { %v1858_v39 = vpop.eup %1857  ;;  %1885 = vpow2.f32 %v5770_v31  ;;  %v1181_v60 = vadd.f32 %v1850_v59, %v1180_v40  ;;  %v3792_v6 = vmul.f32 1.442695, %v5772_v30  ;;  %v3795_v16 = vmul.f32 1.442695, %v5773_v3  ;;  %v5774_v33 = vld [vmem:[#allocation182_spill] sm:$0xff]  ;;  %v5778_v3 = vld [vmem:[#allocation184_spill] sm:$0xff] }
 0x105   : > { %v1860_v56 = vpop.eup %1859  ;;  %v1107_v12 = vadd.f32 %v1846_v52, %v1106_v25  ;;  %v1144_v57 = vadd.f32 %v1848_v51, %v1143_v26  ;;  %1887 = vpow2.f32 %v5771_v37  ;;  %v1071_v61 = vadd.f32 %v1852_v14, %v1070_v49  ;;  %v5775_v52 = vld [vmem:[#allocation183_spill] sm:$0xff]  ;;  %v5776_v51 = vld [vmem:[#allocation72_spill] sm:$0xff]  ;;  %v5777_v25 = vld [vmem:[#allocation73_spill] sm:$0xff] }
 0x106   : > { %v1862_v13 = vpop.eup %1861  ;;  %1889 = vpow2.f32 %v5774_v33  ;;  %v1182_v42 = vadd.f32 %v1858_v39, %v1181_v60  ;;  %v3800_v59 = vmul.f32 1.442695, %v5776_v51  ;;  %v3803_v26 = vmul.f32 1.442695, %v5777_v25  ;;  %v5782_v25 = vld [vmem:[#allocation186_spill] sm:$0xff]  ;;  %v5790_v51 = vld [vmem:[#allocation81_spill] sm:$0xff] }
 0x107   : > { %v1864_v48 = vpop.eup %1863  ;;  %v1108_v9 = vadd.f32 %v1854_v22, %v1107_v12  ;;  %v1145_v21 = vadd.f32 %v1856_v24, %v1144_v57  ;;  %1891 = vpow2.f32 %v5775_v52  ;;  %v1072_v40 = vadd.f32 %v1860_v56, %v1071_v61  ;;  %v5779_v22 = vld [vmem:[#allocation185_spill] sm:$0xff]  ;;  %v5780_v24 = vld [vmem:[#allocation74_spill] sm:$0xff]  ;;  %v5781_v12 = vld [vmem:[#allocation75_spill] sm:$0xff] }
 0x108   : > { %v1866_v31 = vpop.eup %1865  ;;  %1893 = vpow2.f32 %v5778_v3  ;;  %v3808_v39 = vmul.f32 1.442695, %v5780_v24  ;;  %v3811_v57 = vmul.f32 1.442695, %v5781_v12  ;;  %v5783_v56 = vld [vmem:[#allocation76_spill] sm:$0xff]  ;;  %v5784_v3 = vld [vmem:[#allocation77_spill] sm:$0xff] }
 0x109   : > { %v1868_v37 = vpop.eup %1867  ;;  %v1109_v14 = vadd.f32 %v1862_v13, %v1108_v9  ;;  %v1146_v49 = vadd.f32 %v1864_v48, %v1145_v21  ;;  %v1183_v30 = vadd.f32 %v1866_v31, %v1182_v42  ;;  %1895 = vpow2.f32 %v5779_v22  ;;  %v5785_v21 = vld [vmem:[#allocation187_spill] sm:$0xff]  ;;  %v5786_v42 = vld [vmem:[#allocation78_spill] sm:$0xff]  ;;  %v5788_v24 = vld [vmem:[#allocation188_spill] sm:$0xff] }
 0x10a   : > { %v1870_v33 = vpop.eup %1869  ;;  %v1073_v60 = vadd.f32 %v1868_v37, %v1072_v40  ;;  %1897 = vpow2.f32 %v5782_v25  ;;  %v3815_v61 = vmul.f32 1.442695, %v5783_v56  ;;  %v3818_v13 = vmul.f32 1.442695, %v5784_v3  ;;  %v5787_v22 = vld [vmem:[#allocation79_spill] sm:$0xff]  ;;  %v5789_v25 = vld [vmem:[#allocation80_spill] sm:$0xff] }
 0x10b   : > { %v1872_v52 = vpop.eup %1871  ;;  %v1110_v48 = vadd.f32 %v1870_v33, %v1109_v14  ;;  %1899 = vpow2.f32 %v5785_v21  ;;  %v3822_v31 = vmul.f32 1.442695, %v5786_v42  ;;  %v3825_v12 = vmul.f32 1.442695, %v5787_v22  ;;  %v5792_v21 = vld [vmem:[#allocation82_spill] sm:$0xff] }
 0x10c   : > { %v1874_v9 = vpop.eup %1873  ;;  %v1147_v40 = vadd.f32 %v1872_v52, %v1146_v49  ;;  %1901 = vpow2.f32 %v5788_v24  ;;  %v3829_v56 = vmul.f32 1.442695, %v5789_v25  ;;  %v3832_v3 = vmul.f32 1.442695, %v5790_v51  ;;  %v5795_v24 = vld [vmem:[#allocation106_spill] sm:$0xff]  ;;  %v5796_v25 = vld [vmem:[#allocation139_spill] sm:$0xff] }
 0x10d   : > { %v1876_v37 = vpop.eup %1875  ;;  %v1184_v14 = vadd.f32 %v1874_v9, %v1183_v30  ;;  %1903 = vpow2.f32 %v5791_v4  ;;  %v3836_v42 = vmul.f32 1.442695, %v5792_v21  ;;  %v3839_v22 = vmul.f32 1.442695, %v5793_v28  ;;  %v5797_v51 = vld [vmem:[#allocation190_spill] sm:$0xff]  ;;  %v5798_v30 = vld [vmem:[#allocation84_spill] sm:$0xff] }
 0x10e   : > { %v1878_v33 = vpop.eup %1877  ;;  %v1074_v49 = vadd.f32 %v1876_v37, %v1073_v60  ;;  %vm678_vm0 = vcmp.eq.s32.totalorder %v5795_v24, %v5794_v44  ;;  %vm679_vm1 = vcmp.eq.s32.totalorder %v5795_v24, %v5796_v25  ;;  %1905 = vpow2.f32 %v5797_v51  ;;  %v5799_v4 = vld [vmem:[#allocation85_spill] sm:$0xff]  ;;  %v5800_v28 = vld [vmem:[#allocation142_spill] sm:$0xff]  ;;  %v5801_v60 = vld [vmem:[#allocation143_spill] sm:$0xff] }
 0x10f   : > { %v1880_v52 = vpop.eup %1879  ;;  %v3847_v9 = vmul.f32 1.442695, %v5798_v30  ;;  %v3850_v2 = vmul.f32 1.442695, %v5799_v4  ;;  %v1111_v21 = vadd.f32 %v1878_v33, %v1110_v48  ;;  %vm680_vm2 = vcmp.eq.s32.totalorder %v5795_v24, %v5800_v28  ;;  %v5802_v37 = vld [vmem:[#allocation191_spill] sm:$0xff]  ;;  %v5806_v48 = vld [vmem:[#allocation88_spill] sm:$0xff] }
 0x110   : > { %v1882_v63 = vpop.eup %1881  ;;  %vm681_vm3 = vcmp.eq.s32.totalorder %v5795_v24, %v5801_v60  ;;  %1907 = vpow2.f32 %v5802_v37  ;;  %v3858_v23 = vmul.f32 1.442695, %v5803_v41  ;;  %v5804_v51 = vld [vmem:[#allocation87_spill] sm:$0xff]  ;;  %v1148_v30 = vadd.f32 %v1880_v52, %v1147_v40  ;;  %v5807_v37 = vld [vmem:[#allocation89_spill] sm:$0xff]  ;;  %v5808_v40 = vld [vmem:[#allocation192_spill] sm:$0xff] }
 0x111   : > { %v3861_v54 = vmul.f32 1.442695, %v5804_v51  ;;  %v1884_v50 = vpop.eup %1883  ;;  %v5805_v4 = vld [vmem:[#allocation107_spill] sm:$0xff]  ;;  %1909 = vpow2.f32 %v3678_v10  ;;  %v3869_v33 = vmul.f32 1.442695, %v5806_v48  ;;  %v1185_v41 = vadd.f32 %v1882_v63, %v1184_v14  ;;  %v5809_v52 = vld [vmem:[#allocation90_spill] sm:$0xff] }
 0x112   : > { %vm682_vm4 = vcmp.eq.s32.totalorder %v5805_v4, %v5794_v44  ;;  %vm683_vm5 = vcmp.eq.s32.totalorder %v5805_v4, %v5796_v25  ;;  %v3872_v46 = vmul.f32 1.442695, %v5807_v37  ;;  %v1886_v19 = vpop.eup %1885  ;;  %vm684_vm6 = vcmp.eq.s32.totalorder %v5805_v4, %v5800_v28  ;;  %v5810_v10 = vld [vmem:[#allocation91_spill] sm:$0xff]  ;;  %v5811_v37 = vld [vmem:[#allocation108_spill] sm:$0xff] }
 0x113   : > { %vm685_vm7 = vcmp.eq.s32.totalorder %v5805_v4, %v5801_v60  ;;  %1911 = vpow2.f32 %v5808_v40  ;;  %v3880_v51 = vmul.f32 1.442695, %v5809_v52  ;;  %v3883_v8 = vmul.f32 1.442695, %v5810_v10  ;;  %v1888_v17 = vpop.eup %1887  ;;  %v5812_v63 = vld [vmem:[#allocation92_spill] sm:$0xff]  ;;  %v5814_v40 = vld [vmem:[#allocation93_spill] sm:$0xff] }
 0x114   : > { %v1075_v48 = vadd.f32 %v1884_v50, %v1074_v49  ;;  %vm686_vm8 = vcmp.eq.s32.totalorder %v5811_v37, %v5794_v44  ;;  %vm687_vm9 = vcmp.eq.s32.totalorder %v5811_v37, %v5796_v25  ;;  %1913 = vpow2.f32 %v3686_v20  ;;  %v1890_v43 = vpop.eup %1889  ;;  %v5816_v50 = vld [vmem:[#allocation94_spill] sm:$0xff]  ;;  %v5818_v20 = vld [vmem:[#allocation95_spill] sm:$0xff] }
 0x115   : > { %v3891_v14 = vmul.f32 1.442695, %v5812_v63  ;;  %v3894_v34 = vmul.f32 1.442695, %v5814_v40  ;;  %v1112_v52 = vadd.f32 %v1886_v19, %v1111_v21  ;;  %vm688_vm10 = vcmp.eq.s32.totalorder %v5811_v37, %v5800_v28  ;;  %v1892_v62 = vpop.eup %1891  ;;  %v5820_v40 = vld [vmem:[#allocation109_spill] sm:$0xff]  ;;  %v5821_v19 = vld [vmem:[#allocation96_spill] sm:$0xff] }
 0x116   : > { %vm689_vm11 = vcmp.eq.s32.totalorder %v5811_v37, %v5801_v60  ;;  %1915 = vpow2.f32 %v3689_v15  ;;  %v3902_v49 = vmul.f32 1.442695, %v5816_v50  ;;  %v3905_v10 = vmul.f32 1.442695, %v5818_v20  ;;  %v5823_v15 = vld [vmem:[#allocation97_spill] sm:$0xff] }
 0x117   : > { %5813 = vst [vmem:[#allocation180_spill] sm:$0xff] %v3891_v14  ;;  %5815 = vst [vmem:[#allocation181_spill] sm:$0xff] %v3894_v34  ;;  %v1149_v63 = vadd.f32 %v1888_v17, %v1148_v30  ;;  %1917 = vpow2.f32 %v3692_v11  ;;  %v3913_v21 = vmul.f32 1.442695, %v5821_v19  ;;  %v3916_v34 = vmul.f32 1.442695, %v5823_v15 }
 0x118   : > { %5817 = vst [vmem:[#allocation182_spill] sm:$0xff] %v3902_v49  ;;  %5819 = vst [vmem:[#allocation183_spill] sm:$0xff] %v3905_v10  ;;  %v1186_v50 = vadd.f32 %v1890_v43, %v1185_v41  ;;  %v1894_v49 = vpop.eup %1893  ;;  %v5825_v17 = vld [vmem:[#allocation193_spill] sm:$0xff]  ;;  %v5826_v30 = vld [vmem:[#allocation98_spill] sm:$0xff]  ;;  %v1076_v19 = vadd.f32 %v1892_v62, %v1075_v48 }
 0x119   : > { %5822 = vst [vmem:[#allocation184_spill] sm:$0xff] %v3913_v21  ;;  %5824 = vst [vmem:[#allocation185_spill] sm:$0xff] %v3916_v34  ;;  %1919 = vpow2.f32 %v5825_v17  ;;  %v3924_v20 = vmul.f32 1.442695, %v5826_v30  ;;  %v5828_v11 = vld [vmem:[#allocation99_spill] sm:$0xff]  ;;  %v1896_v21 = vpop.eup %1895  ;;  %v5830_v15 = vld [vmem:[#allocation110_spill] sm:$0xff]  ;;  %v1113_v30 = vadd.f32 %v1894_v49, %v1112_v52 }
 0x11a   : > { %v3927_v10 = vmul.f32 1.442695, %v5828_v11  ;;  %v5831_v43 = vld [vmem:[#allocation194_spill] sm:$0xff]  ;;  %v5832_v41 = vld [vmem:[#allocation100_spill] sm:$0xff]  ;;  %v5834_v17 = vld [vmem:[#allocation101_spill] sm:$0xff] }
 0x11b   : > { %5827 = vst [vmem:[#allocation186_spill] sm:$0xff] %v3924_v20  ;;  %1921 = vpow2.f32 %v5831_v43  ;;  %v3935_v34 = vmul.f32 1.442695, %v5832_v41  ;;  %v3938_v14 = vmul.f32 1.442695, %v5834_v17  ;;  %v1898_v20 = vpop.eup %1897  ;;  %v5836_v62 = vld [vmem:[#allocation102_spill] sm:$0xff]  ;;  %v1150_v41 = vadd.f32 %v1896_v21, %v1149_v63 }
 0x11c   : > { %5829 = vst [vmem:[#allocation187_spill] sm:$0xff] %v3927_v10  ;;  %1923 = vpow2.f32 %v3709_v53  ;;  %v3946_v48 = vmul.f32 1.442695, %v5836_v62  ;;  %v5838_v43 = vld [vmem:[#allocation103_spill] sm:$0xff]  ;;  %v5841_v52 = vld [vmem:[#allocation104_spill] sm:$0xff]  ;;  %v5843_v53 = vld [vmem:[#allocation105_spill] sm:$0xff]  ;;  %v1187_v62 = vadd.f32 %v1898_v20, %v1186_v50 }
 0x11d   : > { %5833 = vst [vmem:[#allocation188_spill] sm:$0xff] %v3935_v34  ;;  %5835 = vst [vmem:[#allocation189_spill] sm:$0xff] %v3938_v14  ;;  %v3949_v11 = vmul.f32 1.442695, %v5838_v43  ;;  %v1900_v34 = vpop.eup %1899  ;;  %v5840_v17 = vld [vmem:[#allocation111_spill] sm:$0xff]  ;;  %1925 = vpow2.f32 %v3712_v45  ;;  %v5845_v21 = vld [vmem:[#allocation140_spill] sm:$0xff] }
 0x11e   : > { %5837 = vst [vmem:[#allocation138_spill] sm:$0xff] %v3946_v48  ;;  %vm698_vm12 = vcmp.eq.s32.totalorder %v5840_v17, %v5794_v44  ;;  %vm699_vm13 = vcmp.eq.s32.totalorder %v5840_v17, %v5796_v25  ;;  %v3957_v49 = vmul.f32 1.442695, %v5841_v52  ;;  %v3960_v14 = vmul.f32 1.442695, %v5843_v53  ;;  %v1902_v48 = vpop.eup %1901  ;;  %v5846_v52 = vld [vmem:[#allocation141_spill] sm:$0xff] }
 0x11f   : > { %5839 = vst [vmem:[#allocation139_spill] sm:$0xff] %v3949_v11  ;;  %1927 = vpow2.f32 %v3721_v0  ;;  %v1077_v63 = vadd.f32 %v1900_v34, %v1076_v19  ;;  %v3971_v45 = vsel %vm678_vm0, %v5845_v21, 0.0  ;;  %v3977_v50 = vsel %vm679_vm1, %v5846_v52, 0.0  ;;  %v1904_v20 = vpop.eup %1903  ;;  %v5847_v53 = vld [vmem:[#allocation112_spill] sm:$0xff]  ;;  %v5849_v21 = vld [vmem:[#allocation145_spill] sm:$0xff]  ;;  %v5857_v11 = vld [vmem:[#allocation114_spill] sm:$0xff] }
 0x120   : > { %5842 = vst [vmem:[#allocation190_spill] sm:$0xff] %v3957_v49  ;;  %5844 = vst [vmem:[#allocation142_spill] sm:$0xff] %v3960_v14  ;;  %vm702_vm14 = vcmp.eq.s32.totalorder %v5847_v53, %v5794_v44  ;;  %vm703_vm15 = vcmp.eq.s32.totalorder %v5847_v53, %v5796_v25  ;;  %1929 = vpow2.f32 %v3724_v1  ;;  %v1114_v34 = vadd.f32 %v1902_v48, %v1113_v30  ;;  %v5848_v0 = vld [vmem:[#allocation144_spill] sm:$0xff]  ;;  %v1906_v43 = vpop.eup %1905  ;;  %v5850_v30 = vld [vmem:[#allocation146_spill] sm:$0xff] }
 0x121   : > { %v3988_v19 = vsel %vm680_vm2, %v5848_v0, 0.0  ;;  %v3994_v52 = vsel %vm681_vm3, %v5849_v21, 0.0  ;;  %vm704_vm0 = vcmp.eq.s32.totalorder %v5847_v53, %v5800_v28  ;;  %vm705_vm1 = vcmp.eq.s32.totalorder %v5847_v53, %v5801_v60  ;;  %v5851_v0 = vld [vmem:[#allocation147_spill] sm:$0xff]  ;;  %v1908_v24 = vpop.eup %1907  ;;  %v5852_v14 = vld [vmem:[#allocation113_spill] sm:$0xff] }
 0x122   : > { %1931 = vpow2.f32 %v3733_v36  ;;  %v1151_v1 = vadd.f32 %v1904_v20, %v1150_v41  ;;  %v4005_v48 = vsel %vm682_vm4, %v5850_v30, 0.0  ;;  %v4011_v21 = vsel %vm683_vm5, %v5851_v0, 0.0  ;;  %v5853_v41 = vld [vmem:[#allocation148_spill] sm:$0xff]  ;;  %v5854_v30 = vld [vmem:[#allocation149_spill] sm:$0xff]  ;;  %v1910_v49 = vpop.eup %1909 }
 0x123   : > { %vm706_vm2 = vcmp.eq.s32.totalorder %v5852_v14, %v5794_v44  ;;  %vm707_vm3 = vcmp.eq.s32.totalorder %v5852_v14, %v5796_v25  ;;  %1933 = vpow2.f32 %v3736_v27  ;;  %v1188_v36 = vadd.f32 %v1906_v43, %v1187_v62  ;;  %v5855_v62 = vld [vmem:[#allocation150_spill] sm:$0xff] }
 0x124   : > { %v4022_v20 = vsel %vm684_vm6, %v5853_v41, 0.0  ;;  %v4028_v0 = vsel %vm685_vm7, %v5854_v30, 0.0  ;;  %vm708_vm4 = vcmp.eq.s32.totalorder %v5852_v14, %v5800_v28  ;;  %vm709_vm5 = vcmp.eq.s32.totalorder %v5852_v14, %v5801_v60  ;;  %v5856_v41 = vld [vmem:[#allocation151_spill] sm:$0xff]  ;;  %v1912_v30 = vpop.eup %1911 }
 0x125   : > { %1935 = vpow2.f32 %v3745_v32  ;;  %v1078_v27 = vadd.f32 %v1908_v24, %v1077_v63  ;;  %v4039_v43 = vsel %vm686_vm8, %v5855_v62, 0.0  ;;  %v4045_v4 = vsel %vm687_vm9, %v5856_v41, 0.0  ;;  %v5858_v24 = vld [vmem:[#allocation152_spill] sm:$0xff]  ;;  %v5859_v62 = vld [vmem:[#allocation153_spill] sm:$0xff]  ;;  %v1914_v10 = vpop.eup %1913 }
 0x126   : > { %vm710_vm6 = vcmp.eq.s32.totalorder %v5857_v11, %v5794_v44  ;;  %vm711_vm7 = vcmp.eq.s32.totalorder %v5857_v11, %v5796_v25  ;;  %1937 = vpow2.f32 %v3748_v7  ;;  %v1115_v32 = vadd.f32 %v1910_v49, %v1114_v34  ;;  %v5861_v49 = vld [vmem:[#allocation154_spill] sm:$0xff] }
 0x127   : > { %v4056_v63 = vsel %vm688_vm10, %v5858_v24, 0.0  ;;  %v4062_v41 = vsel %vm689_vm11, %v5859_v62, 0.0  ;;  %1939 = vpow2.f32 %v3757_v35  ;;  %v1152_v7 = vadd.f32 %v1912_v30, %v1151_v1  ;;  %v5863_v24 = vld [vmem:[#allocation155_spill] sm:$0xff]  ;;  %v1916_v62 = vpop.eup %1915  ;;  %v5867_v1 = vld [vmem:[#allocation156_spill] sm:$0xff] }
 0x128   : > { %5860 = vst [vmem:[#allocation143_spill] sm:$0xff] %v4062_v41  ;;  %vm5862_vm10 = vcmp.eq.s32.totalorder %v5820_v40, %v5794_v44  ;;  %vm5864_vm11 = vcmp.eq.s32.totalorder %v5820_v40, %v5796_v25  ;;  %v5866_v41 = vld [vmem:[#allocation115_spill] sm:$0xff]  ;;  %1941 = vpow2.f32 %v3760_v29  ;;  %v1189_v35 = vadd.f32 %v1914_v10, %v1188_v36  ;;  %v5872_v10 = vld [vmem:[#allocation158_spill] sm:$0xff] }
 0x129   : > { %v4073_v34 = vsel %vm5862_vm10, %v5861_v49, 0.0  ;;  %v4079_v37 = vsel %vm5864_vm11, %v5863_v24, 0.0  ;;  %vm5868_vm10 = vcmp.eq.s32.totalorder %v5820_v40, %v5800_v28  ;;  %v5869_v49 = vld [vmem:[#allocation157_spill] sm:$0xff]  ;;  %vm5870_vm11 = vcmp.eq.s32.totalorder %v5820_v40, %v5801_v60 }
 0x12a   : > { %5865 = vst [vmem:[#allocation191_spill] sm:$0xff] %v4079_v37  ;;  %v4090_v30 = vsel %vm5868_vm10, %v5867_v1, 0.0  ;;  %v4096_v24 = vsel %vm5870_vm11, %v5869_v49, 0.0  ;;  %v1918_v37 = vpop.eup %1917  ;;  %1943 = vpow2.f32 %v3768_v38  ;;  %v1079_v29 = vadd.f32 %v1916_v62, %v1078_v27  ;;  %v5874_v1 = vld [vmem:[#allocation159_spill] sm:$0xff]  ;;  %v5878_v27 = vld [vmem:[#allocation160_spill] sm:$0xff] }
 0x12b   : > { %5871 = vst [vmem:[#allocation107_spill] sm:$0xff] %v4096_v24  ;;  %vm5873_vm10 = vcmp.eq.s32.totalorder %v5830_v15, %v5794_v44  ;;  %vm5875_vm11 = vcmp.eq.s32.totalorder %v5830_v15, %v5796_v25  ;;  %v1920_v49 = vpop.eup %1919  ;;  %v5877_v24 = vld [vmem:[#allocation116_spill] sm:$0xff]  ;;  %1945 = vpow2.f32 %v3771_v18  ;;  %v1116_v38 = vadd.f32 %v1918_v37, %v1115_v32  ;;  %v5883_v32 = vld [vmem:[#allocation162_spill] sm:$0xff] }
 0x12c   : > { %v4107_v36 = vsel %vm5873_vm10, %v5872_v10, 0.0  ;;  %v4113_v40 = vsel %vm5875_vm11, %v5874_v1, 0.0  ;;  %vm5879_vm10 = vcmp.eq.s32.totalorder %v5830_v15, %v5800_v28  ;;  %v5880_v10 = vld [vmem:[#allocation161_spill] sm:$0xff]  ;;  %vm5881_vm11 = vcmp.eq.s32.totalorder %v5830_v15, %v5801_v60 }
 0x12d   : > { %5876 = vst [vmem:[#allocation192_spill] sm:$0xff] %v4113_v40  ;;  %v4124_v62 = vsel %vm5879_vm10, %v5878_v27, 0.0  ;;  %v4130_v1 = vsel %vm5881_vm11, %v5880_v10, 0.0  ;;  %v1922_v40 = vpop.eup %1921  ;;  %vm720_vm8 = vcmp.eq.s32.totalorder %v5877_v24, %v5800_v28  ;;  %vm721_vm9 = vcmp.eq.s32.totalorder %v5877_v24, %v5801_v60  ;;  %v5884_v27 = vld [vmem:[#allocation163_spill] sm:$0xff] }
 0x12e   : > { %5882 = vst [vmem:[#allocation108_spill] sm:$0xff] %v4130_v1  ;;  %1947 = vpow2.f32 %v3776_v58  ;;  %v1153_v18 = vadd.f32 %v1920_v49, %v1152_v7  ;;  %v4141_v37 = vsel %vm698_vm12, %v5883_v32, 0.0  ;;  %v4147_v15 = vsel %vm699_vm13, %v5884_v27, 0.0  ;;  %v1924_v10 = vpop.eup %1923  ;;  %v5886_v1 = vld [vmem:[#allocation117_spill] sm:$0xff]  ;;  %v5887_v7 = vld [vmem:[#allocation164_spill] sm:$0xff] }
 0x12f   : > { %5885 = vst [vmem:[#allocation109_spill] sm:$0xff] %v4147_v15  ;;  %1949 = vpow2.f32 %v3779_v5  ;;  %v1190_v58 = vadd.f32 %v1922_v40, %v1189_v35  ;;  %vm5888_vm12 = vcmp.eq.s32.totalorder %v5840_v17, %v5800_v28  ;;  %v5889_v32 = vld [vmem:[#allocation165_spill] sm:$0xff]  ;;  %vm5890_vm13 = vcmp.eq.s32.totalorder %v5840_v17, %v5801_v60  ;;  %v1926_v15 = vpop.eup %1925  ;;  %v5892_v35 = vld [vmem:[#allocation166_spill] sm:$0xff] }
 0x130   : > { %v4158_v49 = vsel %vm5888_vm12, %v5887_v7, 0.0  ;;  %v4164_v27 = vsel %vm5890_vm13, %v5889_v32, 0.0  ;;  %vm724_vm10 = vcmp.eq.s32.totalorder %v5886_v1, %v5800_v28  ;;  %vm725_vm11 = vcmp.eq.s32.totalorder %v5886_v1, %v5801_v60  ;;  %v5893_v7 = vld [vmem:[#allocation167_spill] sm:$0xff]  ;;  %v1928_v32 = vpop.eup %1927 }
 0x131   : > { %5891 = vst [vmem:[#allocation193_spill] sm:$0xff] %v4164_v27  ;;  %1951 = vpow2.f32 %v3784_v55  ;;  %v1080_v5 = vadd.f32 %v1924_v10, %v1079_v29  ;;  %v4175_v40 = vsel %vm702_vm14, %v5892_v35, 0.0  ;;  %v4181_v17 = vsel %vm703_vm15, %v5893_v7, 0.0  ;;  %v5895_v27 = vld [vmem:[#allocation118_spill] sm:$0xff]  ;;  %v5896_v29 = vld [vmem:[#allocation168_spill] sm:$0xff]  ;;  %v5897_v35 = vld [vmem:[#allocation169_spill] sm:$0xff] }
 0x132   : > { %5894 = vst [vmem:[#allocation110_spill] sm:$0xff] %v4181_v17  ;;  %vm726_vm12 = vcmp.eq.s32.totalorder %v5895_v27, %v5794_v44  ;;  %vm727_vm13 = vcmp.eq.s32.totalorder %v5895_v27, %v5796_v25  ;;  %1953 = vpow2.f32 %v3787_v47  ;;  %v1117_v55 = vadd.f32 %v1926_v15, %v1116_v38  ;;  %v1930_v17 = vpop.eup %1929  ;;  %v5899_v38 = vld [vmem:[#allocation170_spill] sm:$0xff] }
 0x133   : > { %v4192_v10 = vsel %vm704_vm0, %v5896_v29, 0.0  ;;  %v4198_v7 = vsel %vm705_vm1, %v5897_v35, 0.0  ;;  %vm728_vm14 = vcmp.eq.s32.totalorder %v5895_v27, %v5800_v28  ;;  %vm729_vm15 = vcmp.eq.s32.totalorder %v5895_v27, %v5801_v60  ;;  %v5900_v29 = vld [vmem:[#allocation171_spill] sm:$0xff]  ;;  %v1932_v35 = vpop.eup %1931 }
 0x134   : > { %5898 = vst [vmem:[#allocation194_spill] sm:$0xff] %v4198_v7  ;;  %1955 = vpow2.f32 %v3792_v6  ;;  %v1154_v47 = vadd.f32 %v1928_v32, %v1153_v18  ;;  %v4209_v15 = vsel %vm706_vm2, %v5899_v38, 0.0  ;;  %v4215_v53 = vsel %vm707_vm3, %v5900_v29, 0.0  ;;  %v5902_v7 = vld [vmem:[#allocation119_spill] sm:$0xff]  ;;  %v5903_v18 = vld [vmem:[#allocation172_spill] sm:$0xff]  ;;  %v5904_v38 = vld [vmem:[#allocation173_spill] sm:$0xff] }
 0x135   : > { %5901 = vst [vmem:[#allocation111_spill] sm:$0xff] %v4215_v53  ;;  %vm730_vm0 = vcmp.eq.s32.totalorder %v5902_v7, %v5794_v44  ;;  %vm731_vm1 = vcmp.eq.s32.totalorder %v5902_v7, %v5796_v25  ;;  %1957 = vpow2.f32 %v3795_v16  ;;  %v1191_v6 = vadd.f32 %v1930_v17, %v1190_v58  ;;  %v1934_v53 = vpop.eup %1933  ;;  %v5906_v58 = vld [vmem:[#allocation174_spill] sm:$0xff] }
 0x136   : > { %v4226_v32 = vsel %vm708_vm4, %v5903_v18, 0.0  ;;  %v4232_v29 = vsel %vm709_vm5, %v5904_v38, 0.0  ;;  %vm732_vm2 = vcmp.eq.s32.totalorder %v5902_v7, %v5800_v28  ;;  %vm733_vm3 = vcmp.eq.s32.totalorder %v5902_v7, %v5801_v60  ;;  %v5907_v18 = vld [vmem:[#allocation175_spill] sm:$0xff]  ;;  %v1936_v38 = vpop.eup %1935 }
 0x137   : > { %5905 = vst [vmem:[#allocation140_spill] sm:$0xff] %v4232_v29  ;;  %1959 = vpow2.f32 %v3800_v59  ;;  %v1081_v16 = vadd.f32 %v1932_v35, %v1080_v5  ;;  %v4243_v17 = vsel %vm710_vm6, %v5906_v58, 0.0  ;;  %v4249_v14 = vsel %vm711_vm7, %v5907_v18, 0.0  ;;  %v5909_v29 = vld [vmem:[#allocation120_spill] sm:$0xff]  ;;  %v5912_v58 = vld [vmem:[#allocation177_spill] sm:$0xff] }
 0x138   : > { %5908 = vst [vmem:[#allocation141_spill] sm:$0xff] %v4249_v14  ;;  %1961 = vpow2.f32 %v3803_v26  ;;  %v1118_v59 = vadd.f32 %v1934_v53, %v1117_v55  ;;  %v5910_v5 = vld [vmem:[#allocation176_spill] sm:$0xff]  ;;  %vm5911_vm6 = vcmp.eq.s32.totalorder %v5857_v11, %v5800_v28  ;;  %vm5913_vm7 = vcmp.eq.s32.totalorder %v5857_v11, %v5801_v60  ;;  %v1938_v14 = vpop.eup %1937  ;;  %v5915_v55 = vld [vmem:[#allocation178_spill] sm:$0xff] }
 0x139   : > { %v4260_v35 = vsel %vm5911_vm6, %v5910_v5, 0.0  ;;  %v4266_v18 = vsel %vm5913_vm7, %v5912_v58, 0.0  ;;  %1963 = vpow2.f32 %v3808_v39  ;;  %v1155_v26 = vadd.f32 %v1936_v38, %v1154_v47  ;;  %v5917_v5 = vld [vmem:[#allocation179_spill] sm:$0xff]  ;;  %v1940_v58 = vpop.eup %1939  ;;  %v5921_v47 = vld [vmem:[#allocation16_spill] sm:$0xff] }
 0x13a   : > { %5914 = vst [vmem:[#allocation112_spill] sm:$0xff] %v4266_v18  ;;  %vm5916_vm6 = vcmp.eq.s32.totalorder %v5866_v41, %v5794_v44  ;;  %vm5918_vm7 = vcmp.eq.s32.totalorder %v5866_v41, %v5796_v25  ;;  %v5920_v18 = vld [vmem:[#allocation121_spill] sm:$0xff]  ;;  %1965 = vpow2.f32 %v3811_v57  ;;  %v1192_v39 = vadd.f32 %v1938_v14, %v1191_v6  ;;  %v5926_v6 = vld [vmem:[#allocation18_spill] sm:$0xff] }
 0x13b   : > { %v4277_v53 = vsel %vm5916_vm6, %v5915_v55, 0.0  ;;  %v4283_v11 = vsel %vm5918_vm7, %v5917_v5, 0.0  ;;  %vm5922_vm6 = vcmp.eq.s32.totalorder %v5866_v41, %v5800_v28  ;;  %v5923_v55 = vld [vmem:[#allocation17_spill] sm:$0xff]  ;;  %vm5924_vm7 = vcmp.eq.s32.totalorder %v5866_v41, %v5801_v60 }
 0x13c   : > { %5919 = vst [vmem:[#allocation144_spill] sm:$0xff] %v4283_v11  ;;  %v4294_v38 = vsel %vm5922_vm6, %v5921_v47, 0.0  ;;  %v4300_v5 = vsel %vm5924_vm7, %v5923_v55, 0.0  ;;  %v1942_v11 = vpop.eup %1941  ;;  %1967 = vpow2.f32 %v3815_v61  ;;  %v1082_v57 = vadd.f32 %v1940_v58, %v1081_v16  ;;  %v5928_v47 = vld [vmem:[#allocation19_spill] sm:$0xff]  ;;  %v5932_v16 = vld [vmem:[#allocation20_spill] sm:$0xff] }
 0x13d   : > { %5925 = vst [vmem:[#allocation145_spill] sm:$0xff] %v4300_v5  ;;  %vm5927_vm6 = vcmp.eq.s32.totalorder %v5877_v24, %v5794_v44  ;;  %vm5929_vm7 = vcmp.eq.s32.totalorder %v5877_v24, %v5796_v25  ;;  %v1944_v55 = vpop.eup %1943  ;;  %v5931_v5 = vld [vmem:[#allocation122_spill] sm:$0xff]  ;;  %1969 = vpow2.f32 %v3818_v13  ;;  %v1119_v61 = vadd.f32 %v1942_v11, %v1118_v59 }
 0x13e   : > { %v4311_v14 = vsel %vm5927_vm6, %v5926_v6, 0.0  ;;  %v4317_v41 = vsel %vm5929_vm7, %v5928_v47, 0.0  ;;  %vm742_vm4 = vcmp.eq.s32.totalorder %v5931_v5, %v5794_v44  ;;  %vm743_vm5 = vcmp.eq.s32.totalorder %v5931_v5, %v5796_v25  ;;  %v5933_v6 = vld [vmem:[#allocation21_spill] sm:$0xff]  ;;  %v5935_v59 = vld [vmem:[#allocation22_spill] sm:$0xff] }
 0x13f   : > { %5930 = vst [vmem:[#allocation146_spill] sm:$0xff] %v4317_v41  ;;  %v4328_v58 = vsel %vm720_vm8, %v5932_v16, 0.0  ;;  %v4334_v47 = vsel %vm721_vm9, %v5933_v6, 0.0  ;;  %v1946_v41 = vpop.eup %1945  ;;  %1971 = vpow2.f32 %v3822_v31  ;;  %v1156_v13 = vadd.f32 %v1944_v55, %v1155_v26  ;;  %v5937_v16 = vld [vmem:[#allocation23_spill] sm:$0xff]  ;;  %v5941_v26 = vld [vmem:[#allocation24_spill] sm:$0xff] }
 0x140   : > { %5934 = vst [vmem:[#allocation147_spill] sm:$0xff] %v4334_v47  ;;  %vm5936_vm8 = vcmp.eq.s32.totalorder %v5886_v1, %v5794_v44  ;;  %vm5938_vm9 = vcmp.eq.s32.totalorder %v5886_v1, %v5796_v25  ;;  %v1948_v6 = vpop.eup %1947  ;;  %v5940_v47 = vld [vmem:[#allocation123_spill] sm:$0xff]  ;;  %1973 = vpow2.f32 %v3825_v12  ;;  %v1193_v31 = vadd.f32 %v1946_v41, %v1192_v39  ;;  %v5944_v39 = vld [vmem:[#allocation26_spill] sm:$0xff] }
 0x141   : > { %v4345_v11 = vsel %vm5936_vm8, %v5935_v59, 0.0  ;;  %v4351_v24 = vsel %vm5938_vm9, %v5937_v16, 0.0  ;;  %vm746_vm6 = vcmp.eq.s32.totalorder %v5940_v47, %v5794_v44  ;;  %vm747_vm7 = vcmp.eq.s32.totalorder %v5940_v47, %v5796_v25  ;;  %v5942_v59 = vld [vmem:[#allocation25_spill] sm:$0xff] }
 0x142   : > { %5939 = vst [vmem:[#allocation113_spill] sm:$0xff] %v4351_v24  ;;  %v4362_v55 = vsel %vm724_vm10, %v5941_v26, 0.0  ;;  %v4368_v16 = vsel %vm725_vm11, %v5942_v59, 0.0  ;;  %v1950_v24 = vpop.eup %1949  ;;  %vm748_vm8 = vcmp.eq.s32.totalorder %v5940_v47, %v5800_v28  ;;  %vm749_vm9 = vcmp.eq.s32.totalorder %v5940_v47, %v5801_v60  ;;  %v5945_v26 = vld [vmem:[#allocation27_spill] sm:$0xff]  ;;  %v5994_v47 = vld [vmem:[#allocation181_spill] sm:$0xff] }
 0x143   : > { %5943 = vst [vmem:[#allocation148_spill] sm:$0xff] %v4368_v16  ;;  %1975 = vpow2.f32 %v3829_v56  ;;  %v1083_v12 = vadd.f32 %v1948_v6, %v1082_v57  ;;  %v4379_v41 = vsel %vm726_vm12, %v5944_v39, 0.0  ;;  %v4385_v1 = vsel %vm727_vm13, %v5945_v26, 0.0  ;;  %v1952_v59 = vpop.eup %1951  ;;  %v5947_v16 = vld [vmem:[#allocation124_spill] sm:$0xff]  ;;  %v5950_v39 = vld [vmem:[#allocation29_spill] sm:$0xff] }
 0x144   : > { %5946 = vst [vmem:[#allocation149_spill] sm:$0xff] %v4385_v1  ;;  %vm750_vm10 = vcmp.eq.s32.totalorder %v5947_v16, %v5794_v44  ;;  %vm751_vm11 = vcmp.eq.s32.totalorder %v5947_v16, %v5796_v25  ;;  %1977 = vpow2.f32 %v3832_v3  ;;  %v1120_v56 = vadd.f32 %v1950_v24, %v1119_v61  ;;  %v5948_v57 = vld [vmem:[#allocation28_spill] sm:$0xff]  ;;  %v1954_v1 = vpop.eup %1953  ;;  %v5952_v61 = vld [vmem:[#allocation30_spill] sm:$0xff] }
 0x145   : > { %v4396_v6 = vsel %vm728_vm14, %v5948_v57, 0.0  ;;  %v4402_v26 = vsel %vm729_vm15, %v5950_v39, 0.0  ;;  %vm752_vm12 = vcmp.eq.s32.totalorder %v5947_v16, %v5800_v28  ;;  %vm753_vm13 = vcmp.eq.s32.totalorder %v5947_v16, %v5801_v60  ;;  %v5953_v57 = vld [vmem:[#allocation31_spill] sm:$0xff]  ;;  %v1956_v39 = vpop.eup %1955 }
 0x146   : > { %5949 = vst [vmem:[#allocation150_spill] sm:$0xff] %v4396_v6  ;;  %5951 = vst [vmem:[#allocation151_spill] sm:$0xff] %v4402_v26  ;;  %1979 = vpow2.f32 %v3836_v42  ;;  %v1157_v3 = vadd.f32 %v1952_v59, %v1156_v13  ;;  %v4413_v24 = vsel %vm730_vm0, %v5952_v61, 0.0  ;;  %v4419_v27 = vsel %vm731_vm1, %v5953_v57, 0.0  ;;  %v5955_v6 = vld [vmem:[#allocation32_spill] sm:$0xff]  ;;  %v5956_v13 = vld [vmem:[#allocation33_spill] sm:$0xff]  ;;  %v1958_v61 = vpop.eup %1957 }
 0x147   : > { %5954 = vst [vmem:[#allocation114_spill] sm:$0xff] %v4419_v27  ;;  %1981 = vpow2.f32 %v3839_v22  ;;  %v1194_v26 = vadd.f32 %v1954_v1, %v1193_v31  ;;  %v4426_v42 = vsel %vm732_vm2, %v5955_v6, 0.0  ;;  %v4432_v59 = vsel %vm733_vm3, %v5956_v13, 0.0  ;;  %v5957_v27 = vld [vmem:[#allocation34_spill] sm:$0xff]  ;;  %v5959_v31 = vld [vmem:[#allocation35_spill] sm:$0xff]  ;;  %v1960_v6 = vpop.eup %1959  ;;  %v5962_v13 = vld [vmem:[#allocation36_spill] sm:$0xff] }
 0x148   : > { %1983 = vpow2.f32 %v3847_v9  ;;  %v1084_v57 = vadd.f32 %v1956_v39, %v1083_v12  ;;  %vm5958_vm14 = vcmp.eq.s32.totalorder %v5909_v29, %v5794_v44  ;;  %vm5960_vm15 = vcmp.eq.s32.totalorder %v5909_v29, %v5796_v25  ;;  %v5964_v12 = vld [vmem:[#allocation37_spill] sm:$0xff]  ;;  %v1962_v39 = vpop.eup %1961 }
 0x149   : > { %v4439_v22 = vsel %vm5958_vm14, %v5957_v27, 0.0  ;;  %v4445_v1 = vsel %vm5960_vm15, %v5959_v31, 0.0  ;;  %1985 = vpow2.f32 %v3850_v2  ;;  %v1121_v7 = vadd.f32 %v1958_v61, %v1120_v56  ;;  %v5968_v56 = vld [vmem:[#allocation39_spill] sm:$0xff] }
 0x14a   : > { %5961 = vst [vmem:[#allocation152_spill] sm:$0xff] %v4445_v1  ;;  %vm5963_vm0 = vcmp.eq.s32.totalorder %v5909_v29, %v5800_v28  ;;  %vm5965_vm1 = vcmp.eq.s32.totalorder %v5909_v29, %v5801_v60  ;;  %1987 = vpow2.f32 %v3858_v23  ;;  %v1158_v31 = vadd.f32 %v1960_v6, %v1157_v3  ;;  %v5966_v1 = vld [vmem:[#allocation38_spill] sm:$0xff]  ;;  %v5973_v3 = vld [vmem:[#allocation41_spill] sm:$0xff] }
 0x14b   : > { %v4452_v9 = vsel %vm5963_vm0, %v5962_v13, 0.0  ;;  %v4458_v27 = vsel %vm5965_vm1, %v5964_v12, 0.0  ;;  %vm5967_vm2 = vcmp.eq.s32.totalorder %v5920_v18, %v5794_v44  ;;  %vm5969_vm3 = vcmp.eq.s32.totalorder %v5920_v18, %v5796_v25  ;;  %v1964_v13 = vpop.eup %1963  ;;  %v5971_v12 = vld [vmem:[#allocation40_spill] sm:$0xff] }
 0x14c   : > { %v4465_v2 = vsel %vm5967_vm2, %v5966_v1, 0.0  ;;  %v4471_v61 = vsel %vm5969_vm3, %v5968_v56, 0.0  ;;  %1989 = vpow2.f32 %v3861_v54  ;;  %v1195_v29 = vadd.f32 %v1962_v39, %v1194_v26  ;;  %v1966_v6 = vpop.eup %1965  ;;  %v5976_v26 = vld [vmem:[#allocation43_spill] sm:$0xff] }
 0x14d   : > { %5970 = vst [vmem:[#allocation153_spill] sm:$0xff] %v4471_v61  ;;  %vm5972_vm14 = vcmp.eq.s32.totalorder %v5920_v18, %v5800_v28  ;;  %vm5974_vm15 = vcmp.eq.s32.totalorder %v5920_v18, %v5801_v60  ;;  %1991 = vpow2.f32 %v3869_v33  ;;  %v1085_v56 = vadd.f32 %v1964_v13, %v1084_v57  ;;  %v5975_v61 = vld [vmem:[#allocation42_spill] sm:$0xff]  ;;  %v5980_v57 = vld [vmem:[#allocation45_spill] sm:$0xff] }
 0x14e   : > { %v4478_v23 = vsel %vm5972_vm14, %v5971_v12, 0.0  ;;  %v4484_v1 = vsel %vm5974_vm15, %v5973_v3, 0.0  ;;  %v4491_v54 = vsel %vm742_vm4, %v5975_v61, 0.0  ;;  %v4497_v39 = vsel %vm743_vm5, %v5976_v26, 0.0  ;;  %v1968_v12 = vpop.eup %1967  ;;  %v5978_v3 = vld [vmem:[#allocation44_spill] sm:$0xff] }
 0x14f   : > { %5977 = vst [vmem:[#allocation154_spill] sm:$0xff] %v4497_v39  ;;  %1993 = vpow2.f32 %v3872_v46  ;;  %v1122_v18 = vadd.f32 %v1966_v6, %v1121_v7  ;;  %vm5979_vm0 = vcmp.eq.s32.totalorder %v5931_v5, %v5800_v28  ;;  %vm5981_vm4 = vcmp.eq.s32.totalorder %v5931_v5, %v5801_v60  ;;  %v1970_v13 = vpop.eup %1969  ;;  %v5982_v39 = vld [vmem:[#allocation46_spill] sm:$0xff]  ;;  %v5984_v7 = vld [vmem:[#allocation47_spill] sm:$0xff] }
 0x150   : > { %v4504_v33 = vsel %vm5979_vm0, %v5978_v3, 0.0  ;;  %v4510_v61 = vsel %vm5981_vm4, %v5980_v57, 0.0  ;;  %1995 = vpow2.f32 %v3880_v51  ;;  %v1159_v26 = vadd.f32 %v1968_v12, %v1158_v31  ;;  %v1972_v3 = vpop.eup %1971  ;;  %v5986_v57 = vld [vmem:[#allocation48_spill] sm:$0xff]  ;;  %v5987_v31 = vld [vmem:[#allocation49_spill] sm:$0xff] }
 0x151   : > { %v4517_v46 = vsel %vm746_vm6, %v5982_v39, 0.0  ;;  %v4523_v6 = vsel %vm747_vm7, %v5984_v7, 0.0  ;;  %1997 = vpow2.f32 %v3883_v8  ;;  %v1196_v5 = vadd.f32 %v1970_v13, %v1195_v29  ;;  %v1974_v12 = vpop.eup %1973  ;;  %v5992_v29 = vld [vmem:[#allocation51_spill] sm:$0xff] }
 0x152   : > { %5983 = vst [vmem:[#allocation155_spill] sm:$0xff] %v4517_v46  ;;  %5985 = vst [vmem:[#allocation115_spill] sm:$0xff] %v4523_v6  ;;  %v4530_v51 = vsel %vm748_vm8, %v5986_v57, 0.0  ;;  %v4536_v39 = vsel %vm749_vm9, %v5987_v31, 0.0  ;;  %v5989_v46 = vld [vmem:[#allocation180_spill] sm:$0xff]  ;;  %v1086_v7 = vadd.f32 %v1972_v3, %v1085_v56  ;;  %v5990_v6 = vld [vmem:[#allocation50_spill] sm:$0xff]  ;;  %v1976_v57 = vpop.eup %1975  ;;  %v1123_v31 = vadd.f32 %v1974_v12, %v1122_v18 }
 0x153   : > { %5988 = vst [vmem:[#allocation156_spill] sm:$0xff] %v4536_v39  ;;  %1999 = vpow2.f32 %v5989_v46  ;;  %v4543_v8 = vsel %vm750_vm10, %v5990_v6, 0.0  ;;  %v4549_v13 = vsel %vm751_vm11, %v5992_v29, 0.0  ;;  %v5995_v39 = vld [vmem:[#allocation52_spill] sm:$0xff]  ;;  %v5997_v46 = vld [vmem:[#allocation53_spill] sm:$0xff]  ;;  %v1978_v3 = vpop.eup %1977  ;;  %v1160_v29 = vadd.f32 %v1976_v57, %v1159_v26 }
 0x154   : > { %5991 = vst [vmem:[#allocation157_spill] sm:$0xff] %v4543_v8  ;;  %5993 = vst [vmem:[#allocation158_spill] sm:$0xff] %v4549_v13  ;;  %2001 = vpow2.f32 %v5994_v47  ;;  %v4556_v56 = vsel %vm752_vm12, %v5995_v39, 0.0  ;;  %v4562_v6 = vsel %vm753_vm13, %v5997_v46, 0.0  ;;  %v5998_v8 = vld [vmem:[#allocation182_spill] sm:$0xff]  ;;  %v1338_v47 = vadd.f32 %v4005_v48, %v3971_v45  ;;  %v1980_v12 = vpop.eup %1979  ;;  %v5999_v39 = vld [vmem:[#allocation125_spill] sm:$0xff] }
 0x155   : > { %5996 = vst [vmem:[#allocation159_spill] sm:$0xff] %v4556_v56  ;;  %2003 = vpow2.f32 %v5998_v8  ;;  %v1375_v18 = vadd.f32 %v4011_v21, %v3977_v50  ;;  %vm754_vm5 = vcmp.eq.s32.totalorder %v5999_v39, %v5794_v44  ;;  %v6000_v56 = vld [vmem:[#allocation183_spill] sm:$0xff]  ;;  %v1197_v13 = vadd.f32 %v1978_v3, %v1196_v5  ;;  %v1982_v26 = vpop.eup %1981  ;;  %v6001_v45 = vld [vmem:[#allocation184_spill] sm:$0xff]  ;;  %v6002_v5 = vld [vmem:[#allocation185_spill] sm:$0xff] }
 0x156   : > { %2005 = vpow2.f32 %v6000_v56  ;;  %v1412_v16 = vadd.f32 %v4022_v20, %v3988_v19  ;;  %v1449_v8 = vadd.f32 %v4028_v0, %v3994_v52  ;;  %vm755_vm6 = vcmp.eq.s32.totalorder %v5999_v39, %v5796_v25  ;;  %v1984_v57 = vpop.eup %1983  ;;  %v6003_v20 = vld [vmem:[#allocation143_spill] sm:$0xff] }
 0x157   : > { %2007 = vpow2.f32 %v6001_v45  ;;  %v1087_v50 = vadd.f32 %v1980_v12, %v1086_v7  ;;  %v1339_v48 = vadd.f32 %v1338_v47, %v4039_v43  ;;  %v1376_v21 = vadd.f32 %v1375_v18, %v4045_v4  ;;  %v1986_v56 = vpop.eup %1985  ;;  %v6004_v7 = vld [vmem:[#allocation186_spill] sm:$0xff]  ;;  %v6005_v46 = vld [vmem:[#allocation191_spill] sm:$0xff] }
 0x158   : > { %vm756_vm7 = vcmp.eq.s32.totalorder %v5999_v39, %v5800_v28  ;;  %2009 = vpow2.f32 %v6002_v5  ;;  %v1124_v19 = vadd.f32 %v1982_v26, %v1123_v31  ;;  %v1413_v52 = vadd.f32 %v1412_v16, %v4056_v63  ;;  %v1988_v47 = vpop.eup %1987  ;;  %v6006_v18 = vld [vmem:[#allocation126_spill] sm:$0xff]  ;;  %v6007_v31 = vld [vmem:[#allocation187_spill] sm:$0xff] }
 0x159   : > { %v1450_v0 = vadd.f32 %v1449_v8, %v6003_v20  ;;  %vm757_vm8 = vcmp.eq.s32.totalorder %v5999_v39, %v5801_v60  ;;  %2011 = vpow2.f32 %v6004_v7  ;;  %v1161_v43 = vadd.f32 %v1984_v57, %v1160_v29  ;;  %v6008_v16 = vld [vmem:[#allocation107_spill] sm:$0xff]  ;;  %v1990_v26 = vpop.eup %1989  ;;  %v6009_v29 = vld [vmem:[#allocation188_spill] sm:$0xff]  ;;  %v6014_v7 = vld [vmem:[#allocation109_spill] sm:$0xff] }
 0x15a   : > { %v1340_v4 = vadd.f32 %v1339_v48, %v4073_v34  ;;  %v1377_v3 = vadd.f32 %v1376_v21, %v6005_v46  ;;  %vm758_vm9 = vcmp.eq.s32.totalorder %v6006_v18, %v5794_v44  ;;  %2013 = vpow2.f32 %v6007_v31  ;;  %v6010_v48 = vld [vmem:[#allocation192_spill] sm:$0xff]  ;;  %v1992_v57 = vpop.eup %1991  ;;  %v6017_v31 = vld [vmem:[#allocation193_spill] sm:$0xff] }
 0x15b   : > { %v1198_v63 = vadd.f32 %v1986_v56, %v1197_v13  ;;  %v1414_v12 = vadd.f32 %v1413_v52, %v4090_v30  ;;  %v1451_v8 = vadd.f32 %v1450_v0, %v6008_v16  ;;  %vm759_vm10 = vcmp.eq.s32.totalorder %v6006_v18, %v5796_v25  ;;  %v6011_v13 = vld [vmem:[#allocation189_spill] sm:$0xff]  ;;  %v6012_v52 = vld [vmem:[#allocation108_spill] sm:$0xff] }
 0x15c   : > { %2015 = vpow2.f32 %v6009_v29  ;;  %v1088_v34 = vadd.f32 %v1988_v47, %v1087_v50  ;;  %v1341_v45 = vadd.f32 %v1340_v4, %v4107_v36  ;;  %v1378_v21 = vadd.f32 %v1377_v3, %v6010_v48  ;;  %v1994_v0 = vpop.eup %1993  ;;  %v6013_v50 = vld [vmem:[#allocation138_spill] sm:$0xff]  ;;  %v6015_v3 = vld [vmem:[#allocation127_spill] sm:$0xff] }
 0x15d   : > { %vm760_vm11 = vcmp.eq.s32.totalorder %v6006_v18, %v5800_v28  ;;  %2017 = vpow2.f32 %v6011_v13  ;;  %v1125_v30 = vadd.f32 %v1990_v26, %v1124_v19  ;;  %v1415_v5 = vadd.f32 %v1414_v12, %v4124_v62  ;;  %v1996_v46 = vpop.eup %1995  ;;  %v6016_v19 = vld [vmem:[#allocation139_spill] sm:$0xff]  ;;  %v6019_v26 = vld [vmem:[#allocation110_spill] sm:$0xff] }
 0x15e   : > { %v1452_v20 = vadd.f32 %v1451_v8, %v6012_v52  ;;  %vm761_vm12 = vcmp.eq.s32.totalorder %v6006_v18, %v5801_v60  ;;  %2019 = vpow2.f32 %v6013_v50  ;;  %v1162_v36 = vadd.f32 %v1992_v57, %v1161_v43  ;;  %v1998_v16 = vpop.eup %1997  ;;  %v6018_v43 = vld [vmem:[#allocation190_spill] sm:$0xff]  ;;  %v6042_v18 = vld [vmem:[#allocation113_spill] sm:$0xff] }
 0x15f   : > { %v1342_v56 = vadd.f32 %v1341_v45, %v4141_v37  ;;  %v1379_v4 = vadd.f32 %v1378_v21, %v6014_v7  ;;  %vm762_vm13 = vcmp.eq.s32.totalorder %v6015_v3, %v5794_v44  ;;  %2021 = vpow2.f32 %v6016_v19  ;;  %v6021_v21 = vld [vmem:[#allocation194_spill] sm:$0xff] }
 0x160   : > { %v1199_v62 = vadd.f32 %v1994_v0, %v1198_v63  ;;  %v1416_v47 = vadd.f32 %v1415_v5, %v4158_v49  ;;  %v1453_v12 = vadd.f32 %v1452_v20, %v6017_v31  ;;  %vm763_vm1 = vcmp.eq.s32.totalorder %v6015_v3, %v5796_v25  ;;  %v2000_v45 = vpop.eup %1999  ;;  %v6020_v63 = vld [vmem:[#allocation142_spill] sm:$0xff]  ;;  %v6023_v20 = vld [vmem:[#allocation111_spill] sm:$0xff] }
 0x161   : > { %2023 = vpow2.f32 %v6018_v43  ;;  %v1089_v37 = vadd.f32 %v1996_v46, %v1088_v34  ;;  %v1343_v8 = vadd.f32 %v1342_v56, %v4175_v40  ;;  %v1380_v29 = vadd.f32 %v1379_v4, %v6019_v26  ;;  %v2002_v13 = vpop.eup %2001  ;;  %v6022_v5 = vld [vmem:[#allocation54_spill] sm:$0xff]  ;;  %v6025_v56 = vld [vmem:[#allocation55_spill] sm:$0xff]  ;;  %v6026_v4 = vld [vmem:[#allocation140_spill] sm:$0xff] }
 0x162   : > { %vm764_vm2 = vcmp.eq.s32.totalorder %v6015_v3, %v5800_v28  ;;  %2025 = vpow2.f32 %v6020_v63  ;;  %v1126_v49 = vadd.f32 %v1998_v16, %v1125_v30  ;;  %v1417_v48 = vadd.f32 %v1416_v47, %v4192_v10  ;;  %v2004_v30 = vpop.eup %2003  ;;  %v6024_v10 = vld [vmem:[#allocation128_spill] sm:$0xff]  ;;  %v6031_v63 = vld [vmem:[#allocation129_spill] sm:$0xff] }
 0x163   : > { %v1454_v57 = vadd.f32 %v1453_v12, %v6021_v21  ;;  %vm765_vm3 = vcmp.eq.s32.totalorder %v6015_v3, %v5801_v60  ;;  %v1163_v34 = vadd.f32 %v2000_v45, %v1162_v36  ;;  %v4632_v40 = vsel %vm754_vm5, %v6022_v5, 0.0  ;;  %v2006_v19 = vpop.eup %2005  ;;  %v6027_v47 = vld [vmem:[#allocation56_spill] sm:$0xff]  ;;  %v6028_v12 = vld [vmem:[#allocation141_spill] sm:$0xff]  ;;  %v6032_v21 = vld [vmem:[#allocation58_spill] sm:$0xff] }
 0x164   : > { %v1344_v52 = vadd.f32 %v1343_v8, %v4209_v15  ;;  %v1381_v0 = vadd.f32 %v1380_v29, %v6023_v20  ;;  %vm766_vm14 = vcmp.eq.s32.totalorder %v6024_v10, %v5794_v44  ;;  %v1200_v50 = vadd.f32 %v2002_v13, %v1199_v62  ;;  %v2008_v43 = vpop.eup %2007  ;;  %v6029_v8 = vld [vmem:[#allocation57_spill] sm:$0xff]  ;;  %v6030_v29 = vld [vmem:[#allocation112_spill] sm:$0xff]  ;;  %v6052_v3 = vld [vmem:[#allocation114_spill] sm:$0xff] }
 0x165   : > { %v4642_v36 = vsel %vm755_vm6, %v6025_v56, 0.0  ;;  %v1418_v7 = vadd.f32 %v1417_v48, %v4226_v32  ;;  %v1455_v46 = vadd.f32 %v1454_v57, %v6026_v4  ;;  %vm767_vm15 = vcmp.eq.s32.totalorder %v6024_v10, %v5796_v25  ;;  %v2010_v45 = vpop.eup %2009  ;;  %v6033_v57 = vld [vmem:[#allocation144_spill] sm:$0xff] }
 0x166   : > { %v1090_v15 = vadd.f32 %v2004_v30, %v1089_v37  ;;  %v4652_v62 = vsel %vm756_vm7, %v6027_v47, 0.0  ;;  %v1345_v31 = vadd.f32 %v1344_v52, %v4243_v17  ;;  %v1382_v16 = vadd.f32 %v1381_v0, %v6028_v12  ;;  %v2012_v13 = vpop.eup %2011  ;;  %v6034_v52 = vld [vmem:[#allocation59_spill] sm:$0xff]  ;;  %v6035_v0 = vld [vmem:[#allocation145_spill] sm:$0xff] }
 0x167   : > { %vm768_vm0 = vcmp.eq.s32.totalorder %v6024_v10, %v5800_v28  ;;  %vm769_vm4 = vcmp.eq.s32.totalorder %v6024_v10, %v5801_v60  ;;  %v1127_v32 = vadd.f32 %v2006_v19, %v1126_v49  ;;  %v4664_v37 = vsel %vm757_vm8, %v6029_v8, 0.0  ;;  %v2014_v56 = vpop.eup %2013  ;;  %v6039_v12 = vld [vmem:[#allocation61_spill] sm:$0xff] }
 0x168   : > { %v1419_v26 = vadd.f32 %v1418_v7, %v4260_v35  ;;  %v1456_v17 = vadd.f32 %v1455_v46, %v6030_v29  ;;  %vm770_vm5 = vcmp.eq.s32.totalorder %v6031_v63, %v5794_v44  ;;  %vm771_vm6 = vcmp.eq.s32.totalorder %v6031_v63, %v5796_v25  ;;  %v6036_v7 = vld [vmem:[#allocation60_spill] sm:$0xff]  ;;  %v6037_v46 = vld [vmem:[#allocation146_spill] sm:$0xff] }
 0x169   : > { %v1164_v48 = vadd.f32 %v2008_v43, %v1163_v34  ;;  %v4676_v49 = vsel %vm758_vm9, %v6032_v21, 0.0  ;;  %v1346_v39 = vadd.f32 %v1345_v31, %v4277_v53  ;;  %v1383_v35 = vadd.f32 %v1382_v16, %v6033_v57  ;;  %v2016_v47 = vpop.eup %2015  ;;  %v6040_v43 = vld [vmem:[#allocation147_spill] sm:$0xff]  ;;  %v6041_v29 = vld [vmem:[#allocation62_spill] sm:$0xff] }
 0x16a   : > { %vm772_vm7 = vcmp.eq.s32.totalorder %v6031_v63, %v5800_v28  ;;  %v1201_v5 = vadd.f32 %v2010_v45, %v1200_v50  ;;  %v4686_v34 = vsel %vm759_vm10, %v6034_v52, 0.0  ;;  %v1420_v20 = vadd.f32 %v1419_v26, %v4294_v38  ;;  %v6038_v38 = vld [vmem:[#allocation130_spill] sm:$0xff]  ;;  %v2018_v26 = vpop.eup %2017 }
 0x16b   : > { %v1457_v30 = vadd.f32 %v1456_v17, %v6035_v0  ;;  %vm773_vm8 = vcmp.eq.s32.totalorder %v6031_v63, %v5801_v60  ;;  %v1091_v53 = vadd.f32 %v2012_v13, %v1090_v15  ;;  %v4696_v50 = vsel %vm760_vm11, %v6036_v7, 0.0  ;;  %v2020_v21 = vpop.eup %2019 }
 0x16c   : > { %v1347_v4 = vadd.f32 %v1346_v39, %v4311_v14  ;;  %v1384_v19 = vadd.f32 %v1383_v35, %v6037_v46  ;;  %vm774_vm9 = vcmp.eq.s32.totalorder %v6038_v38, %v5794_v44  ;;  %v1128_v31 = vadd.f32 %v2014_v56, %v1127_v32  ;;  %v6043_v39 = vld [vmem:[#allocation63_spill] sm:$0xff]  ;;  %v6044_v35 = vld [vmem:[#allocation148_spill] sm:$0xff]  ;;  %v2022_v52 = vpop.eup %2021  ;;  %v6048_v46 = vld [vmem:[#allocation65_spill] sm:$0xff] }
 0x16d   : > { %v4706_v15 = vsel %vm761_vm12, %v6039_v12, 0.0  ;;  %v1421_v16 = vadd.f32 %v1420_v20, %v4328_v58  ;;  %v1458_v8 = vadd.f32 %v1457_v30, %v6040_v43  ;;  %vm775_vm10 = vcmp.eq.s32.totalorder %v6038_v38, %v5796_v25  ;;  %v6045_v20 = vld [vmem:[#allocation64_spill] sm:$0xff]  ;;  %v6046_v30 = vld [vmem:[#allocation149_spill] sm:$0xff]  ;;  %v6050_v12 = vld [vmem:[#allocation151_spill] sm:$0xff] }
 0x16e   : > { %v1165_v14 = vadd.f32 %v2016_v47, %v1164_v48  ;;  %v4716_v32 = vsel %vm762_vm13, %v6041_v29, 0.0  ;;  %v1348_v17 = vadd.f32 %v1347_v4, %v4345_v11  ;;  %v1385_v45 = vadd.f32 %v1384_v19, %v6042_v18  ;;  %v2024_v7 = vpop.eup %2023  ;;  %v6049_v19 = vld [vmem:[#allocation150_spill] sm:$0xff]  ;;  %v6053_v18 = vld [vmem:[#allocation67_spill] sm:$0xff] }
 0x16f   : > { %vm776_vm11 = vcmp.eq.s32.totalorder %v6038_v38, %v5800_v28  ;;  %v1202_v58 = vadd.f32 %v2018_v26, %v1201_v5  ;;  %v4726_v48 = vsel %vm763_vm1, %v6043_v39, 0.0  ;;  %v1422_v57 = vadd.f32 %v1421_v16, %v4362_v55  ;;  %v6047_v55 = vld [vmem:[#allocation131_spill] sm:$0xff]  ;;  %v2026_v43 = vpop.eup %2025 }
 0x170   : > { %v1459_v13 = vadd.f32 %v1458_v8, %v6044_v35  ;;  %vm777_vm12 = vcmp.eq.s32.totalorder %v6038_v38, %v5801_v60  ;;  %v1092_v11 = vadd.f32 %v2020_v21, %v1091_v53  ;;  %v4736_v5 = vsel %vm764_vm2, %v6045_v20, 0.0  ;;  %v6051_v8 = vld [vmem:[#allocation66_spill] sm:$0xff] }
 0x171   : > { %v1349_v0 = vadd.f32 %v1348_v17, %v4379_v41  ;;  %v1386_v56 = vadd.f32 %v1385_v45, %v6046_v30  ;;  %vm778_vm13 = vcmp.eq.s32.totalorder %v6047_v55, %v5794_v44  ;;  %v1129_v4 = vadd.f32 %v2022_v52, %v1128_v31  ;;  %v6058_v52 = vld [vmem:[#allocation70_spill] sm:$0xff] }
 0x172   : > { %v4746_v53 = vsel %vm765_vm3, %v6048_v46, 0.0  ;;  %v1423_v47 = vadd.f32 %v1422_v57, %v6049_v19  ;;  %v1460_v16 = vadd.f32 %v1459_v13, %v6050_v12  ;;  %vm779_vm1 = vcmp.eq.s32.totalorder %v6047_v55, %v5796_v25 }
 0x173   : > { %v1166_v41 = vadd.f32 %v2024_v7, %v1165_v14  ;;  %v4756_v31 = vsel %vm766_vm14, %v6051_v8, 0.0  ;;  %v1350_v26 = vadd.f32 %v1349_v0, %v4413_v24  ;;  %v1387_v29 = vadd.f32 %v1386_v56, %v6052_v3  ;;  %v6054_v24 = vld [vmem:[#allocation68_spill] sm:$0xff]  ;;  %v6059_v0 = vld [vmem:[#allocation71_spill] sm:$0xff] }
 0x174   : > { %vm780_vm2 = vcmp.eq.s32.totalorder %v6047_v55, %v5800_v28  ;;  %v1203_v17 = vadd.f32 %v2026_v43, %v1202_v58  ;;  %v4766_v45 = vsel %vm767_vm15, %v6053_v18, 0.0  ;;  %v1424_v14 = vadd.f32 %v1423_v47, %v4426_v42  ;;  %v6055_v58 = vld [vmem:[#allocation69_spill] sm:$0xff]  ;;  %v6056_v42 = vld [vmem:[#allocation152_spill] sm:$0xff]  ;;  %v6064_v18 = vld [vmem:[#allocation154_spill] sm:$0xff] }
 0x175   : > { %v1461_v21 = vadd.f32 %v1460_v16, %v4432_v59  ;;  %vm781_vm3 = vcmp.eq.s32.totalorder %v6047_v55, %v5801_v60  ;;  %v4776_v39 = vsel %vm768_vm0, %v6054_v24, 0.0  ;;  %v4782_v57 = vsel %vm769_vm4, %v6055_v58, 0.0  ;;  %v6057_v59 = vld [vmem:[#allocation132_spill] sm:$0xff]  ;;  %v6061_v47 = vld [vmem:[#allocation153_spill] sm:$0xff]  ;;  %v6081_v55 = vld [vmem:[#allocation135_spill] sm:$0xff] }
 0x176   : > { %v1351_v35 = vadd.f32 %v1350_v26, %v4439_v22  ;;  %v1388_v13 = vadd.f32 %v1387_v29, %v6056_v42  ;;  %vm782_vm14 = vcmp.eq.s32.totalorder %v6057_v59, %v5794_v44  ;;  %v4792_v20 = vsel %vm770_vm5, %v6058_v52, 0.0  ;;  %v6060_v7 = vld [vmem:[#allocation72_spill] sm:$0xff]  ;;  %v6062_v16 = vld [vmem:[#allocation73_spill] sm:$0xff]  ;;  %v6063_v26 = vld [vmem:[#allocation74_spill] sm:$0xff] }
 0x177   : > { %v4798_v10 = vsel %vm771_vm6, %v6059_v0, 0.0  ;;  %v1425_v30 = vadd.f32 %v1424_v14, %v4452_v9  ;;  %v1462_v22 = vadd.f32 %v1461_v21, %v4458_v27  ;;  %vm783_vm15 = vcmp.eq.s32.totalorder %v6057_v59, %v5796_v25  ;;  %v6065_v14 = vld [vmem:[#allocation133_spill] sm:$0xff]  ;;  %v6066_v21 = vld [vmem:[#allocation75_spill] sm:$0xff] }
 0x178   : > { %v1093_v56 = vrot.slane %v1092_v11, 4  ;;  %v4808_v46 = vsel %vm772_vm7, %v6060_v7, 0.0  ;;  %v1352_v19 = vadd.f32 %v1351_v35, %v4465_v2  ;;  %v1389_v12 = vadd.f32 %v1388_v13, %v6061_v47  ;;  %v6067_v35 = vld [vmem:[#allocation76_spill] sm:$0xff]  ;;  %v6068_v13 = vld [vmem:[#allocation155_spill] sm:$0xff]  ;;  %v6072_v47 = vld [vmem:[#allocation78_spill] sm:$0xff] }
 0x179   : > { %vm784_vm0 = vcmp.eq.s32.totalorder %v6057_v59, %v5800_v28  ;;  %v1130_v9 = vrot.slane %v1129_v4, 4  ;;  %v4818_v27 = vsel %vm773_vm8, %v6062_v16, 0.0  ;;  %v1426_v43 = vadd.f32 %v1425_v30, %v4478_v23  ;;  %v6069_v0 = vld [vmem:[#allocation115_spill] sm:$0xff]  ;;  %v6074_v16 = vld [vmem:[#allocation158_spill] sm:$0xff] }
 0x17a   : > { %v1463_v8 = vadd.f32 %v1462_v22, %v4484_v1  ;;  %vm785_vm4 = vcmp.eq.s32.totalorder %v6057_v59, %v5801_v60  ;;  %v1167_v2 = vrot.slane %v1166_v41, 4  ;;  %v4828_v3 = vsel %vm774_vm9, %v6063_v26, 0.0  ;;  %v6070_v22 = vld [vmem:[#allocation77_spill] sm:$0xff]  ;;  %v6086_v59 = vld [vmem:[#allocation136_spill] sm:$0xff] }
 0x17b   : > { %v1353_v29 = vadd.f32 %v1352_v19, %v4491_v54  ;;  %v1390_v63 = vadd.f32 %v1389_v12, %v6064_v18  ;;  %vm786_vm5 = vcmp.eq.s32.totalorder %v6065_v14, %v5794_v44  ;;  %v1204_v23 = vrot.slane %v1203_v17, 4 }
 0x17c   : > { %v4838_v1 = vsel %vm775_vm10, %v6066_v21, 0.0  ;;  %v1427_v24 = vadd.f32 %v1426_v43, %v4504_v33  ;;  %v1464_v58 = vadd.f32 %v1463_v8, %v4510_v61  ;;  %vm787_vm6 = vcmp.eq.s32.totalorder %v6065_v14, %v5796_v25  ;;  %v6075_v43 = vld [vmem:[#allocation134_spill] sm:$0xff]  ;;  %v6076_v8 = vld [vmem:[#allocation79_spill] sm:$0xff] }
 0x17d   : > { %v1094_v54 = vadd.f32 %v1093_v56, %v1092_v11  ;;  %v4848_v42 = vsel %vm776_vm11, %v6067_v35, 0.0  ;;  %v1354_v52 = vadd.f32 %v1353_v29, %v6068_v13  ;;  %v1391_v30 = vadd.f32 %v1390_v63, %v6069_v0  ;;  %v6071_v56 = vld [vmem:[#allocation156_spill] sm:$0xff] }
 0x17e   : > { %vm788_vm7 = vcmp.eq.s32.totalorder %v6065_v14, %v5800_v28  ;;  %v1131_v33 = vadd.f32 %v1130_v9, %v1129_v4  ;;  %v4858_v61 = vsel %vm777_vm12, %v6070_v22, 0.0  ;;  %v1428_v11 = vadd.f32 %v1427_v24, %v4530_v51  ;;  %v6073_v4 = vld [vmem:[#allocation157_spill] sm:$0xff]  ;;  %v6078_v63 = vld [vmem:[#allocation80_spill] sm:$0xff] }
 0x17f   : > { %v1465_v7 = vadd.f32 %v1464_v58, %v6071_v56  ;;  %vm789_vm8 = vcmp.eq.s32.totalorder %v6065_v14, %v5801_v60  ;;  %v1168_v19 = vadd.f32 %v1167_v2, %v1166_v41  ;;  %v4868_v12 = vsel %vm778_vm13, %v6072_v47, 0.0  ;;  %v6077_v41 = vld [vmem:[#allocation159_spill] sm:$0xff]  ;;  %v6079_v58 = vld [vmem:[#allocation81_spill] sm:$0xff] }
 0x180   : > { %v1355_v9 = vadd.f32 %v1354_v52, %v6073_v4  ;;  %v1392_v38 = vadd.f32 %v1391_v30, %v6074_v16  ;;  %vm790_vm9 = vcmp.eq.s32.totalorder %v6075_v43, %v5794_v44  ;;  %v1205_v51 = vadd.f32 %v1204_v23, %v1203_v17  ;;  %v6080_v52 = vld [vmem:[#allocation82_spill] sm:$0xff] }
 0x181   : > { %v4878_v26 = vsel %vm779_vm1, %v6076_v8, 0.0  ;;  %v1429_v2 = vadd.f32 %v1428_v11, %v6077_v41  ;;  %v1466_v29 = vadd.f32 %v1465_v7, %v4562_v6  ;;  %vm791_vm10 = vcmp.eq.s32.totalorder %v6075_v43, %v5796_v25 }
 0x182   : > { %v1095_v18 = vrot.slane %v1094_v54, 2  ;;  %v4888_v21 = vsel %vm780_vm2, %v6078_v63, 0.0  ;;  %v1356_v17 = vadd.f32 %v1355_v9, %v4632_v40  ;;  %v1393_v23 = vadd.f32 %v1392_v38, %v4642_v36 }
 0x183   : > { %vm792_vm11 = vcmp.eq.s32.totalorder %v6075_v43, %v5800_v28  ;;  %v1132_v24 = vrot.slane %v1131_v33, 2  ;;  %v4898_v6 = vsel %vm781_vm3, %v6079_v58, 0.0  ;;  %v1430_v35 = vadd.f32 %v1429_v2, %v4652_v62  ;;  %v6082_v62 = vld [vmem:[#allocation83_spill] sm:$0xff] }
 0x184   : > { %v1467_v13 = vadd.f32 %v1466_v29, %v4664_v37  ;;  %vm793_vm12 = vcmp.eq.s32.totalorder %v6075_v43, %v5801_v60  ;;  %v1169_v40 = vrot.slane %v1168_v19, 2  ;;  %v1314_v36 = vsel %vm782_vm14, %v6080_v52, 0.0 }
 0x185   : > { %v1357_v0 = vadd.f32 %v1356_v17, %v4676_v49  ;;  %v1394_v30 = vadd.f32 %v1393_v23, %v4686_v34  ;;  %vm794_vm13 = vcmp.eq.s32.totalorder %v6081_v55, %v5794_v44  ;;  %v1206_v22 = vrot.slane %v1205_v51, 2  ;;  %v6083_v49 = vld [vmem:[#allocation84_spill] sm:$0xff] }
 0x186   : > { %v1315_v37 = vsel %vm783_vm15, %v6082_v62, 0.0  ;;  %v1431_v11 = vadd.f32 %v1430_v35, %v4696_v50  ;;  %v1468_v56 = vadd.f32 %v1467_v13, %v4706_v15  ;;  %vm795_vm1 = vcmp.eq.s32.totalorder %v6081_v55, %v5796_v25  ;;  %v6084_v50 = vld [vmem:[#allocation85_spill] sm:$0xff] }
 0x187   : > { %v1096_v7 = vadd.f32 %v1095_v18, %v1094_v54  ;;  %v1316_v34 = vsel %vm784_vm0, %v6083_v49, 0.0  ;;  %v1358_v47 = vadd.f32 %v1357_v0, %v4716_v32  ;;  %v1395_v4 = vadd.f32 %v1394_v30, %v4726_v48  ;;  %v6085_v32 = vld [vmem:[#allocation86_spill] sm:$0xff] }
 0x188   : > { %vm796_vm2 = vcmp.eq.s32.totalorder %v6081_v55, %v5800_v28  ;;  %v1133_v9 = vadd.f32 %v1132_v24, %v1131_v33  ;;  %v1317_v15 = vsel %vm785_vm4, %v6084_v50, 0.0  ;;  %v1432_v54 = vadd.f32 %v1431_v11, %v4736_v5  ;;  %v6087_v5 = vld [vmem:[#allocation87_spill] sm:$0xff]  ;;  %v6091_v24 = vld [vmem:[#allocation90_spill] sm:$0xff]  ;;  %v6094_v11 = vld [vmem:[#allocation93_spill] sm:$0xff] }
 0x189   : > { %v1469_v16 = vadd.f32 %v1468_v56, %v4746_v53  ;;  %vm797_vm3 = vcmp.eq.s32.totalorder %v6081_v55, %v5801_v60  ;;  %v1170_v38 = vadd.f32 %v1169_v40, %v1168_v19  ;;  %v1318_v48 = vsel %vm786_vm5, %v6085_v32, 0.0  ;;  %v6095_v49 = vld [vmem:[#allocation94_spill] sm:$0xff]  ;;  %v6098_v32 = vld [vmem:[#allocation97_spill] sm:$0xff]  ;;  %v6101_v55 = vld [vmem:[#allocation100_spill] sm:$0xff] }
 0x18a   : > { %v1359_v33 = vadd.f32 %v1358_v47, %v4756_v31  ;;  %v1396_v8 = vadd.f32 %v1395_v4, %v4766_v45  ;;  %vm798_vm14 = vcmp.eq.s32.totalorder %v6086_v59, %v5794_v44  ;;  %v1207_v41 = vadd.f32 %v1206_v22, %v1205_v51  ;;  %v6088_v31 = vld [vmem:[#allocation88_spill] sm:$0xff] }
 0x18b   : > { %v1319_v53 = vsel %vm787_vm6, %v6087_v5, 0.0  ;;  %v1433_v19 = vadd.f32 %v1432_v54, %v4776_v39  ;;  %v1470_v2 = vadd.f32 %v1469_v16, %v4782_v57  ;;  %vm799_vm15 = vcmp.eq.s32.totalorder %v6086_v59, %v5796_v25  ;;  %v6089_v57 = vld [vmem:[#allocation89_spill] sm:$0xff]  ;;  %v6097_v16 = vld [vmem:[#allocation96_spill] sm:$0xff]  ;;  %v6100_v5 = vld [vmem:[#allocation99_spill] sm:$0xff] }
 0x18c   : > { %v1097_v29 = vrot.slane %v1096_v7, 1  ;;  %v1320_v45 = vsel %vm788_vm7, %v6088_v31, 0.0  ;;  %v1360_v51 = vadd.f32 %v1359_v33, %v4792_v20  ;;  %v1397_v18 = vadd.f32 %v1396_v8, %v4798_v10  ;;  %v6090_v20 = vld [vmem:[#allocation137_spill] sm:$0xff]  ;;  %v6099_v8 = vld [vmem:[#allocation98_spill] sm:$0xff] }
 0x18d   : > { %vm800_vm0 = vcmp.eq.s32.totalorder %v6086_v59, %v5800_v28  ;;  %vm801_vm4 = vcmp.eq.s32.totalorder %v6086_v59, %v5801_v60  ;;  %v1134_v39 = vrot.slane %v1133_v9, 1  ;;  %v1321_v63 = vsel %vm789_vm8, %v6089_v57, 0.0  ;;  %v6104_v57 = vld [vmem:[#allocation103_spill] sm:$0xff] }
 0x18e   : > { %v1434_v17 = vadd.f32 %v1433_v19, %v4808_v46  ;;  %v1471_v23 = vadd.f32 %v1470_v2, %v4818_v27  ;;  %vm802_vm5 = vcmp.eq.s32.totalorder %v6090_v20, %v5794_v44  ;;  %vm803_vm6 = vcmp.eq.s32.totalorder %v6090_v20, %v5796_v25  ;;  %v6092_v27 = vld [vmem:[#allocation91_spill] sm:$0xff] }
 0x18f   : > { %v1171_v10 = vrot.slane %v1170_v38, 1  ;;  %v1322_v58 = vsel %vm790_vm9, %v6091_v24, 0.0  ;;  %v1361_v35 = vadd.f32 %v1360_v51, %v4828_v3  ;;  %v1398_v14 = vadd.f32 %v1397_v18, %v4838_v1  ;;  %v6093_v3 = vld [vmem:[#allocation92_spill] sm:$0xff]  ;;  %v6103_v18 = vld [vmem:[#allocation102_spill] sm:$0xff]  ;;  %v6106_v24 = vld [vmem:[#allocation105_spill] sm:$0xff] }
 0x190   : > { %vm804_vm7 = vcmp.eq.s32.totalorder %v6090_v20, %v5800_v28  ;;  %vm805_vm8 = vcmp.eq.s32.totalorder %v6090_v20, %v5801_v60  ;;  %v1208_v46 = vrot.slane %v1207_v41, 1  ;;  %v1323_v13 = vsel %vm791_vm10, %v6092_v27, 0.0 }
 0x191   : > { %v1435_v40 = vadd.f32 %v1434_v17, %v4848_v42  ;;  %v1472_v52 = vadd.f32 %v1471_v23, %v4858_v61  ;;  %v1098_v0 = vadd.f32 %v1097_v29, %v1096_v7  ;;  %v1324_v1 = vsel %vm792_vm11, %v6093_v3, 0.0  ;;  %v6102_v29 = vld [vmem:[#allocation101_spill] sm:$0xff] }
 0x192   : > { %v1362_v30 = vadd.f32 %v1361_v35, %v4868_v12  ;;  %v1399_v22 = vadd.f32 %v1398_v14, %v4878_v26  ;;  %v1135_v62 = vadd.f32 %v1134_v39, %v1133_v9  ;;  %v1325_v56 = vsel %vm793_vm12, %v6094_v11, 0.0  ;;  %v6096_v26 = vld [vmem:[#allocation95_spill] sm:$0xff] }
 0x193   : > { %v1436_v42 = vadd.f32 %v1435_v40, %v4888_v21  ;;  %v1473_v61 = vadd.f32 %v1472_v52, %v4898_v6  ;;  %v1172_v7 = vadd.f32 %v1171_v10, %v1170_v38  ;;  %v1326_v47 = vsel %vm794_vm13, %v6095_v49, 0.0  ;;  %v6105_v10 = vld [vmem:[#allocation104_spill] sm:$0xff] }
 0x194   : > { %v1363_v4 = vadd.f32 %v1362_v30, %v1314_v36  ;;  %v1400_v12 = vadd.f32 %v1399_v22, %v1315_v37  ;;  %v1209_v50 = vadd.f32 %v1208_v46, %v1207_v41  ;;  %v1327_v9 = vsel %vm795_vm1, %v6096_v26, 0.0 }
 0x195   : > { %v1437_v43 = vadd.f32 %v1436_v42, %v1316_v34  ;;  %v1474_v54 = vadd.f32 %v1473_v61, %v1317_v15  ;;  %v1328_v21 = vsel %vm796_vm2, %v6097_v16, 0.0  ;;  %2027 = vlog2.f32 %v1098_v0 }
 0x196   : > { %v1364_v6 = vadd.f32 %v1363_v4, %v1318_v48  ;;  %v1401_v38 = vadd.f32 %v1400_v12, %v1319_v53  ;;  %v1329_v36 = vsel %vm797_vm3, %v6098_v32, 0.0  ;;  %2029 = vlog2.f32 %v1135_v62 }
 0x197   : > { %v1438_v37 = vadd.f32 %v1437_v43, %v1320_v45  ;;  %v1475_v33 = vadd.f32 %v1474_v54, %v1321_v63  ;;  %v1330_v34 = vsel %vm798_vm14, %v6099_v8, 0.0  ;;  %2031 = vlog2.f32 %v1172_v7 }
 0x198   : > { %v1365_v15 = vadd.f32 %v1364_v6, %v1322_v58  ;;  %v1402_v41 = vadd.f32 %v1401_v38, %v1323_v13  ;;  %v1331_v48 = vsel %vm799_vm15, %v6100_v5, 0.0  ;;  %2033 = vlog2.f32 %v1209_v50 }
 0x199   : > { %v1439_v53 = vadd.f32 %v1438_v37, %v1324_v1  ;;  %v1476_v19 = vadd.f32 %v1475_v33, %v1325_v56  ;;  %v1332_v2 = vsel %vm800_vm0, %v6101_v55, 0.0  ;;  %v1333_v31 = vsel %vm801_vm4, %v6102_v29, 0.0 }
 0x19a   : > { %v1366_v45 = vadd.f32 %v1365_v15, %v1326_v47  ;;  %v1403_v51 = vadd.f32 %v1402_v41, %v1327_v9  ;;  %v1334_v39 = vsel %vm802_vm5, %v6103_v18, 0.0  ;;  %v1335_v63 = vsel %vm803_vm6, %v6104_v57, 0.0 }
 0x19b   : > { %v1440_v17 = vadd.f32 %v1439_v53, %v1328_v21  ;;  %v1477_v23 = vadd.f32 %v1476_v19, %v1329_v36  ;;  %v1336_v59 = vsel %vm804_vm7, %v6105_v10, 0.0  ;;  %v1337_v58 = vsel %vm805_vm8, %v6106_v24, 0.0 }
 0x19c   : > { %v1367_v35 = vadd.f32 %v1366_v45, %v1330_v34  ;;  %v1404_v44 = vadd.f32 %v1403_v51, %v1331_v48  ;;  %v2198_v56 = vmov 1966171168   ;;  %v6107_v48 = vld [vmem:[#allocation106_spill] sm:$0xff]  ;;  %v6108_v18 = vlaneseq }
 0x19d   : > { %v1441_v14 = vadd.f32 %v1440_v17, %v1332_v2  ;;  %v1478_v46 = vadd.f32 %v1477_v23, %v1333_v31  ;;  %v1505_v60 = vunpack.c.l.s4 %v2198_v56 }
 0x19e   : > { %v1368_v27 = vadd.f32 %v1367_v35, %v1334_v39  ;;  %v1405_v13 = vadd.f32 %v1404_v44, %v1335_v63  ;;  %vm1529_vm9 = vcmp.lt.s32.totalorder %v6108_v18, 512 }
 0x19f   : > { %v1442_v25 = vadd.f32 %v1441_v14, %v1336_v59  ;;  %v1479_v40 = vadd.f32 %v1478_v46, %v1337_v58  ;;  %v1506_v43 = vunpack.c.0.s8 %v1505_v60 }
 0x1a0   : > { %v1369_v52 = vrot.slane %v1368_v27, 4  ;;  %v1406_v0 = vrot.slane %v1405_v13, 4 }
 0x1a1   : > { %v1443_v3 = vrot.slane %v1442_v25, 4  ;;  %v1480_v1 = vrot.slane %v1479_v40, 4  ;;  %v1509_v53 = vsub.s32 %v1506_v43, %v6107_v48 }
 0x1a2   : > { %v1370_v30 = vadd.f32 %v1369_v52, %v1368_v27  ;;  %v1407_v28 = vadd.f32 %v1406_v0, %v1405_v13  ;;  %v2028_v22 = vpop.eup %2027 }
 0x1a3   : > { %v1444_v62 = vadd.f32 %v1443_v3, %v1442_v25  ;;  %v1481_v11 = vadd.f32 %v1480_v1, %v1479_v40  ;;  %v2030_v20 = vpop.eup %2029  ;;  %v1487_v21 = vmul.f32 0.6931472, %v2028_v22 }
 0x1a4   : > { %v1371_v42 = vrot.slane %v1370_v30, 2  ;;  %v1408_v61 = vrot.slane %v1407_v28, 2  ;;  %v2032_v7 = vpop.eup %2031  ;;  %v1489_v6 = vmul.f32 0.6931472, %v2030_v20 }
 0x1a5   : > { %v1445_v49 = vrot.slane %v1444_v62, 2  ;;  %v1482_v47 = vrot.slane %v1481_v11, 2  ;;  %v2034_v4 = vpop.eup %2033  ;;  %v1491_v36 = vmul.f32 0.6931472, %v2032_v7 }
 0x1a6   : > { %v1372_v12 = vadd.f32 %v1371_v42, %v1370_v30  ;;  %v1409_v50 = vadd.f32 %v1408_v61, %v1407_v28  ;;  %v1493_v37 = vmul.f32 0.6931472, %v2034_v4 }
 0x1a7   : > { %v1446_v26 = vadd.f32 %v1445_v49, %v1444_v62  ;;  %v1483_v9 = vadd.f32 %v1482_v47, %v1481_v11 }
 0x1a8   : > { %v1373_v54 = vrot.slane %v1372_v12, 1  ;;  %v1410_v16 = vrot.slane %v1409_v50, 1 }
 0x1a9   : > { %v1447_v38 = vrot.slane %v1446_v26, 1  ;;  %v1484_v32 = vrot.slane %v1483_v9, 1 }
 0x1aa   : > { %v1374_v33 = vadd.f32 %v1373_v54, %v1372_v12  ;;  %v1411_v8 = vadd.f32 %v1410_v16, %v1409_v50 }
 0x1ab   : > { %v1448_v34 = vadd.f32 %v1447_v38, %v1446_v26  ;;  %v1485_v15 = vadd.f32 %v1484_v32, %v1483_v9 }
 0x1ac   : > { %v1494_v41 = vsub.f32 %v1487_v21, %v1374_v33  ;;  %v1495_v5 = vsub.f32 %v1489_v6, %v1411_v8 }
 0x1ad   : > { %v1496_v19 = vsub.f32 %v1491_v36, %v1448_v34  ;;  %v1497_v55 = vsub.f32 %v1493_v37, %v1485_v15 }
 0x1ae   : > { %v1502_v2 = vcombine.low %v1494_v41, %v1495_v5 }
 0x1af   : > { %v1503_v29 = vcombine.low %v1496_v19, %v1497_v55 }
 0x1b0   : > { %v1510_v31 = vrot.slane %v1502_v2, %v1509_v53 }
 0x1b1   : > { %v1517_v45 = vrot.slane %v1503_v29, %v1509_v53 }
 0x1b3   : > { %v1518_v51 = vcombine.low %v1510_v31, %v1517_v45 }
 0x1b5   : > { %v1525_v39 = vrot.slane %v1518_v51, %v1509_v53 }
 0x1b7   : > { %1531 = vst.msk [vmem:[%s221_s22] sm:$0xf] %vm1529_vm9, %v1525_v39 }
 0x1b8   : > { %2104 = shalt.err (!%p2101_p6)
}
 0x1b9   : > { %s2105_s27 = scalar_lea.hbm %s1547_s13, 64  ;;  %s2109_s20 = scalar_lea.hbm %s5100_s2, 256 }
 0x1ba   : > { %p2106_p1 = scmp.ne.s32.totalorder %s1547_s13, %s2105_s27  ;;  %p2110_p10 = scmp.lt.s32.totalorder %s1547_s13, %s5100_s2 }
 0x1bb   : > { %p2111_p11 = scmp.lt.s32.totalorder %s2109_s20, %s2105_s27 }
 0x1bc   : > { %p2107_p3 = pnand %p2106_p1, %p2280_p9 }
 0x1bd   : > { %p2112_p8 = por %p2111_p11, %p2110_p10 }
 0x1be   : > { %p2108_p7 = pneg %p2107_p3 }
 0x1c0   : > { %p2113_p0 = pnand %p2112_p8, %p2108_p7 }
 0x1c2   : > { %2116 = shalt.err (!%p2113_p0)
}
 0x1c3   : > { %1688 = dma.vmem_to_hbm [thread:$0]  (%p2280_p9), %s1550_s26, 64, %s1547_s13, %s1533_s3  }
 0x1c4 PF: > { %p1702_p2 = scmp.ge.s32.totalorder %s2191_s16, 2  ;;  %s1561_s11 = sand.u32 1, %s2163_s9  }
 0x1c5   : > { %s1562_s28 = scalar_lea.sflag [#allocation4], %s1561_s11 }
 0x1c6   : > { %p1698_p13 = pnand %p1702_p2, %p2286_p12 }
 0x1c8   : > { %p1699_p4 = pneg %p1698_p13 }
 0x1ca   : > { %2158 = dma.done.wait (%p1699_p4), %s1562_s28, 64  }
 0x1cb   : > { %2160 = vsyncadd (%p1699_p4), %s1562_s28, 4294967232  ;;  %s21_s16 = sadd.s32 1, %s2191_s16   ;;  %s6110_s24 = sld [smem:[#allocation11_spill]] }
 0x1cc   : > { %p18_p5 = scmp.ge.s32.totalorder %s21_s16, 6   ;;  %s6111_s11 = sld [smem:[#allocation15_spill]] }
 0x1cd   : > { %s6112_s25 = sld [smem:[#allocation12_spill]]  ;;  %s6114_s9 = smov %s2167_s10 }
 0x1ce   : > { %s6113_s4 = sld [smem:[#allocation13_spill]]  ;;  %s6116_s12 = smov %s2183_s14 }
 0x1cf   : > { %s6117_s13 = smov %s2187_s15 }
 0x1d0   :  { %20 = sbr.rel (!%p18_p5) target bundleno = 11 (0xb), region = 86 }
 0x1d1   : > { %s6115_s10 = smov %s6110_s24 }
 0x1d3   : > { %s6118_s14 = smov %s6112_s25 }
 0x1d4   : > { %s6119_s15 = smov %s6113_s4 }
 0x1d5   :  { %1567 = vsyncpa [#allocation3], 1 }
 0x1d6   :  { %1569 = vsyncpa [#allocation3 + $0x1], 1 }
 0x1d7   :  { %1570 = vsyncpa [#allocation6], 1 }
 0x1d8   :  { %1572 = vsyncpa [#allocation6 + $0x1], 1 }
 0x1d9   :  { %1573 = vsyncpa [#allocation4], 1 }
 0x1da   :  { %1575 = vsyncpa [#allocation4 + $0x1], 1 }

</bundles_post_ra>
